<compile_context>
chip_gen: v7x
topology: tpu7x:2x2x1
jax: 0.10.0
libtpu: 0.0.40
codegen_flags: <defaults>
</compile_context>

<pallas_src>
import functools

import jax
import jax.numpy as jnp
from jax.experimental import pallas as pl
from jax.experimental.pallas import tpu as pltpu


# ----------------------------- kernel -----------------------------------------


def _layernorm(x, w, b, eps=1e-5):
    mu = jnp.mean(x, axis=-1, keepdims=True)
    xc = x - mu
    var = jnp.mean(xc * xc, axis=-1, keepdims=True)
    return xc * jax.lax.rsqrt(var + eps) * w + b


def fused_encoder_kernel(x_ref,
                         wqkv_ref, bqkv_ref, wo_ref, bo_ref,
                         ln1w_ref, ln1b_ref,
                         w1_ref, b1_ref, w2_ref, b2_ref,
                         ln2w_ref, ln2b_ref,
                         normw_ref, normb_ref,
                         o_ref,
                         h_ref, *, nhead):
    """Grid = (batch_blocks, n_layers). One step == one encoder layer on one batch block.

    The activation lives in `h_ref` (VMEM scratch, f32, (B*S, D)) across the layer axis.
    On the last layer step the final LayerNorm of the cls rows is written to o_ref.
    """
    l = pl.program_id(1)
    n_layers = pl.num_programs(1)

    B, S, D = x_ref.shape                       # B == batch_block
    N = B * S
    hd = D // nhead
    bf16 = jnp.bfloat16
    f32 = jnp.float32

    # Load the (pos-embedded) activation into resident VMEM scratch once per batch block.
    @pl.when(l == 0)
    def _():
        h_ref[...] = x_ref[...].reshape(N, D)

    x = h_ref[...]                              # (N, D) f32, resident across layers

    # ---- multi-head self-attention: single batched contraction over all heads --------------
    # (the 1/sqrt(hd) q-scale is already folded into wqkv/bqkv at pack time)
    qkv = jnp.dot(x.astype(bf16), wqkv_ref[0],
                  preferred_element_type=f32) + bqkv_ref[0]            # (N, 3D) f32
    q = qkv[:, 0 * D:1 * D]
    k = qkv[:, 1 * D:2 * D]
    v = qkv[:, 2 * D:3 * D]

    def split_heads(t):
        # (N, D) -> (nhead*B, S, hd), batch order = (head, batch). Lane slices + leading-dim
        # stack/reshape only (no lane-dim-splitting reshapes / 4-D transposes).
        parts = [t[:, h * hd:(h + 1) * hd] for h in range(nhead)]      # nhead x (N, hd)
        return jnp.stack(parts, axis=0).reshape(nhead * B, S, hd).astype(bf16)

    qh = split_heads(q)
    kh = split_heads(k)
    vh = split_heads(v)

    s = jnp.einsum('nqd,nkd->nqk', qh, kh,
                   preferred_element_type=f32)                         # (nhead*B, S, S) f32
    s = s - jnp.max(s, axis=-1, keepdims=True)
    p = jnp.exp(s)
    p = p * pl.reciprocal(jnp.sum(p, axis=-1, keepdims=True), approx=True)

    ctx = jnp.einsum('nqk,nkd->nqd', p.astype(bf16), vh,
                     preferred_element_type=f32)                       # (nhead*B, S, hd) f32
    ctx = ctx.reshape(nhead, N, hd)
    ctx2d = jnp.concatenate([ctx[h] for h in range(nhead)], axis=-1)   # (N, D), head-major cols

    attn = jnp.dot(ctx2d.astype(bf16), wo_ref[0],
                   preferred_element_type=f32) + bo_ref[0]             # (N, D)

    # ---- residual + norm1 (post-LN), f32 ----------------------------------------------------
    x1 = _layernorm(x + attn, ln1w_ref[0], ln1b_ref[0])

    # ---- feed-forward (ReLU) -----------------------------------------------------------------
    h1 = jnp.dot(x1.astype(bf16), w1_ref[0], preferred_element_type=f32) + b1_ref[0]
    h1 = jnp.maximum(h1, 0.0)
    h2 = jnp.dot(h1.astype(bf16), w2_ref[0], preferred_element_type=f32) + b2_ref[0]

    # ---- residual + norm2, f32 ---------------------------------------------------------------
    x2 = _layernorm(x1 + h2, ln2w_ref[0], ln2b_ref[0])
    h_ref[...] = x2

    # ---- last layer: final encoder LayerNorm on the cls rows only ----------------------------
    @pl.when(l == n_layers - 1)
    def _():
        cls = x2.reshape(B, S, D)[:, 0, :]                             # (B, D)
        o_ref[...] = _layernorm(cls, normw_ref[...], normb_ref[...]).astype(o_ref.dtype)


# ----------------------------- weight packing (one-time) -----------------------


def pack_params(params, nhead=8):
    """Transpose to (in, out), cast matmul weights to bf16, stack per-layer weights along a
    leading n_layers axis, and fold the 1/sqrt(head_dim) q-scaling into in_proj. Run ONCE."""
    layers = params['layers']
    D = params['cls_token'].shape[-1]
    hd = D // nhead
    scale = 1.0 / float(hd) ** 0.5
    bf16 = jnp.bfloat16

    def stack(name, transpose=False, dtype=None):
        arrs = [jnp.transpose(p[name]) if transpose else p[name] for p in layers]
        out = jnp.stack(arrs, axis=0)
        return out.astype(dtype) if dtype is not None else out

    # q = x @ wq + bq, scaled by 1/sqrt(hd)  ==  x @ (wq*scale) + bq*scale   (exact fold)
    qscale = jnp.concatenate([jnp.full((D,), scale, jnp.float32),
                              jnp.ones((2 * D,), jnp.float32)])          # (3D,)
    wqkv = (stack('in_w', transpose=True) * qscale).astype(bf16)         # (n, D, 3D)
    bqkv = stack('in_b') * qscale                                        # (n, 1, 3D) f32

    return {
        'cls_token': params['cls_token'],
        'pos_embed': params['pos_embed'],
        'norm_w': params['norm_w'],
        'norm_b': params['norm_b'],
        'wqkv': wqkv, 'bqkv': bqkv,
        'wo': stack('out_w', transpose=True, dtype=bf16),                # (n, D, D)
        'bo': stack('out_b'),                                            # (n, 1, D)
        'ln1w': stack('ln1_w'), 'ln1b': stack('ln1_b'),
        'w1': stack('ff1_w', transpose=True, dtype=bf16),                # (n, D, F)
        'b1': stack('ff1_b'),                                            # (n, 1, F)
        'w2': stack('ff2_w', transpose=True, dtype=bf16),                # (n, F, D)
        'b2': stack('ff2_b'),                                            # (n, 1, D)
        'ln2w': stack('ln2_w'), 'ln2b': stack('ln2_b'),
    }


# ----------------------------- wrapper -----------------------------------------


def taggregate_forward(x, packed, nhead=8, batch_block=None):
    """x: (B, clip_length, embed_dim), packed = pack_params(params) -> (B, embed_dim)."""
    B, L, D = x.shape
    S = L + 1
    assert D % nhead == 0
    n_layers = packed['wqkv'].shape[0]
    if batch_block is None:
        batch_block = B          # for large B on v7x, set batch_block < B to shard across TCs
    assert B % batch_block == 0
    nb = B // batch_block

    # cls concat + positional embedding: tiny, done in plain JAX (dropout p=0 -> identity).
    cls = jnp.broadcast_to(packed['cls_token'], (B, 1, D))
    h = jnp.concatenate([cls, x], axis=1) + packed['pos_embed']          # (B, S, D) f32

    weight_names = ['wqkv', 'bqkv', 'wo', 'bo', 'ln1w', 'ln1b',
                    'w1', 'b1', 'w2', 'b2', 'ln2w', 'ln2b']
    weight_args = [packed[n] for n in weight_names]

    def per_layer_spec(a):
        return pl.BlockSpec((1,) + a.shape[1:], lambda bi, l: (l, 0, 0))

    x_spec = pl.BlockSpec((batch_block, S, D), lambda bi, l: (bi, 0, 0))
    norm_spec = pl.BlockSpec((1, D), lambda bi, l: (0, 0))
    out_spec = pl.BlockSpec((batch_block, D), lambda bi, l: (bi, 0))

    # TODO(synk): for production sizes (D=2048, F=2048) on v7x (64 MiB VMEM), also tile the FFN
    # weights along F and/or raise vmem_limit_bytes; demo shapes fit comfortably in defaults.
    return pl.pallas_call(
        functools.partial(fused_encoder_kernel, nhead=nhead),
        out_shape=jax.ShapeDtypeStruct((B, D), jnp.float32),
        grid=(nb, n_layers),
        in_specs=[x_spec] + [per_layer_spec(a) for a in weight_args] + [norm_spec, norm_spec],
        out_specs=out_spec,
        scratch_shapes=[pltpu.VMEM((batch_block * S, D), jnp.float32)],
        compiler_params=pltpu.CompilerParams(
            dimension_semantics=("parallel", "arbitrary")),
    )(h, *weight_args, packed['norm_w'], packed['norm_b'])


# ----------------------------- pure-JAX reference (f32) ------------------------


def taggregate_reference(x, params, nhead=8):
    B, L, D = x.shape
    hd = D // nhead
    scale = 1.0 / float(hd) ** 0.5
    cls = jnp.broadcast_to(params['cls_token'], (B, 1, D))
    h = jnp.concatenate([cls, x], axis=1) + params['pos_embed']

    def ln(v, w, b, eps=1e-5):
        mu = jnp.mean(v, -1, keepdims=True)
        var = jnp.mean((v - mu) ** 2, -1, keepdims=True)
        return (v - mu) * jax.lax.rsqrt(var + eps) * w + b

    for p in params['layers']:
        qkv = jnp.einsum('bsd,ed->bse', h, p['in_w']) + p['in_b']
        q, k, v = qkv[..., :D] * scale, qkv[..., D:2 * D], qkv[..., 2 * D:]
        outs = []
        for hh in range(nhead):
            qh = q[..., hh * hd:(hh + 1) * hd]
            kh = k[..., hh * hd:(hh + 1) * hd]
            vh = v[..., hh * hd:(hh + 1) * hd]
            s = jnp.einsum('bqd,bkd->bqk', qh, kh)
            outs.append(jnp.einsum('bqk,bkd->bqd', jax.nn.softmax(s, axis=-1), vh))
        ctx = jnp.concatenate(outs, axis=-1)
        attn = jnp.einsum('bsd,ed->bse', ctx, p['out_w']) + p['out_b']
        x1 = ln(h + attn, p['ln1_w'], p['ln1_b'])
        f1 = jnp.maximum(jnp.einsum('bsd,fd->bsf', x1, p['ff1_w']) + p['ff1_b'], 0.0)
        f2 = jnp.einsum('bsf,df->bsd', f1, p['ff2_w']) + p['ff2_b']
        h = ln(x1 + f2, p['ln2_w'], p['ln2_b'])
    return ln(h[:, 0, :], params['norm_w'], params['norm_b'])


# ----------------------------- param init --------------------------------------


def init_params(key, clip_length, embed_dim, n_layers, ffn_dim):
    # Deterministic synthetic init (trunc_normal_ ~ normal * 0.02; LN weight=1, bias=0).
    def tn(k, shape, std=0.02):
        return (std * jax.random.normal(k, shape)).astype(jnp.float32)

    keys = jax.random.split(key, 2 + 4 * n_layers)
    D, F = embed_dim, ffn_dim
    params = {
        'cls_token': tn(keys[0], (1, 1, D)),
        'pos_embed': tn(keys[1], (1, clip_length + 1, D)),
        'norm_w': jnp.ones((1, D), jnp.float32),
        'norm_b': jnp.zeros((1, D), jnp.float32),
        'layers': [],
    }
    for l in range(n_layers):
        k0, k1, k2, k3 = keys[2 + 4 * l:2 + 4 * (l + 1)]
        params['layers'].append({
            'in_w': tn(k0, (3 * D, D)),          # MHA in_proj_weight (PyTorch (out,in))
            'in_b': jnp.zeros((1, 3 * D), jnp.float32),
            'out_w': tn(k1, (D, D)),             # MHA out_proj
            'out_b': jnp.zeros((1, D), jnp.float32),
            'ln1_w': jnp.ones((1, D), jnp.float32),
            'ln1_b': jnp.zeros((1, D), jnp.float32),
            'ff1_w': tn(k2, (F, D)),             # linear1
            'ff1_b': jnp.zeros((1, F), jnp.float32),
            'ff2_w': tn(k3, (D, F)),             # linear2
            'ff2_b': jnp.zeros((1, D), jnp.float32),
            'ln2_w': jnp.ones((1, D), jnp.float32),
            'ln2_b': jnp.zeros((1, D), jnp.float32),
        })
    return params


# ----------------------------- main ---------------------------------------------


if __name__ == "__main__":
    B = 2            # nvids
    CLIP_LEN = 8     # clip_length  -> S = 9
    D = 128          # embed_dim (lane-dense; module default 2048), divisible by nhead=8
    N_LAYERS = 2
    FFN = 256        # dim_feedforward (PyTorch default 2048, shrunk for the demo)
    NHEAD = 8

    key = jax.random.PRNGKey(0)
    kx, kp = jax.random.split(key)
    x = jax.random.normal(kx, (B, CLIP_LEN, D), jnp.float32)
    params = init_params(kp, CLIP_LEN, D, N_LAYERS, FFN)

    # One-time weight packing (transpose / bf16-cast / stack / q-scale fold).
    packed = jax.block_until_ready(pack_params(params, nhead=NHEAD))

    fwd = jax.jit(functools.partial(taggregate_forward, nhead=NHEAD))
    out = jax.block_until_ready(fwd(x, packed))
    assert out.shape == (B, D) and out.dtype == jnp.float32

    # Loose check vs f32 reference (kernel uses bf16 matmuls + approx reciprocal by design).
    ref = jax.block_until_ready(taggregate_reference(x, params, nhead=NHEAD))
    max_diff = float(jnp.max(jnp.abs(out - ref)))
    assert max_diff < 1e-1, f"max |diff| vs f32 reference too large: {max_diff}"

    print("KERNEL_OK")
</pallas_src>

<mosaic_0001>
module attributes {stable_mosaic.version = 11 : i64} {
  func.func @fused_encoder_kernel(%arg0: i32, %arg1: i32, %arg2: memref<2x9x128xf32, #tpu.memory_space<vmem>>, %arg3: memref<1x128x384xbf16, #tpu.memory_space<vmem>>, %arg4: memref<1x1x384xf32, #tpu.memory_space<vmem>>, %arg5: memref<1x128x128xbf16, #tpu.memory_space<vmem>>, %arg6: memref<1x1x128xf32, #tpu.memory_space<vmem>>, %arg7: memref<1x1x128xf32, #tpu.memory_space<vmem>>, %arg8: memref<1x1x128xf32, #tpu.memory_space<vmem>>, %arg9: memref<1x128x256xbf16, #tpu.memory_space<vmem>>, %arg10: memref<1x1x256xf32, #tpu.memory_space<vmem>>, %arg11: memref<1x256x128xbf16, #tpu.memory_space<vmem>>, %arg12: memref<1x1x128xf32, #tpu.memory_space<vmem>>, %arg13: memref<1x1x128xf32, #tpu.memory_space<vmem>>, %arg14: memref<1x1x128xf32, #tpu.memory_space<vmem>>, %arg15: memref<1x128xf32, #tpu.memory_space<vmem>>, %arg16: memref<1x128xf32, #tpu.memory_space<vmem>>, %arg17: memref<2x128xf32, #tpu.memory_space<vmem>>, %arg18: memref<18x128xf32, #tpu.memory_space<vmem>>) attributes {dimension_semantics = [#tpu.dimension_semantics<parallel>, #tpu.dimension_semantics<arbitrary>], iteration_bounds = array<i64: 1, 2>, scalar_prefetch = 0 : i64, scratch_operands = 1 : i64, tpu.core_type = #tpu.core_type<tc>, window_params = [{transform_indices = @transform_0, window_bounds = array<i64: 2, 9, 128>}, {transform_indices = @transform_1, window_bounds = array<i64: 1, 128, 384>}, {transform_indices = @transform_2, window_bounds = array<i64: 1, 1, 384>}, {transform_indices = @transform_3, window_bounds = array<i64: 1, 128, 128>}, {transform_indices = @transform_4, window_bounds = array<i64: 1, 1, 128>}, {transform_indices = @transform_5, window_bounds = array<i64: 1, 1, 128>}, {transform_indices = @transform_6, window_bounds = array<i64: 1, 1, 128>}, {transform_indices = @transform_7, window_bounds = array<i64: 1, 128, 256>}, {transform_indices = @transform_8, window_bounds = array<i64: 1, 1, 256>}, {transform_indices = @transform_9, window_bounds = array<i64: 1, 256, 128>}, {transform_indices = @transform_10, window_bounds = array<i64: 1, 1, 128>}, {transform_indices = @transform_11, window_bounds = array<i64: 1, 1, 128>}, {transform_indices = @transform_12, window_bounds = array<i64: 1, 1, 128>}, {pipeline_mode = #tpu.pipeline_mode<synchronous>, transform_indices = @transform_13, window_bounds = array<i64: 1, 128>}, {pipeline_mode = #tpu.pipeline_mode<synchronous>, transform_indices = @transform_14, window_bounds = array<i64: 1, 128>}, {transform_indices = @transform_15, window_bounds = array<i64: 2, 128>}]} {
    %c0_i32 = arith.constant 0 : i32
    %0 = arith.cmpi eq, %arg1, %c0_i32 : i32
    %1 = arith.extui %0 : i1 to i32
    %c0_i32_0 = arith.constant 0 : i32
    %2 = arith.cmpi ne, %1, %c0_i32_0 : i32
    scf.if %2 {
      %c0_59 = arith.constant 0 : index
      %c0_60 = arith.constant 0 : index
      %c0_61 = arith.constant 0 : index
      %183 = vector.load %arg2[%c0_59, %c0_60, %c0_61] : memref<2x9x128xf32, #tpu.memory_space<vmem>>, vector<2x9x128xf32>
      %184 = vector.shape_cast %183 : vector<2x9x128xf32> to vector<18x128xf32>
      %c0_62 = arith.constant 0 : index
      %c0_63 = arith.constant 0 : index
      %185 = vector.load %arg18[%c0_62, %c0_63] : memref<18x128xf32, #tpu.memory_space<vmem>>, vector<18x128xf32>
      tpu.vector_store %arg18[%c0_62, %c0_63], %184 {strides = array<i32>} : memref<18x128xf32, #tpu.memory_space<vmem>>, vector<18x128xf32>,
    } else {
    }
    %c0 = arith.constant 0 : index
    %c0_1 = arith.constant 0 : index
    %3 = vector.load %arg18[%c0, %c0_1] : memref<18x128xf32, #tpu.memory_space<vmem>>, vector<18x128xf32>
    %4 = arith.truncf %3 : vector<18x128xf32> to vector<18x128xbf16>
    %c0_2 = arith.constant 0 : index
    %c0_3 = arith.constant 0 : index
    %c0_4 = arith.constant 0 : index
    %5 = vector.load %arg3[%c0_2, %c0_3, %c0_4] : memref<1x128x384xbf16, #tpu.memory_space<vmem>>, vector<1x128x384xbf16>
    %6 = vector.shape_cast %5 : vector<1x128x384xbf16> to vector<128x384xbf16>
    %cst = arith.constant dense<0.000000e+00> : vector<18x384xf32>
    %7 = tpu.matmul %4, %6, %cst {dimension_numbers = #tpu.dot_dimension_numbers<[1], [0], [0], [1], [0, 0, 1, 1], [], []>} : vector<18x128xbf16>, vector<128x384xbf16>, vector<18x384xf32> -> vector<18x384xf32>
    %c0_5 = arith.constant 0 : index
    %c0_6 = arith.constant 0 : index
    %c0_7 = arith.constant 0 : index
    %8 = vector.load %arg4[%c0_5, %c0_6, %c0_7] : memref<1x1x384xf32, #tpu.memory_space<vmem>>, vector<1x1x384xf32>
    %9 = vector.shape_cast %8 : vector<1x1x384xf32> to vector<1x384xf32>
    %10 = vector.broadcast %9 : vector<1x384xf32> to vector<18x384xf32>
    %11 = arith.addf %7, %10 : vector<18x384xf32>
    %12 = vector.extract_strided_slice %11 {offsets = [0, 0], sizes = [18, 128], strides = [1, 1]} : vector<18x384xf32> to vector<18x128xf32>
    %13 = vector.extract_strided_slice %11 {offsets = [0, 128], sizes = [18, 128], strides = [1, 1]} : vector<18x384xf32> to vector<18x128xf32>
    %14 = vector.extract_strided_slice %11 {offsets = [0, 256], sizes = [18, 128], strides = [1, 1]} : vector<18x384xf32> to vector<18x128xf32>
    %15 = vector.extract_strided_slice %12 {offsets = [0, 0], sizes = [18, 16], strides = [1, 1]} : vector<18x128xf32> to vector<18x16xf32>
    %16 = vector.extract_strided_slice %12 {offsets = [0, 16], sizes = [18, 16], strides = [1, 1]} : vector<18x128xf32> to vector<18x16xf32>
    %17 = vector.extract_strided_slice %12 {offsets = [0, 32], sizes = [18, 16], strides = [1, 1]} : vector<18x128xf32> to vector<18x16xf32>
    %18 = vector.extract_strided_slice %12 {offsets = [0, 48], sizes = [18, 16], strides = [1, 1]} : vector<18x128xf32> to vector<18x16xf32>
    %19 = vector.extract_strided_slice %12 {offsets = [0, 64], sizes = [18, 16], strides = [1, 1]} : vector<18x128xf32> to vector<18x16xf32>
    %20 = vector.extract_strided_slice %12 {offsets = [0, 80], sizes = [18, 16], strides = [1, 1]} : vector<18x128xf32> to vector<18x16xf32>
    %21 = vector.extract_strided_slice %12 {offsets = [0, 96], sizes = [18, 16], strides = [1, 1]} : vector<18x128xf32> to vector<18x16xf32>
    %22 = vector.extract_strided_slice %12 {offsets = [0, 112], sizes = [18, 16], strides = [1, 1]} : vector<18x128xf32> to vector<18x16xf32>
    %23 = vector.shape_cast %15 : vector<18x16xf32> to vector<1x18x16xf32>
    %24 = vector.shape_cast %16 : vector<18x16xf32> to vector<1x18x16xf32>
    %25 = vector.shape_cast %17 : vector<18x16xf32> to vector<1x18x16xf32>
    %26 = vector.shape_cast %18 : vector<18x16xf32> to vector<1x18x16xf32>
    %27 = vector.shape_cast %19 : vector<18x16xf32> to vector<1x18x16xf32>
    %28 = vector.shape_cast %20 : vector<18x16xf32> to vector<1x18x16xf32>
    %29 = vector.shape_cast %21 : vector<18x16xf32> to vector<1x18x16xf32>
    %30 = vector.shape_cast %22 : vector<18x16xf32> to vector<1x18x16xf32>
    %31 = tpu.concatenate %23, %24, %25, %26, %27, %28, %29, %30 in 0 : vector<1x18x16xf32>, vector<1x18x16xf32>, vector<1x18x16xf32>, vector<1x18x16xf32>, vector<1x18x16xf32>, vector<1x18x16xf32>, vector<1x18x16xf32>, vector<1x18x16xf32> -> vector<8x18x16xf32>
    %32 = vector.shape_cast %31 : vector<8x18x16xf32> to vector<16x9x16xf32>
    %33 = arith.truncf %32 : vector<16x9x16xf32> to vector<16x9x16xbf16>
    %34 = vector.extract_strided_slice %13 {offsets = [0, 0], sizes = [18, 16], strides = [1, 1]} : vector<18x128xf32> to vector<18x16xf32>
    %35 = vector.extract_strided_slice %13 {offsets = [0, 16], sizes = [18, 16], strides = [1, 1]} : vector<18x128xf32> to vector<18x16xf32>
    %36 = vector.extract_strided_slice %13 {offsets = [0, 32], sizes = [18, 16], strides = [1, 1]} : vector<18x128xf32> to vector<18x16xf32>
    %37 = vector.extract_strided_slice %13 {offsets = [0, 48], sizes = [18, 16], strides = [1, 1]} : vector<18x128xf32> to vector<18x16xf32>
    %38 = vector.extract_strided_slice %13 {offsets = [0, 64], sizes = [18, 16], strides = [1, 1]} : vector<18x128xf32> to vector<18x16xf32>
    %39 = vector.extract_strided_slice %13 {offsets = [0, 80], sizes = [18, 16], strides = [1, 1]} : vector<18x128xf32> to vector<18x16xf32>
    %40 = vector.extract_strided_slice %13 {offsets = [0, 96], sizes = [18, 16], strides = [1, 1]} : vector<18x128xf32> to vector<18x16xf32>
    %41 = vector.extract_strided_slice %13 {offsets = [0, 112], sizes = [18, 16], strides = [1, 1]} : vector<18x128xf32> to vector<18x16xf32>
    %42 = vector.shape_cast %34 : vector<18x16xf32> to vector<1x18x16xf32>
    %43 = vector.shape_cast %35 : vector<18x16xf32> to vector<1x18x16xf32>
    %44 = vector.shape_cast %36 : vector<18x16xf32> to vector<1x18x16xf32>
    %45 = vector.shape_cast %37 : vector<18x16xf32> to vector<1x18x16xf32>
    %46 = vector.shape_cast %38 : vector<18x16xf32> to vector<1x18x16xf32>
    %47 = vector.shape_cast %39 : vector<18x16xf32> to vector<1x18x16xf32>
    %48 = vector.shape_cast %40 : vector<18x16xf32> to vector<1x18x16xf32>
    %49 = vector.shape_cast %41 : vector<18x16xf32> to vector<1x18x16xf32>
    %50 = tpu.concatenate %42, %43, %44, %45, %46, %47, %48, %49 in 0 : vector<1x18x16xf32>, vector<1x18x16xf32>, vector<1x18x16xf32>, vector<1x18x16xf32>, vector<1x18x16xf32>, vector<1x18x16xf32>, vector<1x18x16xf32>, vector<1x18x16xf32> -> vector<8x18x16xf32>
    %51 = vector.shape_cast %50 : vector<8x18x16xf32> to vector<16x9x16xf32>
    %52 = arith.truncf %51 : vector<16x9x16xf32> to vector<16x9x16xbf16>
    %53 = vector.extract_strided_slice %14 {offsets = [0, 0], sizes = [18, 16], strides = [1, 1]} : vector<18x128xf32> to vector<18x16xf32>
    %54 = vector.extract_strided_slice %14 {offsets = [0, 16], sizes = [18, 16], strides = [1, 1]} : vector<18x128xf32> to vector<18x16xf32>
    %55 = vector.extract_strided_slice %14 {offsets = [0, 32], sizes = [18, 16], strides = [1, 1]} : vector<18x128xf32> to vector<18x16xf32>
    %56 = vector.extract_strided_slice %14 {offsets = [0, 48], sizes = [18, 16], strides = [1, 1]} : vector<18x128xf32> to vector<18x16xf32>
    %57 = vector.extract_strided_slice %14 {offsets = [0, 64], sizes = [18, 16], strides = [1, 1]} : vector<18x128xf32> to vector<18x16xf32>
    %58 = vector.extract_strided_slice %14 {offsets = [0, 80], sizes = [18, 16], strides = [1, 1]} : vector<18x128xf32> to vector<18x16xf32>
    %59 = vector.extract_strided_slice %14 {offsets = [0, 96], sizes = [18, 16], strides = [1, 1]} : vector<18x128xf32> to vector<18x16xf32>
    %60 = vector.extract_strided_slice %14 {offsets = [0, 112], sizes = [18, 16], strides = [1, 1]} : vector<18x128xf32> to vector<18x16xf32>
    %61 = vector.shape_cast %53 : vector<18x16xf32> to vector<1x18x16xf32>
    %62 = vector.shape_cast %54 : vector<18x16xf32> to vector<1x18x16xf32>
    %63 = vector.shape_cast %55 : vector<18x16xf32> to vector<1x18x16xf32>
    %64 = vector.shape_cast %56 : vector<18x16xf32> to vector<1x18x16xf32>
    %65 = vector.shape_cast %57 : vector<18x16xf32> to vector<1x18x16xf32>
    %66 = vector.shape_cast %58 : vector<18x16xf32> to vector<1x18x16xf32>
    %67 = vector.shape_cast %59 : vector<18x16xf32> to vector<1x18x16xf32>
    %68 = vector.shape_cast %60 : vector<18x16xf32> to vector<1x18x16xf32>
    %69 = tpu.concatenate %61, %62, %63, %64, %65, %66, %67, %68 in 0 : vector<1x18x16xf32>, vector<1x18x16xf32>, vector<1x18x16xf32>, vector<1x18x16xf32>, vector<1x18x16xf32>, vector<1x18x16xf32>, vector<1x18x16xf32>, vector<1x18x16xf32> -> vector<8x18x16xf32>
    %70 = vector.shape_cast %69 : vector<8x18x16xf32> to vector<16x9x16xf32>
    %71 = arith.truncf %70 : vector<16x9x16xf32> to vector<16x9x16xbf16>
    "tpu.trace_start"() <{level = 10 : i32, message = "nqd,nkd->nqk"}> : () -> ()
    %cst_8 = arith.constant dense<0.000000e+00> : vector<16x9x9xf32>
    %72 = tpu.matmul %33, %52, %cst_8 {dimension_numbers = #tpu.dot_dimension_numbers<[2], [2], [1], [1], [0, 0, 0, 1, 1, 1], [0], [0]>} : vector<16x9x16xbf16>, vector<16x9x16xbf16>, vector<16x9x9xf32> -> vector<16x9x9xf32>
    "tpu.trace_stop"() : () -> ()
    %cst_9 = arith.constant dense<0xFF800000> : vector<16x9xf32>
    %73 = vector.multi_reduction <maximumf>, %72, %cst_9 [2] : vector<16x9x9xf32> to vector<16x9xf32>
    %74 = vector.shape_cast %73 : vector<16x9xf32> to vector<16x9x1xf32>
    %75 = vector.broadcast %74 : vector<16x9x1xf32> to vector<16x9x9xf32>
    %76 = arith.subf %72, %75 : vector<16x9x9xf32>
    %77 = math.exp %76 : vector<16x9x9xf32>
    %cst_10 = arith.constant dense<0.000000e+00> : vector<16x9xf32>
    %78 = vector.multi_reduction <add>, %77, %cst_10 [2] : vector<16x9x9xf32> to vector<16x9xf32>
    %79 = vector.shape_cast %78 : vector<16x9xf32> to vector<16x9x1xf32>
    %80 = tpu.reciprocal %79 {approx = true} : vector<16x9x1xf32> -> vector<16x9x1xf32>
    %81 = vector.broadcast %80 : vector<16x9x1xf32> to vector<16x9x9xf32>
    %82 = arith.mulf %77, %81 : vector<16x9x9xf32>
    %83 = arith.truncf %82 : vector<16x9x9xf32> to vector<16x9x9xbf16>
    "tpu.trace_start"() <{level = 10 : i32, message = "nqk,nkd->nqd"}> : () -> ()
    %cst_11 = arith.constant dense<0.000000e+00> : vector<16x9x16xf32>
    %84 = tpu.matmul %83, %71, %cst_11 {dimension_numbers = #tpu.dot_dimension_numbers<[2], [1], [1], [2], [0, 0, 0, 1, 1, 2], [0], [0]>} : vector<16x9x9xbf16>, vector<16x9x16xbf16>, vector<16x9x16xf32> -> vector<16x9x16xf32>
    "tpu.trace_stop"() : () -> ()
    %85 = vector.shape_cast %84 : vector<16x9x16xf32> to vector<8x18x16xf32>
    %86 = vector.extract_strided_slice %85 {offsets = [0, 0, 0], sizes = [1, 18, 16], strides = [1, 1, 1]} : vector<8x18x16xf32> to vector<1x18x16xf32>
    %87 = vector.shape_cast %86 : vector<1x18x16xf32> to vector<18x16xf32>
    %88 = vector.extract_strided_slice %85 {offsets = [1, 0, 0], sizes = [1, 18, 16], strides = [1, 1, 1]} : vector<8x18x16xf32> to vector<1x18x16xf32>
    %89 = vector.shape_cast %88 : vector<1x18x16xf32> to vector<18x16xf32>
    %90 = vector.extract_strided_slice %85 {offsets = [2, 0, 0], sizes = [1, 18, 16], strides = [1, 1, 1]} : vector<8x18x16xf32> to vector<1x18x16xf32>
    %91 = vector.shape_cast %90 : vector<1x18x16xf32> to vector<18x16xf32>
    %92 = vector.extract_strided_slice %85 {offsets = [3, 0, 0], sizes = [1, 18, 16], strides = [1, 1, 1]} : vector<8x18x16xf32> to vector<1x18x16xf32>
    %93 = vector.shape_cast %92 : vector<1x18x16xf32> to vector<18x16xf32>
    %94 = vector.extract_strided_slice %85 {offsets = [4, 0, 0], sizes = [1, 18, 16], strides = [1, 1, 1]} : vector<8x18x16xf32> to vector<1x18x16xf32>
    %95 = vector.shape_cast %94 : vector<1x18x16xf32> to vector<18x16xf32>
    %96 = vector.extract_strided_slice %85 {offsets = [5, 0, 0], sizes = [1, 18, 16], strides = [1, 1, 1]} : vector<8x18x16xf32> to vector<1x18x16xf32>
    %97 = vector.shape_cast %96 : vector<1x18x16xf32> to vector<18x16xf32>
    %98 = vector.extract_strided_slice %85 {offsets = [6, 0, 0], sizes = [1, 18, 16], strides = [1, 1, 1]} : vector<8x18x16xf32> to vector<1x18x16xf32>
    %99 = vector.shape_cast %98 : vector<1x18x16xf32> to vector<18x16xf32>
    %100 = vector.extract_strided_slice %85 {offsets = [7, 0, 0], sizes = [1, 18, 16], strides = [1, 1, 1]} : vector<8x18x16xf32> to vector<1x18x16xf32>
    %101 = vector.shape_cast %100 : vector<1x18x16xf32> to vector<18x16xf32>
    %102 = tpu.concatenate %87, %89, %91, %93, %95, %97, %99, %101 in 1 : vector<18x16xf32>, vector<18x16xf32>, vector<18x16xf32>, vector<18x16xf32>, vector<18x16xf32>, vector<18x16xf32>, vector<18x16xf32>, vector<18x16xf32> -> vector<18x128xf32>
    %103 = arith.truncf %102 : vector<18x128xf32> to vector<18x128xbf16>
    %c0_12 = arith.constant 0 : index
    %c0_13 = arith.constant 0 : index
    %c0_14 = arith.constant 0 : index
    %104 = vector.load %arg5[%c0_12, %c0_13, %c0_14] : memref<1x128x128xbf16, #tpu.memory_space<vmem>>, vector<1x128x128xbf16>
    %105 = vector.shape_cast %104 : vector<1x128x128xbf16> to vector<128x128xbf16>
    %cst_15 = arith.constant dense<0.000000e+00> : vector<18x128xf32>
    %106 = tpu.matmul %103, %105, %cst_15 {dimension_numbers = #tpu.dot_dimension_numbers<[1], [0], [0], [1], [0, 0, 1, 1], [], []>} : vector<18x128xbf16>, vector<128x128xbf16>, vector<18x128xf32> -> vector<18x128xf32>
    %c0_16 = arith.constant 0 : index
    %c0_17 = arith.constant 0 : index
    %c0_18 = arith.constant 0 : index
    %107 = vector.load %arg6[%c0_16, %c0_17, %c0_18] : memref<1x1x128xf32, #tpu.memory_space<vmem>>, vector<1x1x128xf32>
    %108 = vector.shape_cast %107 : vector<1x1x128xf32> to vector<1x128xf32>
    %109 = vector.broadcast %108 : vector<1x128xf32> to vector<18x128xf32>
    %110 = arith.addf %106, %109 : vector<18x128xf32>
    %111 = arith.addf %3, %110 : vector<18x128xf32>
    %c0_19 = arith.constant 0 : index
    %c0_20 = arith.constant 0 : index
    %c0_21 = arith.constant 0 : index
    %112 = vector.load %arg7[%c0_19, %c0_20, %c0_21] : memref<1x1x128xf32, #tpu.memory_space<vmem>>, vector<1x1x128xf32>
    %113 = vector.shape_cast %112 : vector<1x1x128xf32> to vector<1x128xf32>
    %c0_22 = arith.constant 0 : index
    %c0_23 = arith.constant 0 : index
    %c0_24 = arith.constant 0 : index
    %114 = vector.load %arg8[%c0_22, %c0_23, %c0_24] : memref<1x1x128xf32, #tpu.memory_space<vmem>>, vector<1x1x128xf32>
    %115 = vector.shape_cast %114 : vector<1x1x128xf32> to vector<1x128xf32>
    %cst_25 = arith.constant dense<0.000000e+00> : vector<18xf32>
    %116 = vector.multi_reduction <add>, %111, %cst_25 [1] : vector<18x128xf32> to vector<18xf32>
    %117 = vector.shape_cast %116 : vector<18xf32> to vector<18x1xf32>
    %cst_26 = arith.constant 1.280000e+02 : f32
    %118 = vector.broadcast %cst_26 : f32 to vector<18x1xf32>
    %119 = arith.divf %117, %118 : vector<18x1xf32>
    %120 = vector.broadcast %119 : vector<18x1xf32> to vector<18x128xf32>
    %121 = arith.subf %111, %120 : vector<18x128xf32>
    %122 = arith.mulf %121, %121 : vector<18x128xf32>
    %cst_27 = arith.constant dense<0.000000e+00> : vector<18xf32>
    %123 = vector.multi_reduction <add>, %122, %cst_27 [1] : vector<18x128xf32> to vector<18xf32>
    %124 = vector.shape_cast %123 : vector<18xf32> to vector<18x1xf32>
    %cst_28 = arith.constant 1.280000e+02 : f32
    %125 = vector.broadcast %cst_28 : f32 to vector<18x1xf32>
    %126 = arith.divf %124, %125 : vector<18x1xf32>
    %cst_29 = arith.constant 9.99999974E-6 : f32
    %127 = vector.broadcast %cst_29 : f32 to vector<18x1xf32>
    %128 = arith.addf %126, %127 : vector<18x1xf32>
    %129 = math.rsqrt %128 : vector<18x1xf32>
    %130 = vector.broadcast %129 : vector<18x1xf32> to vector<18x128xf32>
    %131 = arith.mulf %121, %130 : vector<18x128xf32>
    %132 = vector.broadcast %113 : vector<1x128xf32> to vector<18x128xf32>
    %133 = arith.mulf %131, %132 : vector<18x128xf32>
    %134 = vector.broadcast %115 : vector<1x128xf32> to vector<18x128xf32>
    %135 = arith.addf %133, %134 : vector<18x128xf32>
    %136 = arith.truncf %135 : vector<18x128xf32> to vector<18x128xbf16>
    %c0_30 = arith.constant 0 : index
    %c0_31 = arith.constant 0 : index
    %c0_32 = arith.constant 0 : index
    %137 = vector.load %arg9[%c0_30, %c0_31, %c0_32] : memref<1x128x256xbf16, #tpu.memory_space<vmem>>, vector<1x128x256xbf16>
    %138 = vector.shape_cast %137 : vector<1x128x256xbf16> to vector<128x256xbf16>
    %cst_33 = arith.constant dense<0.000000e+00> : vector<18x256xf32>
    %139 = tpu.matmul %136, %138, %cst_33 {dimension_numbers = #tpu.dot_dimension_numbers<[1], [0], [0], [1], [0, 0, 1, 1], [], []>} : vector<18x128xbf16>, vector<128x256xbf16>, vector<18x256xf32> -> vector<18x256xf32>
    %c0_34 = arith.constant 0 : index
    %c0_35 = arith.constant 0 : index
    %c0_36 = arith.constant 0 : index
    %140 = vector.load %arg10[%c0_34, %c0_35, %c0_36] : memref<1x1x256xf32, #tpu.memory_space<vmem>>, vector<1x1x256xf32>
    %141 = vector.shape_cast %140 : vector<1x1x256xf32> to vector<1x256xf32>
    %142 = vector.broadcast %141 : vector<1x256xf32> to vector<18x256xf32>
    %143 = arith.addf %139, %142 : vector<18x256xf32>
    %cst_37 = arith.constant 0.000000e+00 : f32
    %144 = vector.broadcast %cst_37 : f32 to vector<18x256xf32>
    %145 = arith.maximumf %143, %144 : vector<18x256xf32>
    %146 = arith.truncf %145 : vector<18x256xf32> to vector<18x256xbf16>
    %c0_38 = arith.constant 0 : index
    %c0_39 = arith.constant 0 : index
    %c0_40 = arith.constant 0 : index
    %147 = vector.load %arg11[%c0_38, %c0_39, %c0_40] : memref<1x256x128xbf16, #tpu.memory_space<vmem>>, vector<1x256x128xbf16>
    %148 = vector.shape_cast %147 : vector<1x256x128xbf16> to vector<256x128xbf16>
    %cst_41 = arith.constant dense<0.000000e+00> : vector<18x128xf32>
    %149 = tpu.matmul %146, %148, %cst_41 {dimension_numbers = #tpu.dot_dimension_numbers<[1], [0], [0], [1], [0, 0, 1, 1], [], []>} : vector<18x256xbf16>, vector<256x128xbf16>, vector<18x128xf32> -> vector<18x128xf32>
    %c0_42 = arith.constant 0 : index
    %c0_43 = arith.constant 0 : index
    %c0_44 = arith.constant 0 : index
    %150 = vector.load %arg12[%c0_42, %c0_43, %c0_44] : memref<1x1x128xf32, #tpu.memory_space<vmem>>, vector<1x1x128xf32>
    %151 = vector.shape_cast %150 : vector<1x1x128xf32> to vector<1x128xf32>
    %152 = vector.broadcast %151 : vector<1x128xf32> to vector<18x128xf32>
    %153 = arith.addf %149, %152 : vector<18x128xf32>
    %154 = arith.addf %135, %153 : vector<18x128xf32>
    %c0_45 = arith.constant 0 : index
    %c0_46 = arith.constant 0 : index
    %c0_47 = arith.constant 0 : index
    %155 = vector.load %arg13[%c0_45, %c0_46, %c0_47] : memref<1x1x128xf32, #tpu.memory_space<vmem>>, vector<1x1x128xf32>
    %156 = vector.shape_cast %155 : vector<1x1x128xf32> to vector<1x128xf32>
    %c0_48 = arith.constant 0 : index
    %c0_49 = arith.constant 0 : index
    %c0_50 = arith.constant 0 : index
    %157 = vector.load %arg14[%c0_48, %c0_49, %c0_50] : memref<1x1x128xf32, #tpu.memory_space<vmem>>, vector<1x1x128xf32>
    %158 = vector.shape_cast %157 : vector<1x1x128xf32> to vector<1x128xf32>
    %cst_51 = arith.constant dense<0.000000e+00> : vector<18xf32>
    %159 = vector.multi_reduction <add>, %154, %cst_51 [1] : vector<18x128xf32> to vector<18xf32>
    %160 = vector.shape_cast %159 : vector<18xf32> to vector<18x1xf32>
    %cst_52 = arith.constant 1.280000e+02 : f32
    %161 = vector.broadcast %cst_52 : f32 to vector<18x1xf32>
    %162 = arith.divf %160, %161 : vector<18x1xf32>
    %163 = vector.broadcast %162 : vector<18x1xf32> to vector<18x128xf32>
    %164 = arith.subf %154, %163 : vector<18x128xf32>
    %165 = arith.mulf %164, %164 : vector<18x128xf32>
    %cst_53 = arith.constant dense<0.000000e+00> : vector<18xf32>
    %166 = vector.multi_reduction <add>, %165, %cst_53 [1] : vector<18x128xf32> to vector<18xf32>
    %167 = vector.shape_cast %166 : vector<18xf32> to vector<18x1xf32>
    %cst_54 = arith.constant 1.280000e+02 : f32
    %168 = vector.broadcast %cst_54 : f32 to vector<18x1xf32>
    %169 = arith.divf %167, %168 : vector<18x1xf32>
    %cst_55 = arith.constant 9.99999974E-6 : f32
    %170 = vector.broadcast %cst_55 : f32 to vector<18x1xf32>
    %171 = arith.addf %169, %170 : vector<18x1xf32>
    %172 = math.rsqrt %171 : vector<18x1xf32>
    %173 = vector.broadcast %172 : vector<18x1xf32> to vector<18x128xf32>
    %174 = arith.mulf %164, %173 : vector<18x128xf32>
    %175 = vector.broadcast %156 : vector<1x128xf32> to vector<18x128xf32>
    %176 = arith.mulf %174, %175 : vector<18x128xf32>
    %177 = vector.broadcast %158 : vector<1x128xf32> to vector<18x128xf32>
    %178 = arith.addf %176, %177 : vector<18x128xf32>
    %c0_56 = arith.constant 0 : index
    %c0_57 = arith.constant 0 : index
    %179 = vector.load %arg18[%c0_56, %c0_57] : memref<18x128xf32, #tpu.memory_space<vmem>>, vector<18x128xf32>
    tpu.vector_store %arg18[%c0_56, %c0_57], %178 {strides = array<i32>} : memref<18x128xf32, #tpu.memory_space<vmem>>, vector<18x128xf32>,
    %c1_i32 = arith.constant 1 : i32
    %180 = arith.cmpi eq, %arg1, %c1_i32 : i32
    %181 = arith.extui %180 : i1 to i32
    %c0_i32_58 = arith.constant 0 : i32
    %182 = arith.cmpi ne, %181, %c0_i32_58 : i32
    scf.if %182 {
      %183 = vector.shape_cast %178 : vector<18x128xf32> to vector<2x9x128xf32>
      %184 = vector.extract_strided_slice %183 {offsets = [0, 0, 0], sizes = [2, 1, 128], strides = [1, 1, 1]} : vector<2x9x128xf32> to vector<2x1x128xf32>
      %185 = vector.shape_cast %184 : vector<2x1x128xf32> to vector<2x128xf32>
      %c0_59 = arith.constant 0 : index
      %c0_60 = arith.constant 0 : index
      %186 = vector.load %arg15[%c0_59, %c0_60] : memref<1x128xf32, #tpu.memory_space<vmem>>, vector<1x128xf32>
      %c0_61 = arith.constant 0 : index
      %c0_62 = arith.constant 0 : index
      %187 = vector.load %arg16[%c0_61, %c0_62] : memref<1x128xf32, #tpu.memory_space<vmem>>, vector<1x128xf32>
      %cst_63 = arith.constant dense<0.000000e+00> : vector<2xf32>
      %188 = vector.multi_reduction <add>, %185, %cst_63 [1] : vector<2x128xf32> to vector<2xf32>
      %189 = vector.shape_cast %188 : vector<2xf32> to vector<2x1xf32>
      %cst_64 = arith.constant 1.280000e+02 : f32
      %190 = vector.broadcast %cst_64 : f32 to vector<2x1xf32>
      %191 = arith.divf %189, %190 : vector<2x1xf32>
      %192 = vector.broadcast %191 : vector<2x1xf32> to vector<2x128xf32>
      %193 = arith.subf %185, %192 : vector<2x128xf32>
      %194 = arith.mulf %193, %193 : vector<2x128xf32>
      %cst_65 = arith.constant dense<0.000000e+00> : vector<2xf32>
      %195 = vector.multi_reduction <add>, %194, %cst_65 [1] : vector<2x128xf32> to vector<2xf32>
      %196 = vector.shape_cast %195 : vector<2xf32> to vector<2x1xf32>
      %cst_66 = arith.constant 1.280000e+02 : f32
      %197 = vector.broadcast %cst_66 : f32 to vector<2x1xf32>
      %198 = arith.divf %196, %197 : vector<2x1xf32>
      %cst_67 = arith.constant 9.99999974E-6 : f32
      %199 = vector.broadcast %cst_67 : f32 to vector<2x1xf32>
      %200 = arith.addf %198, %199 : vector<2x1xf32>
      %201 = math.rsqrt %200 : vector<2x1xf32>
      %202 = vector.broadcast %201 : vector<2x1xf32> to vector<2x128xf32>
      %203 = arith.mulf %193, %202 : vector<2x128xf32>
      %204 = vector.broadcast %186 : vector<1x128xf32> to vector<2x128xf32>
      %205 = arith.mulf %203, %204 : vector<2x128xf32>
      %206 = vector.broadcast %187 : vector<1x128xf32> to vector<2x128xf32>
      %207 = arith.addf %205, %206 : vector<2x128xf32>
      %c0_68 = arith.constant 0 : index
      %c0_69 = arith.constant 0 : index
      %208 = vector.load %arg17[%c0_68, %c0_69] : memref<2x128xf32, #tpu.memory_space<vmem>>, vector<2x128xf32>
      tpu.vector_store %arg17[%c0_68, %c0_69], %207 {strides = array<i32>} : memref<2x128xf32, #tpu.memory_space<vmem>>, vector<2x128xf32>,
    } else {
    }
    return
  }
  func.func @transform_0(%arg0: i32, %arg1: i32) -> (i32, i32, i32) {
    %c0_i32 = arith.constant 0 : i32
    %c0_i32_0 = arith.constant 0 : i32
    %c0_i32_1 = arith.constant 0 : i32
    return %arg0, %c0_i32, %c0_i32_0 : i32, i32, i32
  }
  func.func @transform_1(%arg0: i32, %arg1: i32) -> (i32, i32, i32) {
    %c0_i32 = arith.constant 0 : i32
    %c0_i32_0 = arith.constant 0 : i32
    %c0_i32_1 = arith.constant 0 : i32
    return %arg1, %c0_i32, %c0_i32_0 : i32, i32, i32
  }
  func.func @transform_2(%arg0: i32, %arg1: i32) -> (i32, i32, i32) {
    %c0_i32 = arith.constant 0 : i32
    %c0_i32_0 = arith.constant 0 : i32
    %c0_i32_1 = arith.constant 0 : i32
    return %arg1, %c0_i32, %c0_i32_0 : i32, i32, i32
  }
  func.func @transform_3(%arg0: i32, %arg1: i32) -> (i32, i32, i32) {
    %c0_i32 = arith.constant 0 : i32
    %c0_i32_0 = arith.constant 0 : i32
    %c0_i32_1 = arith.constant 0 : i32
    return %arg1, %c0_i32, %c0_i32_0 : i32, i32, i32
  }
  func.func @transform_4(%arg0: i32, %arg1: i32) -> (i32, i32, i32) {
    %c0_i32 = arith.constant 0 : i32
    %c0_i32_0 = arith.constant 0 : i32
    %c0_i32_1 = arith.constant 0 : i32
    return %arg1, %c0_i32, %c0_i32_0 : i32, i32, i32
  }
  func.func @transform_5(%arg0: i32, %arg1: i32) -> (i32, i32, i32) {
    %c0_i32 = arith.constant 0 : i32
    %c0_i32_0 = arith.constant 0 : i32
    %c0_i32_1 = arith.constant 0 : i32
    return %arg1, %c0_i32, %c0_i32_0 : i32, i32, i32
  }
  func.func @transform_6(%arg0: i32, %arg1: i32) -> (i32, i32, i32) {
    %c0_i32 = arith.constant 0 : i32
    %c0_i32_0 = arith.constant 0 : i32
    %c0_i32_1 = arith.constant 0 : i32
    return %arg1, %c0_i32, %c0_i32_0 : i32, i32, i32
  }
  func.func @transform_7(%arg0: i32, %arg1: i32) -> (i32, i32, i32) {
    %c0_i32 = arith.constant 0 : i32
    %c0_i32_0 = arith.constant 0 : i32
    %c0_i32_1 = arith.constant 0 : i32
    return %arg1, %c0_i32, %c0_i32_0 : i32, i32, i32
  }
  func.func @transform_8(%arg0: i32, %arg1: i32) -> (i32, i32, i32) {
    %c0_i32 = arith.constant 0 : i32
    %c0_i32_0 = arith.constant 0 : i32
    %c0_i32_1 = arith.constant 0 : i32
    return %arg1, %c0_i32, %c0_i32_0 : i32, i32, i32
  }
  func.func @transform_9(%arg0: i32, %arg1: i32) -> (i32, i32, i32) {
    %c0_i32 = arith.constant 0 : i32
    %c0_i32_0 = arith.constant 0 : i32
    %c0_i32_1 = arith.constant 0 : i32
    return %arg1, %c0_i32, %c0_i32_0 : i32, i32, i32
  }
  func.func @transform_10(%arg0: i32, %arg1: i32) -> (i32, i32, i32) {
    %c0_i32 = arith.constant 0 : i32
    %c0_i32_0 = arith.constant 0 : i32
    %c0_i32_1 = arith.constant 0 : i32
    return %arg1, %c0_i32, %c0_i32_0 : i32, i32, i32
  }
  func.func @transform_11(%arg0: i32, %arg1: i32) -> (i32, i32, i32) {
    %c0_i32 = arith.constant 0 : i32
    %c0_i32_0 = arith.constant 0 : i32
    %c0_i32_1 = arith.constant 0 : i32
    return %arg1, %c0_i32, %c0_i32_0 : i32, i32, i32
  }
  func.func @transform_12(%arg0: i32, %arg1: i32) -> (i32, i32, i32) {
    %c0_i32 = arith.constant 0 : i32
    %c0_i32_0 = arith.constant 0 : i32
    %c0_i32_1 = arith.constant 0 : i32
    return %arg1, %c0_i32, %c0_i32_0 : i32, i32, i32
  }
  func.func @transform_13(%arg0: i32, %arg1: i32) -> (i32, i32) {
    %c0_i32 = arith.constant 0 : i32
    %c0_i32_0 = arith.constant 0 : i32
    %c0_i32_1 = arith.constant 0 : i32
    return %c0_i32, %c0_i32_0 : i32, i32
  }
  func.func @transform_14(%arg0: i32, %arg1: i32) -> (i32, i32) {
    %c0_i32 = arith.constant 0 : i32
    %c0_i32_0 = arith.constant 0 : i32
    %c0_i32_1 = arith.constant 0 : i32
    return %c0_i32, %c0_i32_0 : i32, i32
  }
  func.func @transform_15(%arg0: i32, %arg1: i32) -> (i32, i32) {
    %c0_i32 = arith.constant 0 : i32
    %c0_i32_0 = arith.constant 0 : i32
    return %arg0, %c0_i32 : i32, i32
  }
}

</mosaic_0001>

<bundles_post_ra>
// kernel: taggregate_forward.1
= control target key start
LH: loop header
LB: loop body
LE: loop exit
PB: predicated region body
PF: predicated region fallthrough
CT: control target
= control target key end

     0   :  { %s16401_s0 = inlined_call_operand.vmem [shape: f32[2,9,128], index: 0, kind: input, shape index: {}]   ;;  %s16402_s1 = inlined_call_operand.hbm [shape: bf16[2,128,384], index: 1, kind: input, shape index: {}]   ;;  %s16403_s2 = inlined_call_operand.vmem [shape: f32[2,1,384], index: 2, kind: input, shape index: {}]   ;;  %s16404_s3 = inlined_call_operand.vmem [shape: bf16[2,128,128], index: 3, kind: input, shape index: {}]   ;;  %s16405_s4 = inlined_call_operand.vmem [shape: f32[2,1,128], index: 4, kind: input, shape index: {}]   ;;  %s16406_s5 = inlined_call_operand.vmem [shape: f32[2,1,128], index: 5, kind: input, shape index: {}]   ;;  %s16407_s6 = inlined_call_operand.vmem [shape: f32[2,1,128], index: 6, kind: input, shape index: {}]   ;;  %s16408_s7 = inlined_call_operand.hbm [shape: bf16[2,128,256], index: 7, kind: input, shape index: {}]   ;;  %s16409_s8 = inlined_call_operand.vmem [shape: f32[2,1,256], index: 8, kind: input, shape index: {}]   ;;  %s16410_s9 = inlined_call_operand.hbm [shape: bf16[2,256,128], index: 9, kind: input, shape index: {}]   ;;  %s16411_s10 = inlined_call_operand.vmem [shape: f32[2,1,128], index: 10, kind: input, shape index: {}]   ;;  %s16412_s11 = inlined_call_operand.vmem [shape: f32[2,1,128], index: 11, kind: input, shape index: {}]   ;;  %s16413_s12 = inlined_call_operand.vmem [shape: f32[2,1,128], index: 12, kind: input, shape index: {}]   ;;  %s16414_s13 = inlined_call_operand.vmem [shape: f32[1,128], index: 13, kind: input, shape index: {}]   ;;  %s16415_s14 = inlined_call_operand.vmem [shape: f32[1,128], index: 14, kind: input, shape index: {}]   ;;  %s16416_s15 = inlined_call_operand.hbm [shape: f32[2,128], index: 15, kind: output, shape index: {}]  }
   0x1   :  { %16452 = sst [smem:[#allocation34_spill]] %s16401_s0 }
   0x2   :  { %16453 = sst [smem:[#allocation35_spill]] %s16402_s1 }
   0x3   :  { %16454 = sst [smem:[#allocation36_spill]] %s16403_s2 }
   0x4   :  { %16455 = sst [smem:[#allocation37_spill]] %s16404_s3 }
   0x5   :  { %16456 = sst [smem:[#allocation38_spill]] %s16408_s7 }
   0x6   :  { %16457 = sst [smem:[#allocation39_spill]] %s16410_s9 }
   0x7   :  { %16458 = sst [smem:[#allocation40_spill]] %s16411_s10 }
   0x8   :  { %16459 = sst [smem:[#allocation41_spill]] %s16412_s11 }
   0x9   :  { %16460 = sst [smem:[#allocation42_spill]] %s16413_s12 }
   0xa   :  { %16461 = sst [smem:[#allocation43_spill]] %s16414_s13 }
   0xb   :  { %16462 = sst [smem:[#allocation44_spill]] %s16415_s14 }
   0xc   :  { %16463 = sst [smem:[#allocation45_spill]] %s16416_s15 }
   0xd   :  { %20 = vsyncpa [#allocation4], 0 }
   0xe   :  { %22 = vsyncpa [#allocation4 + $0x1], 0 }
   0xf   :  { %23 = vsyncpa [#allocation7], 0 }
  0x10   :  { %25 = vsyncpa [#allocation7 + $0x1], 0 }
  0x11   :  { %26 = vsyncpa [#allocation5], 0  ;;  %s13582_s18 = smov 0   ;;  %s13584_s19 = smov 0  }
  0x12   :  { %s13586_s20 = smov 0   ;;  %s13588_s21 = smov 0  }
  0x13   :  { %s13590_s22 = smov 0   ;;  %s13592_s23 = smov 0  }
  0x14 LB: > { %16464 = sst [smem:[#allocation13_spill]] %s13461_s19  ;;  %s13611_s24 = sadd.s32 4294967295, %s13477_s23   ;;  %s13477_s23 = sphi %s13592_s23, %s32_s23   ;;  %s13473_s22 = sphi %s13590_s22, %s16567_s22   ;;  %s13469_s21 = sphi %s13588_s21, %s16566_s21   ;;  %s13465_s20 = sphi %s13586_s20, %s16565_s20   ;;  %s13461_s19 = sphi %s13584_s19, %s16564_s19   ;;  %s13457_s18 = sphi %s13582_s18, %s16563_s18  }
  0x15   : > { %16465 = sst [smem:[#allocation14_spill]] %s13465_s20  ;;  %s41_s25 = sadd.s32 1, %s13473_s22 }
  0x16   : > { %16466 = sst [smem:[#allocation15_spill]] %s13473_s22  ;;  %p42_p0 = scmp.ge.s32.totalorder %s41_s25, 2 }
  0x17   : > { %16467 = sst [smem:[#allocation16_spill]] %s13477_s23  ;;  %s77_s26 = sadd.s32 1, %s13465_s20 }
  0x18   : > { %p84_p1 = scmp.ne.s32.totalorder %s13465_s20, %s13461_s19  ;;  %p85_p2 = scmp.eq.s32.totalorder %s13477_s23, 0 }
  0x19   : > { %s16569_s25 = smov (%p42_p0, %s41_s25), 0  ;;  %p90_p4 = scmp.ne.s32.totalorder %s13461_s19, %s13457_s18 }
  0x1a   : > { %16468 = sst [smem:[#allocation17_spill]] %s16569_s25  ;;  %p86_p3 = por %p85_p2, %p84_p1 }
  0x1b   : > { %s74_s27 = ssub.s32 %s13473_s22, %s16569_s25  ;;  %p91_p5 = scmp.eq.s32.totalorder %s13611_s24, 0 }
  0x1c   : > { %p75_p6 = scmp.eq.s32.totalorder %s74_s27, 0  ;;  %p12970_p8 = scmp.lt.s32.totalorder %s13477_s23, 2 }
  0x1d   : > { %p13624_p7 = por %p91_p5, %p90_p4  ;;  %s13633_s30 = sand.u32 1, %s13465_s20  }
  0x1e   : > { %s13630_s29 = scalar_select %p75_p6, %s13465_s20, %s77_s26  }
  0x1f   : > { %s16469_s28 = scalar_select %p13624_p7, 1, 0 }
  0x20   : > { %16470 = sst [smem:[#allocation18_spill]] %s13630_s29  ;;  %p13635_p9 = pnand %p12970_p8, %p86_p3 }
  0x21   : > { %s538_s17 = sand.u32 1, %s13477_s23   ;;  %s16421_s18 = sshll.u32 %s13633_s30, 7 }
  0x22   : > { %s16422_s25 = sshll.u32 %s13473_s22, 11  ;;  %s16472_s7 = sld [smem:[#allocation38_spill]] }
  0x23   : > { %s542_s26 = scalar_lea.vmem [#allocation6], %s16421_s18  ;;  %s13653_s20 = scalar_lea.sflag [#allocation7], %s538_s17 }
  0x24   : > { %s549_s29 = sshll.u32 %s542_s26, 4  ;;  %p13659_p11 = pneg %p13635_p9  ;;  %s13651_s29 = int_to_ptr.vmem [resolvable:$true] %s549_s29 }
  0x28   : > { %s13647_s14 = scalar_lea.hbm %s16472_s7, %s16422_s25  ;;  %s13308_s18 = scalar_lea.hbm %s16472_s7, 4096 }
  0x29   : > { %s13303_s13 = scalar_lea.hbm %s13647_s14, 2048  ;;  %p13309_p0 = scmp.lt.u32.totalorder %s13647_s14, %s16472_s7 }
  0x2a   : > { %p13304_p10 = scmp.ne.s32.totalorder %s13647_s14, %s13303_s13  ;;  %p13310_p1 = scmp.lt.u32.totalorder %s13308_s18, %s13303_s13 }
  0x2b   : > { %p13312_p3 = scmp.lt.u32.totalorder %s13303_s13, %s13647_s14 }
  0x2c   : > { %p13306_p12 = pnand %p13659_p11, %p13304_p10  ;;  %p13311_p2 = por %p13310_p1, %p13309_p0 }
  0x2e   : > { %p13307_p13 = pneg %p13306_p12  ;;  %p13313_p4 = por %p13312_p3, %p13311_p2 }
  0x30   : > { %p13314_p5 = pnand %p13313_p4, %p13307_p13 }
  0x32   : > { %13317 = shalt.err (!%p13314_p5)
}
  0x33   : > { %s13318_s17 = scalar_lea.vmem %s13651_s29, 2048  ;;  %s13479_s15 = smov [#allocation6]  }
  0x34   : > { %p13319_p6 = scmp.ne.s32.totalorder %s13651_s29, %s13318_s17  ;;  %s13323_s27 = sshll.u32 %s13479_s15, 4  ;;  %s13324_s27 = int_to_ptr.vmem [resolvable:$false] %s13323_s27 }
  0x35   : > { %s13325_s25 = scalar_lea.vmem %s13324_s27, 4096  ;;  %p13326_p12 = scmp.lt.s32.totalorder %s13651_s29, %s13324_s27 }
  0x36   : > { %p13321_p8 = pnand %p13319_p6, %p13659_p11  ;;  %p13327_p7 = scmp.lt.s32.totalorder %s13325_s25, %s13318_s17 }
  0x38   : > { %p13322_p10 = pneg %p13321_p8  ;;  %p13328_p0 = por %p13327_p7, %p13326_p12 }
  0x3a   : > { %p13329_p1 = pnand %p13328_p0, %p13322_p10 }
  0x3c   : > { %13332 = shalt.err (!%p13329_p1)
}
  0x3d   : > { %s13480_s13 = smov 128   ;;  %s13481_s18 = smov 8  }
  0x3e   : > { %12966 = dma.hbm_to_vmem [thread:$0]  (!%p13635_p9), %s13647_s14, 2048, %s13651_s29, %s13653_s20, %s13480_s13, %s13480_s13, %s13481_s18  }
  0x3f   : > { %s16474_s26 = sshll.u32 %s13473_s22, 11  ;;  %s16475_s9 = sld [smem:[#allocation39_spill]] }
  0x40   : > { %s16476_s25 = sshll.u32 %s13633_s30, 7  ;;  %p12413_p7 = scmp.ge.s32.totalorder %s13477_s23, 1 }
  0x41   : > { %s570_s7 = scalar_lea.vmem [#allocation8], %s16476_s25  ;;  %p603_p13 = scmp.lt.s32.totalorder %s13477_s23, 3 }
  0x42   : > { %s577_s12 = sshll.u32 %s570_s7, 4  ;;  %s12946_s10 = smul.u32 192, %s13633_s30  ;;  %s13692_s12 = int_to_ptr.vmem [resolvable:$true] %s577_s12 }
  0x43   : > { %p13696_p2 = pnand %p12413_p7, %p603_p13  ;;  %s12947_s14 = smul.u32 3072, %s13473_s22 }
  0x44   : > { %s16478_s1 = sld [smem:[#allocation35_spill]]  ;;  %s488_s7 = scalar_lea.vmem [#allocation3], %s12946_s10 }
  0x45   : > { %s13688_s27 = scalar_lea.hbm %s16475_s9, %s16474_s26  ;;  %s495_s26 = sshll.u32 %s488_s7, 4  ;;  %s13707_s26 = int_to_ptr.vmem [resolvable:$true] %s495_s26 }
  0x46   : > { %s16477_s11 = scalar_select %p13696_p2, 1, 0 }
  0x47   : > { %s485_s17 = scalar_lea.sflag [#allocation4], %s13633_s30 }
  0x4a   : > { %s13705_s18 = scalar_lea.hbm %s16478_s1, %s12947_s14  ;;  %s13338_s29 = scalar_lea.hbm %s16478_s1, 6144 }
  0x4b   : > { %s13333_s15 = scalar_lea.hbm %s13705_s18, 3072  ;;  %p13339_p6 = scmp.lt.u32.totalorder %s13705_s18, %s16478_s1 }
  0x4c   : > { %p13334_p3 = scmp.ne.s32.totalorder %s13705_s18, %s13333_s15  ;;  %p13340_p8 = scmp.lt.u32.totalorder %s13338_s29, %s13333_s15 }
  0x4d   : > { %p13342_p12 = scmp.lt.u32.totalorder %s13333_s15, %s13705_s18 }
  0x4e   : > { %p13336_p4 = pnand %p13334_p3, %p13659_p11  ;;  %p13341_p10 = por %p13340_p8, %p13339_p6 }
  0x50   : > { %p13337_p5 = pneg %p13336_p4  ;;  %p13343_p0 = por %p13342_p12, %p13341_p10 }
  0x52   : > { %p13344_p1 = pnand %p13343_p0, %p13337_p5 }
  0x54   : > { %13347 = shalt.err (!%p13344_p1)
}
  0x55   : > { %s13348_s10 = scalar_lea.vmem %s13707_s26, 3072  ;;  %s13482_s22 = smov [#allocation3]  }
  0x56   : > { %p13349_p7 = scmp.ne.s32.totalorder %s13707_s26, %s13348_s10  ;;  %s13353_s7 = sshll.u32 %s13482_s22, 4  ;;  %s13354_s7 = int_to_ptr.vmem [resolvable:$false] %s13353_s7 }
  0x57   : > { %s13355_s25 = scalar_lea.vmem %s13354_s7, 6144  ;;  %p13356_p4 = scmp.lt.s32.totalorder %s13707_s26, %s13354_s7 }
  0x58   : > { %p13351_p13 = pnand %p13349_p7, %p13659_p11  ;;  %p13357_p2 = scmp.lt.s32.totalorder %s13355_s25, %s13348_s10 }
  0x5a   : > { %p13352_p3 = pneg %p13351_p13  ;;  %p13358_p6 = por %p13357_p2, %p13356_p4 }
  0x5c   : > { %p13359_p8 = pnand %p13358_p6, %p13352_p3 }
  0x5e   : > { %13362 = shalt.err (!%p13359_p8)
}
  0x5f   : > { %s13483_s15 = smov 192   ;;  %s13484_s29 = smov 12  }
  0x60   : > { %12963 = dma.hbm_to_vmem [thread:$0]  (!%p13635_p9), %s13705_s18, 3072, %s13707_s26, %s485_s17, %s13483_s15, %s13483_s15, %s13484_s29  }
  0x61   : > { %s13363_s14 = scalar_lea.hbm %s13688_s27, 2048  ;;  %s13368_s22 = scalar_lea.hbm %s16475_s9, 4096 }
  0x62   : > { %p13364_p5 = scmp.ne.s32.totalorder %s13688_s27, %s13363_s14  ;;  %p13369_p12 = scmp.lt.u32.totalorder %s13688_s27, %s16475_s9 }
  0x63   : > { %p13370_p0 = scmp.lt.u32.totalorder %s13368_s22, %s13363_s14  ;;  %p13372_p7 = scmp.lt.u32.totalorder %s13363_s14, %s13688_s27 }
  0x64   : > { %p13366_p2 = pnand %p13364_p5, %p13659_p11 }
  0x65   : > { %p13371_p1 = por %p13370_p0, %p13369_p12 }
  0x66   : > { %p13367_p10 = pneg %p13366_p2 }
  0x67   : > { %p13373_p13 = por %p13372_p7, %p13371_p1 }
  0x69   : > { %p13374_p3 = pnand %p13373_p13, %p13367_p10 }
  0x6b   : > { %13377 = shalt.err (!%p13374_p3)
}
  0x6c   : > { %s13378_s30 = scalar_lea.vmem %s13692_s12, 2048  ;;  %s13485_s18 = smov [#allocation8]  }
  0x6d   : > { %p13379_p4 = scmp.ne.s32.totalorder %s13692_s12, %s13378_s30  ;;  %s13383_s26 = sshll.u32 %s13485_s18, 4  ;;  %s13384_s26 = int_to_ptr.vmem [resolvable:$false] %s13383_s26 }
  0x6e   : > { %s13385_s17 = scalar_lea.vmem %s13384_s26, 4096  ;;  %p13386_p5 = scmp.lt.s32.totalorder %s13692_s12, %s13384_s26 }
  0x6f   : > { %p13381_p6 = pnand %p13379_p4, %p13659_p11  ;;  %p13387_p2 = scmp.lt.s32.totalorder %s13385_s17, %s13378_s30 }
  0x71   : > { %p13382_p8 = pneg %p13381_p6  ;;  %p13388_p12 = por %p13387_p2, %p13386_p5 }
  0x73   : > { %p13389_p0 = pnand %p13388_p12, %p13382_p8 }
  0x75   : > { %13392 = shalt.err (!%p13389_p0)
}
  0x76   : > { %s13486_s15 = smov 64   ;;  %s13487_s29 = smov 4  }
  0x77   : > { %12969 = dma.hbm_to_vmem [thread:$0]  (!%p13635_p9), %s13688_s27, 2048, %s13692_s12, %s13653_s20, %s13486_s15, %s13486_s15, %s13487_s29  }
  0x78   : > { %p16479_p11 = scmp.ne.s32.totalorder %s16477_s11, 0 }
  0x7a   : > { %607 = sbr.rel (%p16479_p11) target bundleno = 3330 (0xd02), region = 80 }
  0x81   : > { %s609_s0 = sand.u32 1, %s13461_s19   ;;  %p16480_p10 = scmp.ne.s32.totalorder %s16469_s28, 0 }
  0x82   : > { %s12948_s14 = smul.u32 192, %s609_s0  ;;  %s610_s13 = scalar_lea.sflag [#allocation4], %s609_s0 }
  0x84   : > { %s13758_s10 = scalar_lea.vmem [#allocation3], %s12948_s14 }
  0x85   : > { %13444 = dma.done.wait (%p16480_p10), %s610_s13, 3072  }
  0x86   : > { %13446 = vsyncadd (%p16480_p10), %s610_s13, 4294964224  ;;  %s618_s22 = sand.u32 1, %s13611_s24   ;;  %s12414_s16 = sshll.u32 %s609_s0, 7 }
  0x87   : > { %s619_s12 = scalar_lea.sflag [#allocation7], %s618_s22  ;;  %s13765_s20 = scalar_lea.vmem [#allocation6], %s12414_s16 }
  0x88   : > { %13448 = dma.done.wait (%p16480_p10), %s619_s12, 4096  }
  0x89   : > { %13450 = vsyncadd (%p16480_p10), %s619_s12, 4294963200  ;;  %p727_p9 = scmp.lt.s32.totalorder %s13469_s21, 1  ;;  %s16481_s3 = sld [smem:[#allocation37_spill]] }
  0x8a   : > { %s16482_s2 = sld [smem:[#allocation36_spill]]  ;;  %s16483_s17 = sld [smem:[#allocation40_spill]] }
  0x8b   : > { %s13773_s11 = scalar_select %p727_p9, %s13469_s21, 1 }
  0x8c   : > { %s16485_s22 = sld [smem:[#allocation42_spill]]  ;;  %s13817_s1 = scalar_lea.vmem [#allocation8], %s12414_s16 }
  0x8d   : > { %s12949_s27 = smul.u32 3, %s13773_s11  ;;  %s12601_s7 = sshll.u32 %s13773_s11, 6 }
  0x8e   : > { %s744_s9 = scalar_lea.vmem %s16407_s6, %s13773_s11  ;;  %s12418_s25 = sshll.u32 %s13773_s11, 1 }
  0x8f   : > { %s13780_s28 = scalar_lea.vmem %s16481_s3, %s12601_s7  ;;  %s13803_s3 = scalar_lea.vmem %s16409_s8, %s12418_s25 }
  0x90   : > { %s13789_s0 = scalar_lea.vmem %s16482_s2, %s12949_s27  ;;  %s751_s15 = scalar_lea.vmem %s16483_s17, %s13773_s11 }
  0x91   : > { %s16484_s2 = sld [smem:[#allocation41_spill]]  ;;  %p12419_p1 = scmp.ne.s32.totalorder %s13469_s21, 0 }
  0x92   : > { %s757_s23 = scalar_lea.vmem %s16485_s22, %s13773_s11  ;;  %s16486_s7 = sld [smem:[#allocation34_spill]] (!%p12419_p1)  ;;  %v775_v1 = vlaneseq (!%p12419_p1)  ;;  %v13488_v2 = vmov (!%p12419_p1), 1966171168  }
  0x93   : > { %762 = sbr.rel (%p12419_p1) target bundleno = 173 (0xad), region = 96  ;;  %v773_v3 = vunpack.c.l.s4 (!%p12419_p1), %v13488_v2 }
  0x94   : > { %v776_v5 = vshrl.u32 (!%p12419_p1), %v775_v1, 7 }
  0x95   : > { %v774_v7 = vunpack.c.0.s8 (!%p12419_p1), %v773_v3 }
  0x97   : > { %s754_s19 = scalar_lea.vmem %s16484_s2, %s13773_s11  ;;  %v777_v9 = vsub.s32 (!%p12419_p1), %v774_v7, %v776_v5 }
  0x98   : > { %v763_v0 = vld [vmem:[%s16486_s7] sm:$0xff] (!%p12419_p1)  ;;  %v765_v4 = vld [vmem:[%s16486_s7 + $0x10] sm:$0xff] (!%p12419_p1)  ;;  %v12420_v10 = vld.sshfl [vmem:[%s16486_s7 + $0x8] sm:$0x1 pattern:$0x75316420] (!%p12419_p1) }
  0x99   : > { %v771_v6 = vcombine.high (!%p12419_p1), %v763_v0, %v763_v0  ;;  %v834_v8 = vcombine.high (!%p12419_p1), %v765_v4, %v765_v4  ;;  %v778_v11 = vrot.slane (!%p12419_p1), %v763_v0, %v777_v9  ;;  %v841_v13 = vrot.slane (!%p12419_p1), %v765_v4, %v777_v9  ;;  %v12421_v16 = vld.sshfl [vmem:[%s16486_s7 + $0x18] sm:$0x1 pattern:$0x75316420] (!%p12419_p1) }
  0x9a   : > { %v833_v14 = vrot.slane %v12420_v10, %v777_v9  ;;  %v896_v27 = vrot.slane %v12421_v16, %v777_v9 }
  0x9b   : > { %v785_v12 = vrot.slane %v771_v6, %v777_v9  ;;  %v848_v15 = vrot.slane %v834_v8, %v777_v9  ;;  %v786_v17 = vcombine.high %v778_v11, %v778_v11  ;;  %v794_v19 = vrot.slane %v778_v11, %v777_v9 }
  0x9c   : > { %v849_v21 = vcombine.high %v841_v13, %v841_v13  ;;  %v857_v23 = vrot.slane %v841_v13, %v777_v9 }
  0x9d   : > { %v787_v18 = vcombine.high %v785_v12, %v785_v12  ;;  %v801_v20 = vrot.slane %v785_v12, %v777_v9  ;;  %v850_v22 = vcombine.high %v848_v15, %v848_v15  ;;  %v864_v24 = vrot.slane %v848_v15, %v777_v9 }
  0x9e   : > { %v808_v25 = vrot.slane %v786_v17, %v777_v9  ;;  %v871_v28 = vrot.slane %v849_v21, %v777_v9  ;;  %v879_v30 = vcombine.high %v857_v23, %v857_v23  ;;  %v946_v37 = vcombine.low %v833_v14, %v857_v23 }
  0x9f   : > { %v815_v26 = vrot.slane %v787_v18, %v777_v9  ;;  %v878_v29 = vrot.slane %v850_v22, %v777_v9  ;;  %v880_v31 = vcombine.high %v864_v24, %v864_v24 }
  0xa0   : > { %v897_v32 = vcombine.low %v794_v19, %v808_v25  ;;  %v12422_v33 = vcombine.high %v794_v19, %v808_v25  ;;  %v881_v36 = vcombine.high %v871_v28, %v871_v28  ;;  %v947_v38 = vcombine.low %v871_v28, %v879_v30 }
  0xa1   : > { %v899_v34 = vcombine.low %v801_v20, %v815_v26  ;;  %v12423_v35 = vcombine.high %v801_v20, %v815_v26  ;;  %v949_v39 = vcombine.low %v878_v29, %v880_v31  ;;  %v956_v45 = vrot.slane %v946_v37, %v777_v9 }
  0xa2   : > { %v907_v40 = vrot.slane %v897_v32, %v777_v9  ;;  %v914_v41 = vrot.slane %v12422_v33, %v777_v9  ;;  %v948_v44 = vcombine.low %v881_v36, %v864_v24  ;;  %v963_v46 = vrot.slane %v947_v38, %v777_v9 }
  0xa3   : > { %v921_v42 = vrot.slane %v899_v34, %v777_v9  ;;  %v928_v43 = vrot.slane %v12423_v35, %v777_v9  ;;  %v977_v47 = vrot.slane %v949_v39, %v777_v9  ;;  %v882_v50 = vcombine.high %v878_v29, %v878_v29 }
  0xa4   : > { %v929_v48 = vcombine.low %v907_v40, %v914_v41  ;;  %v970_v51 = vrot.slane %v948_v44, %v777_v9  ;;  %v978_v52 = vcombine.low %v956_v45, %v963_v46 }
  0xa5   : > { %v930_v49 = vcombine.low %v921_v42, %v928_v43  ;;  %v995_v55 = vcombine.low %v882_v50, %v896_v27 }
  0xa6   : > { %v937_v53 = vrot.slane %v929_v48, %v777_v9  ;;  %v979_v56 = vcombine.low %v970_v51, %v977_v47  ;;  %v986_v57 = vrot.slane %v978_v52, %v777_v9 }
  0xa7   : > { %v944_v54 = vrot.slane %v930_v49, %v777_v9  ;;  %v1002_v59 = vrot.slane %v995_v55, %v777_v9 }
  0xa8   : > { %v993_v60 = vrot.slane %v979_v56, %v777_v9 }
  0xa9   : > { %v945_v58 = vcombine.low %v937_v53, %v944_v54  ;;  %12424 = vst.sshfl [vmem:[#allocation2 + $0x10] sm:$0x5 pattern:$0x73625140] %v1002_v59 }
  0xaa   : > { %v994_v61 = vcombine.low %v986_v57, %v993_v60 }
  0xab   : > { %1013 = vst [vmem:[#allocation2] sm:$0xff] %v945_v58 }
  0xac   : > { %1014 = vst [vmem:[#allocation2 + $0x8] sm:$0xff] %v994_v61 }
  0xad PF: > { %v13078_v62 = vld [vmem:[%s13758_s10 + $0x4] ss:$12 sps:$4 sm:$0xff]   ;;  %v13080_v63 = vld [vmem:[%s13758_s10] ss:$12 sps:$4 sm:$0xff]   ;;  %v16427_v0 = vmov 0   ;;  %v16429_v28 = vmov 0.0   ;;  %v1055_v29 = vlaneseq  ;;  %s16549_s25 = scalar_lea.vmem %s16405_s4, %s13773_s11  ;;  %s16550_s30 = scalar_lea.vmem %s16406_s5, %s13773_s11 }
  0xae   : > { %1230 = vmatprep.mubr.bf16.mxu0 %v16427_v0  ;;  %1198 = vmatprep.subr.bf16.mxu0 %v13078_v62  ;;  %v13081_v1 = vld [vmem:[%s13758_s10 + $0x1c] ss:$12 sps:$4 sm:$0xff]   ;;  %v13083_v2 = vld [vmem:[%s13758_s10 + $0x18] ss:$12 sps:$4 sm:$0xff]   ;;  %v13084_v3 = vld [vmem:[%s13758_s10 + $0x34] ss:$12 sps:$4 sm:$0xff]  }
  0xaf   : > { %1199 = vmatpush1.bf16.msra.mxu0 %v13080_v63  ;;  %v13086_v4 = vld [vmem:[%s13758_s10 + $0x30] ss:$12 sps:$4 sm:$0xff]   ;;  %v13087_v5 = vld [vmem:[%s13758_s10 + $0x4c] ss:$12 sps:$4 sm:$0xff]   ;;  %v13089_v6 = vld [vmem:[%s13758_s10 + $0x48] ss:$12 sps:$4 sm:$0xff]  }
  0xb0   : > { %1200 = vmatprep.subr.bf16.mxu0 %v13081_v1  ;;  %v13090_v8 = vld [vmem:[%s13758_s10 + $0x64] ss:$12 sps:$4 sm:$0xff]   ;;  %v13102_v11 = vld [vmem:[%s13758_s10 + $0x8] ss:$12 sps:$4 sm:$0xff]   ;;  %v13103_v12 = vld [vmem:[%s13758_s10 + $0x20] ss:$12 sps:$4 sm:$0xff]  }
  0xb1   : > { %v13092_v13 = vld [vmem:[%s13758_s10 + $0x60] ss:$12 sps:$4 sm:$0xff]   ;;  %12714 = vmatprep.subr.bf16.mxu1 %v13102_v11  ;;  %v13093_v14 = vld [vmem:[%s13758_s10 + $0x7c] ss:$12 sps:$4 sm:$0xff]   ;;  %v13104_v15 = vld [vmem:[%s13758_s10 + $0x38] ss:$12 sps:$4 sm:$0xff]  }
  0xb2   : > { %v1016_v7 = vld [vmem:[#allocation2] sm:$0xff]  ;;  %12715 = vmatpush3.bf16.msra.mxu1 %v13102_v11  ;;  %v13095_v16 = vld [vmem:[%s13758_s10 + $0x78] ss:$12 sps:$4 sm:$0xff]   ;;  %v13096_v17 = vld [vmem:[%s13758_s10 + $0x94] ss:$12 sps:$4 sm:$0xff]   ;;  %vm13491_vm0 = vmmov 0  }
  0xb3   : > { %1201 = vmatpush1.bf16.msra.mxu0 %v13083_v2  ;;  %v1017_v9 = vld [vmem:[#allocation2 + $0x8] sm:$0xff]  ;;  %12716 = vmatprep.subr.bf16.mxu1 %v13103_v12  ;;  %v13099_v20 = vld [vmem:[%s13758_s10 + $0xac] ss:$12 sps:$4 sm:$0xff]   ;;  %v13864_v30 = vshrl.u32 %v1055_v29, 7  ;;  %v13492_v31 = vmov 1966171168  }
  0xb4   : > { %1202 = vmatprep.subr.bf16.mxu0 %v13084_v3  ;;  %v1019_v10 = vpack.c.bf16 %v1017_v9, %v1016_v7  ;;  %v13105_v18 = vld [vmem:[%s13758_s10 + $0x50] ss:$12 sps:$4 sm:$0xff]   ;;  %v13106_v21 = vld [vmem:[%s13758_s10 + $0x68] ss:$12 sps:$4 sm:$0xff]   ;;  %v13107_v23 = vld [vmem:[%s13758_s10 + $0x80] ss:$12 sps:$4 sm:$0xff]   ;;  %v1344_v32 = vunpack.c.l.s4 %v13492_v31 }
  0xb5   : > { %v13098_v19 = vld [vmem:[%s13758_s10 + $0x90] ss:$12 sps:$4 sm:$0xff]   ;;  %v13101_v22 = vld [vmem:[%s13758_s10 + $0xa8] ss:$12 sps:$4 sm:$0xff]   ;;  %v13108_v24 = vld [vmem:[%s13758_s10 + $0x98] ss:$12 sps:$4 sm:$0xff]  }
  0xb6   : > { %12730 = vmatprep.mubr.bf16.mxu1 %v1019_v10  ;;  %12717 = vmatpush3.bf16.msra.mxu1 %v13103_v12  ;;  %v1018_v25 = vld [vmem:[#allocation2 + $0x10] sm:$0x3]  ;;  %v13109_v26 = vld [vmem:[%s13758_s10 + $0xb0] ss:$12 sps:$4 sm:$0xff]   ;;  %v13867_v33 = vsub.s32 0, %v13864_v30  ;;  %v13873_v35 = vsub.s32 1, %v13864_v30  ;;  %v1345_v36 = vunpack.c.0.s8 %v1344_v32 }
  0xb7   : > { %1203 = vmatpush1.bf16.msra.mxu0 %v13086_v4  ;;  %12718 = vmatprep.subr.bf16.mxu1 %v13104_v15  ;;  %v1020_v27 = vpack.c.bf16 %v1018_v25, %v1018_v25  ;;  %v13870_v34 = vld [vmem:[%s13789_s0] sm:$0x7]  ;;  %s13493_s10 = smov 112   ;;  %s13494_s0 = smov 96   ;;  %vm7480_vm1 = vcmask 130048   ;;  %vm8606_vm2 = vcmask 1043456  }
  0xb8   : > { %1204 = vmatprep.subr.bf16.mxu0 %v13087_v5  ;;  %16487 = vst [vmem:[#allocation19_spill] sm:$0xff] %v13867_v33  ;;  %16488 = vst [vmem:[#allocation20_spill] sm:$0xff] %v13873_v35  ;;  %v13877_v37 = vrot.slane %v13870_v34, %v13867_v33  ;;  %v1062_v38 = vrot.slane %v13870_v34, %v13873_v35  ;;  %v13882_v39 = vsub.s32 %v1345_v36, %v13864_v30  ;;  %s13495_s26 = smov 80   ;;  %s13496_s27 = smov 64   ;;  %vm8607_vm3 = vcmask 1044480  }
  0xb9   : > { %s13497_s29 = smov 48   ;;  %s13498_s14 = smov 32   ;;  %vm8233_vm4 = vcmask 72704   ;;  %vm8237_vm5 = vcmask 65536   ;;  %vm11372_vm6 = vcmask 261120   ;;  %vm11376_vm7 = vcmask 392192  }
  0xba   : > { %12719 = vmatpush3.bf16.msra.mxu1 %v13104_v15  ;;  %s13499_s13 = smov 16   ;;  %vm11380_vm8 = vcmask 523264   ;;  %vm11384_vm9 = vcmask 654336   ;;  %vm11388_vm10 = vcmask 785408   ;;  %vm11392_vm11 = vcmask 916480   ;;  %p12591_p7 = scmp.ne.s32.totalorder %s13469_s21, 1 }
  0xbb   : > { %1205 = vmatpush1.bf16.msra.mxu0 %v13089_v6  ;;  %12720 = vmatprep.subr.bf16.mxu1 %v13105_v18  ;;  %vm11526_vm12 = vcmask 1041408  }
  0xbc   : > { %1206 = vmatprep.subr.bf16.mxu0 %v13090_v8 }
  0xbe   : > { %12721 = vmatpush3.bf16.msra.mxu1 %v13105_v18 }
  0xbf   : > { %1207 = vmatpush1.bf16.msra.mxu0 %v13092_v13  ;;  %12722 = vmatprep.subr.bf16.mxu1 %v13106_v21 }
  0xc0   : > { %1208 = vmatprep.subr.bf16.mxu0 %v13093_v14 }
  0xc2   : > { %12723 = vmatpush3.bf16.msra.mxu1 %v13106_v21 }
  0xc3   : > { %1209 = vmatpush1.bf16.msra.mxu0 %v13095_v16  ;;  %12724 = vmatprep.subr.bf16.mxu1 %v13107_v23 }
  0xc4   : > { %1210 = vmatprep.subr.bf16.mxu0 %v13096_v17 }
  0xc6   : > { %12725 = vmatpush3.bf16.msra.mxu1 %v13107_v23 }
  0xc7   : > { %1211 = vmatpush1.bf16.msra.mxu0 %v13098_v19  ;;  %12726 = vmatprep.subr.bf16.mxu1 %v13108_v24 }
  0xc8   : > { %1212 = vmatprep.subr.bf16.mxu0 %v13099_v20 }
  0xca   : > { %12727 = vmatpush3.bf16.msra.mxu1 %v13108_v24 }
  0xcb   : > { %1213 = vmatpush1.bf16.msra.mxu0 %v13101_v22  ;;  %12728 = vmatprep.subr.bf16.mxu1 %v13109_v26 }
  0xcc   : > { %12734 = vmatprep.subr.bf16.mxu0 %v16429_v28 }
  0xce   : > { %1231 = vmatmul.mubr.bf16.vlgmr.msra.gmra.mrb[0].mxu0 %v1019_v10  ;;  %12729 = vmatpush3.bf16.msra.mxu1 %v13109_v26 }
  0xcf   : > { %1240 = vmatprep.mubr.bf16.mxu0 %v16427_v0  ;;  %12746 = vmatprep.subr.bf16.mxu1 %v16429_v28 }
  0xd1   : > { %12731 = vmatmul.mubr.bf16.vlgmr.msra.gmra.mrb[0].mxu1 %v1020_v27 }
  0xd2   : > { %12748 = vmatprep.mubr.msk.bf16.mxu1 %vm13491_vm0, %v16429_v28 }
  0xd6   : > { %1241 = vmatmul.mubr.bf16.gmra.mrb[4].mxu0 %v1020_v27 }
  0xd7   : > { %12736 = vmatprep.mubr.msk.bf16.mxu0 %vm13491_vm0, %v16429_v28 }
 0x1a1   : > { %v1232_v40 = vpop.f32.mrb[0].mxu0 }
 0x1a2   : > { %v13885_v41 = vadd.f32 %v1232_v40, %v13877_v37  ;;  %v1234_v42 = vpop.f32.mrb[1].mxu0 }
 0x1a3   : > { %v13887_v43 = vadd.f32 %v1234_v42, %v1062_v38  ;;  %v1236_v44 = vpop.f32.mrb[2].mxu0 }
 0x1a4   : > { %v1238_v45 = vpop.f32.mrb[3].mxu0  ;;  %1300 = vrot.lane.b32.xlu1 %v13885_v41, %s13493_s10  ;;  %v1342_v46 = vcombine.high %v13885_v41, %v13885_v41  ;;  %v1349_v47 = vrot.slane %v13885_v41, %v13882_v39  ;;  %v13896_v48 = vadd.f32 %v1236_v44, %v13877_v37 }
 0x1a5   : > { %v13898_v49 = vadd.f32 %v1238_v45, %v1062_v38  ;;  %3361 = vrot.lane.b32.xlu0 %v13887_v43, %s13493_s10  ;;  %v3403_v50 = vcombine.high %v13887_v43, %v13887_v43  ;;  %v3410_v51 = vrot.slane %v13887_v43, %v13882_v39 }
 0x1a6   : > { %v1356_v52 = vrot.slane %v1342_v46, %v13882_v39  ;;  %v1357_v53 = vcombine.high %v1349_v47, %v1349_v47  ;;  %v1365_v58 = vrot.slane %v1349_v47, %v13882_v39  ;;  %v13920_v1 = vrot.slane %v13896_v48, %v13882_v39 }
 0x1a7   : > { %v3417_v54 = vrot.slane %v3403_v50, %v13882_v39  ;;  %v3418_v55 = vcombine.high %v3410_v51, %v3410_v51  ;;  %v3459_v56 = vrot.slane %v13898_v49, %v13882_v39  ;;  %v3426_v62 = vrot.slane %v3410_v51, %v13882_v39 }
 0x1a8   : > { %1306 = vrot.lane.b32.xlu1 %v13885_v41, %s13494_s0  ;;  %v1358_v57 = vcombine.high %v1356_v52, %v1356_v52  ;;  %v1379_v59 = vrot.slane %v1357_v53, %v13882_v39  ;;  %v1372_v4 = vrot.slane %v1356_v52, %v13882_v39  ;;  %v13945_v32 = vrot.slane %v13920_v1, %v13882_v39 }
 0x1a9   : > { %v1242_v60 = vpop.f32.mrb[4].mxu0  ;;  %3367 = vrot.lane.b32.xlu0 %v13887_v43, %s13494_s0  ;;  %v3419_v61 = vcombine.high %v3417_v54, %v3417_v54  ;;  %v3440_v63 = vrot.slane %v3418_v55, %v13882_v39  ;;  %v3475_v3 = vrot.slane %v3459_v56, %v13882_v39  ;;  %v3433_v8 = vrot.slane %v3417_v54, %v13882_v39 }
 0x1aa   : > { %v1244_v2 = vpop.f32.mrb[5].mxu0  ;;  %v1386_v5 = vrot.slane %v1358_v57, %v13882_v39  ;;  %v2302_v6 = vcombine.low %v1365_v58, %v1379_v59  ;;  %v3467_v14 = vcombine.high %v3459_v56, %v3459_v56  ;;  %v12449_v15 = vcombine.high %v1365_v58, %v1379_v59 }
 0x1ab   : > { %v1246_v7 = vpop.f32.mrb[6].mxu0  ;;  %v3447_v9 = vrot.slane %v3419_v61, %v13882_v39  ;;  %v4363_v10 = vcombine.low %v3426_v62, %v3440_v63  ;;  %v12465_v11 = vcombine.high %v3426_v62, %v3440_v63  ;;  %v13927_v12 = vadd.f32 %v1244_v2, %v1062_v38 }
 0x1ac   : > { %1302 = vrot.lane.b32.xlu1 %v13896_v48, %s13493_s10  ;;  %v1247_v13 = vpop.f32.mrb[7].mxu0  ;;  %v2304_v16 = vcombine.low %v1372_v4, %v1386_v5  ;;  %v4418_v21 = vrot.slane %v3475_v3, %v13882_v39  ;;  %v12450_v22 = vcombine.high %v1372_v4, %v1386_v5  ;;  %v2312_v23 = vrot.slane %v2302_v6, %v13882_v39 }
 0x1ad   : > { %3373 = vrot.lane.b32.xlu0 %v13887_v43, %s13495_s26  ;;  %v4365_v17 = vcombine.low %v3433_v8, %v3447_v9  ;;  %v12466_v18 = vcombine.high %v3433_v8, %v3447_v9  ;;  %v4373_v19 = vrot.slane %v4363_v10, %v13882_v39  ;;  %v4380_v20 = vrot.slane %v12465_v11, %v13882_v39 }
 0x1ae   : > { %v2319_v24 = vrot.slane %v12449_v15, %v13882_v39  ;;  %v2326_v29 = vrot.slane %v2304_v16, %v13882_v39  ;;  %v3497_v31 = vcombine.high %v3475_v3, %v3475_v3  ;;  %v2333_v36 = vrot.slane %v12450_v22, %v13882_v39 }
 0x1af   : > { %v4387_v25 = vrot.slane %v4365_v17, %v13882_v39  ;;  %v4394_v26 = vrot.slane %v12466_v18, %v13882_v39  ;;  %v4395_v27 = vcombine.low %v4373_v19, %v4380_v20  ;;  %v3452_v38 = vcombine.high %v13898_v49, %v13898_v49  ;;  %v13987_v17 = vpop.f32.mrb[0].mxu1 }
 0x1b0   : > { %1308 = vrot.lane.b32.xlu1 %v13896_v48, %s13494_s0  ;;  %v13951_v40 = vadd.f32 %v1242_v60, %v13877_v37  ;;  %v3489_v44 = vrot.slane %v3467_v14, %v13882_v39  ;;  %v3507_v45 = vrot.slane %v13927_v12, %v13882_v39  ;;  %v4425_v46 = vrot.slane %v4418_v21, %v13882_v39  ;;  %v13991_v22 = vpop.f32.mrb[1].mxu1 }
 0x1b1   : > { %3363 = vrot.lane.b32.xlu0 %v13898_v49, %s13493_s10  ;;  %v4396_v42 = vcombine.low %v4387_v25, %v4394_v26  ;;  %v2334_v47 = vcombine.low %v2312_v23, %v2319_v24  ;;  %v2335_v50 = vcombine.low %v2326_v29, %v2333_v36  ;;  %v3466_v51 = vrot.slane %v3452_v38, %v13882_v39 }
 0x1b2   : > { %v4403_v52 = vrot.slane %v4395_v27, %v13882_v39  ;;  %v3499_v53 = vcombine.high %v3489_v44, %v3489_v44  ;;  %v3508_v54 = vcombine.high %v3507_v45, %v3507_v45  ;;  %v3515_v57 = vrot.slane %v3507_v45, %v13882_v39  ;;  %v12733_v27 = vpop.f32.mrb[2].mxu1 }
 0x1b3   : > { %v4410_v37 = vrot.slane %v4396_v42, %v13882_v39  ;;  %v3468_v55 = vcombine.high %v3466_v51, %v3466_v51  ;;  %v3482_v56 = vrot.slane %v3466_v51, %v13882_v39  ;;  %v4426_v58 = vcombine.low %v3489_v44, %v3497_v31 }
 0x1b4   : > { %1304 = vrot.lane.b32.xlu1 %v13951_v40, %s13493_s10  ;;  %v2349_v60 = vrot.slane %v2335_v50, %v13882_v39  ;;  %v3522_v61 = vrot.slane %v3508_v54, %v13882_v39  ;;  %v1391_v62 = vcombine.high %v13896_v48, %v13896_v48  ;;  %v1406_v4 = vcombine.high %v13920_v1, %v13920_v1  ;;  %v1286_v54 = vpop.f32.mrb[3].mxu1 }
 0x1b5   : > { %3369 = vrot.lane.b32.xlu0 %v13898_v49, %s13494_s0  ;;  %v4411_v59 = vcombine.low %v4403_v52, %v4410_v37  ;;  %v3496_v63 = vrot.slane %v3468_v55, %v13882_v39  ;;  %v3498_v2 = vcombine.high %v3482_v56, %v3482_v56  ;;  %v4427_v3 = vcombine.low %v3499_v53, %v3482_v56 }
 0x1b6   : > { %v2342_v6 = vrot.slane %v2334_v47, %v13882_v39  ;;  %v2357_v7 = vrot.slane %v13945_v32, %v13882_v39  ;;  %v1405_v8 = vrot.slane %v1391_v62, %v13882_v39  ;;  %v4436_v11 = vrot.slane %v4426_v58, %v13882_v39 }
 0x1b7   : > { %v5403_v5 = vpack.c.bf16 %v4425_v46, %v4411_v59  ;;  %v3500_v9 = vcombine.high %v3496_v63, %v3496_v63  ;;  %v4428_v10 = vcombine.low %v3496_v63, %v3498_v2  ;;  %v4443_v13 = vrot.slane %v4427_v3, %v13882_v39 }
 0x1b8   : > { %1310 = vrot.lane.b32.xlu1 %v13951_v40, %s13494_s0  ;;  %v2350_v14 = vcombine.low %v2342_v6, %v2349_v60  ;;  %v1407_v15 = vcombine.high %v1405_v8, %v1405_v8  ;;  %v1421_v16 = vrot.slane %v1405_v8, %v13882_v39  ;;  %v4481_v20 = vrot.slane %v3522_v61, %v13882_v39 }
 0x1b9   : > { %3375 = vrot.lane.b32.xlu0 %v13898_v49, %s13495_s26  ;;  %v7485_v1 = vsel %vm7480_vm1, %v5403_v5, 0  ;;  %v4429_v18 = vcombine.low %v3500_v9, %v3515_v57  ;;  %v4458_v19 = vcombine.low %v4436_v11, %v4443_v13  ;;  %v1428_v21 = vrot.slane %v1406_v4, %v13882_v39 }
 0x1ba   : > { %12735 = vmatpush3.bf16.xpose.msra.mxu0 %v7485_v1  ;;  %v1435_v23 = vrot.slane %v1407_v15, %v13882_v39  ;;  %v1436_v24 = vcombine.high %v13945_v32, %v13945_v32  ;;  %v1437_v25 = vcombine.high %v1421_v16, %v1421_v16  ;;  %v1446_v26 = vrot.slane %v13951_v40, %v13882_v39 }
 0x1bb   : > { %12740 = vmatprep.subr.bf16.mxu0 %v16429_v28  ;;  %v2364_v29 = vrot.slane %v2357_v7, %v13882_v39  ;;  %v4450_v31 = vrot.slane %v4428_v10, %v13882_v39  ;;  %v4457_v36 = vrot.slane %v4429_v18, %v13882_v39  ;;  %v1438_v38 = vcombine.high %v1428_v21, %v1428_v21 }
 0x1bc   : > { %3365 = vrot.lane.b32.xlu1 %v13927_v12, %s13493_s10  ;;  %v1439_v32 = vcombine.high %v1435_v23, %v1435_v23  ;;  %v1447_v42 = vcombine.high %v1446_v26, %v1446_v26  ;;  %v1454_v44 = vrot.slane %v1446_v26, %v13882_v39  ;;  %v2365_v45 = vcombine.low %v1428_v21, %v1436_v24 }
 0x1bd   : > { %3381 = vrot.lane.b32.xlu0 %v13898_v49, %s13496_s27  ;;  %v4459_v46 = vcombine.low %v4450_v31, %v4457_v36  ;;  %v2366_v47 = vcombine.low %v1438_v38, %v1421_v16  ;;  %v2367_v50 = vcombine.low %v1435_v23, %v1437_v25  ;;  %v3342_v51 = vpack.c.bf16 %v2364_v29, %v2350_v14 }
 0x1be   : > { %v4466_v52 = vrot.slane %v4458_v19, %v13882_v39  ;;  %v4488_v37 = vrot.slane %v4481_v20, %v13882_v39  ;;  %v2368_v53 = vcombine.low %v1439_v32, %v1454_v44  ;;  %v1461_v56 = vrot.slane %v1447_v42, %v13882_v39 }
 0x1bf   : > { %v4473_v55 = vrot.slane %v4459_v46, %v13882_v39  ;;  %v2375_v57 = vrot.slane %v2365_v45, %v13882_v39  ;;  %v2382_v58 = vrot.slane %v2366_v47, %v13882_v39  ;;  %v2389_v59 = vrot.slane %v2367_v50, %v13882_v39 }
 0x1c0   : > { %1314 = vrot.lane.b32.xlu1 %v13896_v48, %s13495_s26  ;;  %v2396_v60 = vrot.slane %v2368_v53, %v13882_v39  ;;  %v2420_v3 = vrot.slane %v1461_v56, %v13882_v39  ;;  %v1065_v10 = vsub.s32 2, %v13864_v30 }
 0x1c1   : > { %3379 = vrot.lane.b32.xlu0 %v13887_v43, %s13496_s27  ;;  %12737 = vmatmul.mubr.msk.bf16.vlgmr.msra.gmra.mrb[8].mxu0 %vm7480_vm1, %v3342_v51  ;;  %v4474_v61 = vcombine.low %v4466_v52, %v4473_v55  ;;  %v2397_v62 = vcombine.low %v2375_v57, %v2382_v58 }
 0x1c2   : > { %12742 = vmatprep.mubr.msk.bf16.mxu0 %vm13491_vm0, %v16429_v28  ;;  %v2398_v63 = vcombine.low %v2389_v59, %v2396_v60  ;;  %v2427_v8 = vrot.slane %v2420_v3, %v13882_v39  ;;  %v1066_v11 = vrot.slane %v13870_v34, %v1065_v10 }
 0x1c3   : > { %v5404_v2 = vpack.c.bf16 %v4488_v37, %v4474_v61  ;;  %v2405_v6 = vrot.slane %v2397_v62, %v13882_v39 }
 0x1c4   : > { %1312 = vrot.lane.b32.xlu1 %v13885_v41, %s13495_s26  ;;  %v2412_v4 = vrot.slane %v2398_v63, %v13882_v39  ;;  %v14088_v30 = vadd.f32 %v13991_v22, %v1066_v11 }
 0x1c5   : > { %3387 = vrot.lane.b32.xlu0 %v13898_v49, %s13497_s29  ;;  %v7532_v5 = vsel %vm7480_vm1, %v5404_v2, 0 }
 0x1c6   : > { %12741 = vmatpush3.bf16.xpose.msra.mxu0 %v7532_v5  ;;  %v2413_v7 = vcombine.low %v2405_v6, %v2412_v4  ;;  %16490 = vst [vmem:[#allocation22_spill] sm:$0xff] %v14088_v30 }
 0x1c7   : > { %12752 = vmatprep.subr.bf16.mxu0 %v16429_v28 }
 0x1c8   : > { %1316 = vrot.lane.b32.xlu1 %v13951_v40, %s13495_s26  ;;  %v3343_v9 = vpack.c.bf16 %v2427_v8, %v2413_v7 }
 0x1c9   : > { %3371 = vrot.lane.b32.xlu0 %v13927_v12, %s13494_s0 }
 0x1cc   : > { %1320 = vrot.lane.b32.xlu1 %v13896_v48, %s13496_s27 }
 0x1cd   : > { %3385 = vrot.lane.b32.xlu0 %v13887_v43, %s13497_s29  ;;  %12743 = vmatmul.mubr.msk.bf16.vlgmr.msra.gmra.mrb[12].mxu0 %vm7480_vm1, %v3343_v9 }
 0x1ce   : > { %12754 = vmatprep.mubr.msk.bf16.mxu0 %vm13491_vm0, %v16429_v28 }
 0x1d0   : > { %1318 = vrot.lane.b32.xlu1 %v13885_v41, %s13496_s27 }
 0x1d1   : > { %3377 = vrot.lane.b32.xlu0 %v13927_v12, %s13495_s26 }
 0x1d4   : > { %1322 = vrot.lane.b32.xlu1 %v13951_v40, %s13496_s27 }
 0x1d5   : > { %3393 = vrot.lane.b32.xlu0 %v13898_v49, %s13498_s14 }
 0x1d8   : > { %1326 = vrot.lane.b32.xlu1 %v13896_v48, %s13497_s29 }
 0x1d9   : > { %3383 = vrot.lane.b32.xlu0 %v13927_v12, %s13496_s27 }
 0x1dc   : > { %1324 = vrot.lane.b32.xlu1 %v13885_v41, %s13497_s29 }
 0x1dd   : > { %3391 = vrot.lane.b32.xlu0 %v13887_v43, %s13498_s14 }
 0x1e0   : > { %1328 = vrot.lane.b32.xlu1 %v13951_v40, %s13497_s29 }
 0x1e1   : > { %3389 = vrot.lane.b32.xlu0 %v13927_v12, %s13497_s29 }
 0x1e4   : > { %1332 = vrot.lane.b32.xlu1 %v13896_v48, %s13498_s14 }
 0x1e5   : > { %3399 = vrot.lane.b32.xlu0 %v13898_v49, %s13499_s13  ;;  %v14083_v49 = vadd.f32 %v1286_v54, %v1066_v11 }
 0x1e7   : > { %16489 = vst [vmem:[#allocation21_spill] sm:$0xff] %v14083_v49 }
 0x1e8   : > { %1330 = vrot.lane.b32.xlu1 %v13885_v41, %s13498_s14 }
 0x1e9   : > { %3395 = vrot.lane.b32.xlu0 %v13927_v12, %s13498_s14 }
 0x1ec   : > { %1334 = vrot.lane.b32.xlu1 %v13951_v40, %s13498_s14 }
 0x1ed   : > { %3397 = vrot.lane.b32.xlu0 %v13887_v43, %s13499_s13  ;;  %v14091_v43 = vadd.f32 %v13987_v17, %v1066_v11 }
 0x1ef   : > { %16491 = vst [vmem:[#allocation23_spill] sm:$0xff] %v14091_v43 }
 0x1f0   : > { %1338 = vrot.lane.b32.xlu1 %v13896_v48, %s13499_s13 }
 0x1f1   : > { %3401 = vrot.lane.b32.xlu0 %v13927_v12, %s13499_s13 }
 0x1f4   : > { %1340 = vrot.lane.b32.xlu1 %v13951_v40, %s13499_s13 }
 0x1f5   : > { %1336 = vrot.lane.b32.xlu0 %v13885_v41, %s13499_s13 }
 0x1f8   : > { %5424 = vrot.lane.b32.xlu1 %v14083_v49, %s13493_s10 }
 0x1f9   : > { %5422 = vrot.lane.b32.xlu0 %v14088_v30, %s13493_s10 }
 0x1fc   : > { %5426 = vrot.lane.b32.xlu1 %v14091_v43, %s13493_s10 }
 0x1fd   : > { %5430 = vrot.lane.b32.xlu0 %v14083_v49, %s13494_s0 }
 0x200   : > { %5428 = vrot.lane.b32.xlu1 %v14088_v30, %s13494_s0 }
 0x201   : > { %5434 = vrot.lane.b32.xlu0 %v14088_v30, %s13495_s26 }
 0x204   : > { %5432 = vrot.lane.b32.xlu1 %v14091_v43, %s13494_s0 }
 0x205   : > { %5442 = vrot.lane.b32.xlu0 %v14083_v49, %s13496_s27 }
 0x208   : > { %5436 = vrot.lane.b32.xlu1 %v14083_v49, %s13495_s26 }
 0x209   : > { %5446 = vrot.lane.b32.xlu0 %v14088_v30, %s13497_s29 }
 0x20c   : > { %5438 = vrot.lane.b32.xlu1 %v14091_v43, %s13495_s26 }
 0x20d   : > { %5454 = vrot.lane.b32.xlu0 %v14083_v49, %s13498_s14 }
 0x210   : > { %5440 = vrot.lane.b32.xlu1 %v14088_v30, %s13496_s27 }
 0x214   : > { %5444 = vrot.lane.b32.xlu1 %v14091_v43, %s13496_s27 }
 0x216   : > { %v1301_v34 = vpop.permute.xlu1 %1300 }
 0x217   : > { %v1462_v41 = vcombine.high %v1301_v34, %v1301_v34  ;;  %v1469_v48 = vrot.slane %v1301_v34, %v13882_v39  ;;  %v3362_v12 = vpop.permute.xlu0 %3361 }
 0x218   : > { %v3523_v40 = vcombine.high %v3362_v12, %v3362_v12  ;;  %v3530_v13 = vrot.slane %v3362_v12, %v13882_v39  ;;  %5448 = vrot.lane.b32.xlu1 %v14083_v49, %s13497_s29 }
 0x219   : > { %v1476_v1 = vrot.slane %v1462_v41, %v13882_v39  ;;  %v1477_v14 = vcombine.high %v1469_v48, %v1469_v48  ;;  %v1485_v15 = vrot.slane %v1469_v48, %v13882_v39 }
 0x21a   : > { %v3537_v16 = vrot.slane %v3523_v40, %v13882_v39  ;;  %v3538_v17 = vcombine.high %v3530_v13, %v3530_v13  ;;  %v3546_v18 = vrot.slane %v3530_v13, %v13882_v39  ;;  %v1307_v19 = vpop.permute.xlu1 %1306 }
 0x21b   : > { %v1478_v20 = vcombine.high %v1476_v1, %v1476_v1  ;;  %v1492_v21 = vrot.slane %v1476_v1, %v13882_v39  ;;  %v1499_v22 = vrot.slane %v1477_v14, %v13882_v39  ;;  %v1582_v23 = vcombine.high %v1307_v19, %v1307_v19  ;;  %v3368_v59 = vpop.permute.xlu0 %3367 }
 0x21c   : > { %v3539_v24 = vcombine.high %v3537_v16, %v3537_v16  ;;  %v3553_v25 = vrot.slane %v3537_v16, %v13882_v39  ;;  %v3560_v26 = vrot.slane %v3538_v17, %v13882_v39  ;;  %v1589_v27 = vrot.slane %v1307_v19, %v13882_v39  ;;  %5450 = vrot.lane.b32.xlu1 %v14091_v43, %s13497_s29 }
 0x21d   : > { %v1506_v29 = vrot.slane %v1478_v20, %v13882_v39  ;;  %v2428_v31 = vcombine.low %v1485_v15, %v1499_v22  ;;  %v12451_v36 = vcombine.high %v1485_v15, %v1499_v22  ;;  %v1596_v38 = vrot.slane %v1582_v23, %v13882_v39 }
 0x21e   : > { %v3567_v32 = vrot.slane %v3539_v24, %v13882_v39  ;;  %v4489_v42 = vcombine.low %v3546_v18, %v3560_v26  ;;  %v12467_v44 = vcombine.high %v3546_v18, %v3560_v26  ;;  %v1597_v45 = vcombine.high %v1589_v27, %v1589_v27  ;;  %v1303_v60 = vpop.permute.xlu1 %1302 }
 0x21f   : > { %v2430_v46 = vcombine.low %v1492_v21, %v1506_v29  ;;  %v12452_v47 = vcombine.high %v1492_v21, %v1506_v29  ;;  %v2438_v50 = vrot.slane %v2428_v31, %v13882_v39  ;;  %v2445_v51 = vrot.slane %v12451_v36, %v13882_v39 }
 0x220   : > { %v4491_v52 = vcombine.low %v3553_v25, %v3567_v32  ;;  %v12468_v37 = vcombine.high %v3553_v25, %v3567_v32  ;;  %v14142_v53 = vrot.slane %v4489_v42, %v13882_v39  ;;  %v14145_v54 = vrot.slane %v12467_v44, %v13882_v39  ;;  %5452 = vrot.lane.b32.xlu1 %v14088_v30, %s13498_s14  ;;  %v3374_v44 = vpop.permute.xlu0 %3373 }
 0x221   : > { %v2452_v55 = vrot.slane %v2430_v46, %v13882_v39  ;;  %v2459_v56 = vrot.slane %v12452_v47, %v13882_v39  ;;  %v2460_v57 = vcombine.low %v2438_v50, %v2445_v51  ;;  %v1598_v58 = vcombine.high %v1596_v38, %v1596_v38 }
 0x222   : > { %v14152_v61 = vrot.slane %v4491_v52, %v13882_v39  ;;  %v14155_v62 = vrot.slane %v12468_v37, %v13882_v39  ;;  %v1605_v63 = vrot.slane %v1589_v27, %v13882_v39  ;;  %v1612_v2 = vrot.slane %v1596_v38, %v13882_v39 }
 0x223   : > { %v2461_v3 = vcombine.low %v2452_v55, %v2459_v56  ;;  %v14160_v4 = vrot.slane %v2460_v57, %v13882_v39  ;;  %v1619_v5 = vrot.slane %v1597_v45, %v13882_v39  ;;  %v1626_v6 = vrot.slane %v1598_v58, %v13882_v39  ;;  %v1309_v56 = vpop.permute.xlu1 %1308 }
 0x224   : > { %v3643_v7 = vcombine.high %v3368_v59, %v3368_v59  ;;  %v3650_v8 = vrot.slane %v3368_v59, %v13882_v39  ;;  %v1511_v9 = vcombine.high %v1303_v60, %v1303_v60  ;;  %v1518_v10 = vrot.slane %v1303_v60, %v13882_v39  ;;  %5456 = vrot.lane.b32.xlu1 %v14091_v43, %s13498_s14 }
 0x225   : > { %v2554_v11 = vcombine.low %v1605_v63, %v1619_v5  ;;  %v12453_v34 = vcombine.high %v1605_v63, %v1619_v5  ;;  %v2556_v41 = vcombine.low %v1612_v2, %v1626_v6  ;;  %v12454_v48 = vcombine.high %v1612_v2, %v1626_v6 }
 0x226   : > { %v3657_v12 = vrot.slane %v3643_v7, %v13882_v39  ;;  %v3658_v40 = vcombine.high %v3650_v8, %v3650_v8  ;;  %v3666_v13 = vrot.slane %v3650_v8, %v13882_v39  ;;  %v2475_v1 = vrot.slane %v2461_v3, %v13882_v39 }
 0x227   : > { %v2564_v14 = vrot.slane %v2554_v11, %v13882_v39  ;;  %v2571_v15 = vrot.slane %v12453_v34, %v13882_v39  ;;  %v2578_v16 = vrot.slane %v2556_v41, %v13882_v39  ;;  %v2585_v17 = vrot.slane %v12454_v48, %v13882_v39  ;;  %v3364_v41 = vpop.permute.xlu0 %3363 }
 0x228   : > { %v3659_v18 = vcombine.high %v3657_v12, %v3657_v12  ;;  %v3673_v19 = vrot.slane %v3657_v12, %v13882_v39  ;;  %v3680_v20 = vrot.slane %v3658_v40, %v13882_v39  ;;  %v2476_v21 = vcombine.low %v14160_v4, %v2475_v1 }
 0x229   : > { %v2586_v22 = vcombine.low %v2564_v14, %v2571_v15  ;;  %v2587_v23 = vcombine.low %v2578_v16, %v2585_v17  ;;  %v1525_v24 = vrot.slane %v1511_v9, %v13882_v39  ;;  %v1526_v25 = vcombine.high %v1518_v10, %v1518_v10 }
 0x22a   : > { %v3687_v26 = vrot.slane %v3659_v18, %v13882_v39  ;;  %v4615_v27 = vcombine.low %v3666_v13, %v3680_v20  ;;  %v12469_v29 = vcombine.high %v3666_v13, %v3680_v20  ;;  %v1534_v31 = vrot.slane %v1518_v10, %v13882_v39 }
 0x22b   : > { %v14182_v36 = vrot.slane %v2586_v22, %v13882_v39  ;;  %v1527_v38 = vcombine.high %v1525_v24, %v1525_v24  ;;  %v1541_v32 = vrot.slane %v1525_v24, %v13882_v39  ;;  %v1548_v42 = vrot.slane %v1526_v25, %v13882_v39 }
 0x22c   : > { %v4617_v45 = vcombine.low %v3673_v19, %v3687_v26  ;;  %v12470_v46 = vcombine.high %v3673_v19, %v3687_v26  ;;  %v14187_v47 = vrot.slane %v4615_v27, %v13882_v39  ;;  %v14190_v50 = vrot.slane %v12469_v29, %v13882_v39 }
 0x22d   : > { %v14193_v51 = vrot.slane %v1527_v38, %v13882_v39  ;;  %v1556_v52 = vcombine.high %v1534_v31, %v1534_v31  ;;  %v1557_v37 = vcombine.high %v1541_v32, %v1541_v32  ;;  %v1558_v55 = vcombine.high %v1548_v42, %v1548_v42 }
 0x22e   : > { %v14196_v57 = vrot.slane %v4617_v45, %v13882_v39  ;;  %v14199_v58 = vrot.slane %v12470_v46, %v13882_v39  ;;  %v2483_v59 = vrot.slane %v1534_v31, %v13882_v39  ;;  %v3763_v60 = vcombine.high %v3374_v44, %v3374_v44 }
 0x22f   : > { %v2491_v63 = vcombine.low %v1548_v42, %v1556_v52  ;;  %v2492_v2 = vcombine.low %v1558_v55, %v1541_v32  ;;  %v14203_v3 = vcombine.low %v14193_v51, %v1557_v37  ;;  %v3770_v4 = vrot.slane %v3374_v44, %v13882_v39 }
 0x230   : > { %v2490_v5 = vrot.slane %v2483_v59, %v13882_v39  ;;  %v3777_v6 = vrot.slane %v3763_v60, %v13882_v39  ;;  %v2601_v7 = vrot.slane %v2587_v23, %v13882_v39  ;;  %v1631_v8 = vcombine.high %v1309_v56, %v1309_v56 }
 0x231   : > { %v2501_v9 = vrot.slane %v2491_v63, %v13882_v39  ;;  %v2508_v10 = vrot.slane %v2492_v2, %v13882_v39  ;;  %v3778_v11 = vcombine.high %v3770_v4, %v3770_v4  ;;  %v3786_v34 = vrot.slane %v3770_v4, %v13882_v39 }
 0x232   : > { %v14212_v48 = vpack.c.bf16 %v2490_v5, %v2476_v21  ;;  %v3779_v12 = vcombine.high %v3777_v6, %v3777_v6  ;;  %v3793_v40 = vrot.slane %v3777_v6, %v13882_v39  ;;  %v2602_v13 = vcombine.low %v14182_v36, %v2601_v7  ;;  %v1305_v7 = vpop.permute.xlu1 %1304 }
 0x233   : > { %v14216_v1 = vcombine.low %v2501_v9, %v2508_v10  ;;  %v3800_v14 = vrot.slane %v3778_v11, %v13882_v39  ;;  %v1638_v15 = vrot.slane %v1309_v56, %v13882_v39  ;;  %v1645_v16 = vrot.slane %v1631_v8, %v13882_v39 }
 0x234   : > { %v3807_v17 = vrot.slane %v3779_v12, %v13882_v39  ;;  %v3572_v18 = vcombine.high %v3364_v41, %v3364_v41  ;;  %v3579_v19 = vrot.slane %v3364_v41, %v13882_v39  ;;  %v1559_v20 = vcombine.high %v14193_v51, %v14193_v51 }
 0x235   : > { %v2531_v21 = vrot.slane %v14216_v1, %v13882_v39  ;;  %v4741_v22 = vcombine.low %v3786_v34, %v3800_v14  ;;  %v12471_v23 = vcombine.high %v3786_v34, %v3800_v14  ;;  %v1646_v24 = vcombine.high %v1638_v15, %v1638_v15  ;;  %v3370_v34 = vpop.permute.xlu0 %3369 }
 0x236   : > { %v4743_v25 = vcombine.low %v3793_v40, %v3807_v17  ;;  %v12472_v26 = vcombine.high %v3793_v40, %v3807_v17  ;;  %v1647_v27 = vcombine.high %v1645_v16, %v1645_v16  ;;  %v1654_v29 = vrot.slane %v1638_v15, %v13882_v39 }
 0x237   : > { %v14229_v31 = vrot.slane %v4741_v22, %v13882_v39  ;;  %v14232_v36 = vrot.slane %v12471_v23, %v13882_v39  ;;  %v1661_v38 = vrot.slane %v1645_v16, %v13882_v39  ;;  %v1668_v32 = vrot.slane %v1646_v24, %v13882_v39 }
 0x238   : > { %v14237_v42 = vrot.slane %v4743_v25, %v13882_v39  ;;  %v14240_v44 = vrot.slane %v12472_v26, %v13882_v39  ;;  %v14243_v45 = vrot.slane %v1647_v27, %v13882_v39  ;;  %v1676_v46 = vcombine.high %v1654_v29, %v1654_v29 }
 0x239   : > { %v1677_v51 = vcombine.high %v1661_v38, %v1661_v38  ;;  %v1678_v52 = vcombine.high %v1668_v32, %v1668_v32  ;;  %v2609_v37 = vrot.slane %v1654_v29, %v13882_v39  ;;  %v3586_v55 = vrot.slane %v3572_v18, %v13882_v39 }
 0x23a   : > { %v2617_v56 = vcombine.low %v1668_v32, %v1676_v46  ;;  %v3587_v59 = vcombine.high %v3579_v19, %v3579_v19  ;;  %v14248_v60 = vrot.slane %v3579_v19, %v13882_v39  ;;  %v2515_v63 = vrot.slane %v14203_v3, %v13882_v39  ;;  %v1311_v46 = vpop.permute.xlu1 %1310 }
 0x23b   : > { %v2616_v2 = vrot.slane %v2609_v37, %v13882_v39  ;;  %v2618_v4 = vcombine.low %v1678_v52, %v1661_v38  ;;  %v14254_v5 = vcombine.low %v14243_v45, %v1677_v51  ;;  %v3588_v6 = vcombine.high %v3586_v55, %v3586_v55 }
 0x23c   : > { %v2627_v8 = vrot.slane %v2617_v56, %v13882_v39  ;;  %v3602_v9 = vrot.slane %v3586_v55, %v13882_v39  ;;  %v3609_v10 = vrot.slane %v3587_v59, %v13882_v39  ;;  %v3617_v11 = vcombine.high %v14248_v60, %v14248_v60 }
 0x23d   : > { %v2634_v3 = vrot.slane %v2618_v4, %v13882_v39  ;;  %v14262_v41 = vpack.c.bf16 %v2616_v2, %v2602_v13  ;;  %v14265_v12 = vrot.slane %v3588_v6, %v13882_v39  ;;  %v4544_v40 = vrot.slane %v14248_v60, %v13882_v39 }
 0x23e   : > { %v3618_v14 = vcombine.high %v3602_v9, %v3602_v9  ;;  %v3619_v15 = vcombine.high %v3609_v10, %v3609_v10  ;;  %v14269_v16 = vcombine.low %v3609_v10, %v3617_v11  ;;  %v1566_v17 = vrot.slane %v1305_v7, %v13882_v39 }
 0x23f   : > { %v14272_v18 = vcombine.low %v2627_v8, %v2634_v3  ;;  %v3692_v19 = vcombine.high %v3370_v34, %v3370_v34  ;;  %v3699_v22 = vrot.slane %v3370_v34, %v13882_v39  ;;  %v1679_v13 = vcombine.high %v14243_v45, %v14243_v45 }
 0x240   : > { %v14277_v23 = vcombine.low %v3619_v15, %v3602_v9  ;;  %v14280_v24 = vcombine.low %v14265_v12, %v3618_v14  ;;  %v1567_v26 = vcombine.high %v1566_v17, %v1566_v17  ;;  %v1574_v29 = vrot.slane %v1566_v17, %v13882_v39  ;;  %v3376_v9 = vpop.permute.xlu0 %3375 }
 0x241   : > { %v2657_v27 = vrot.slane %v14272_v18, %v13882_v39  ;;  %v3706_v38 = vrot.slane %v3692_v19, %v13882_v39  ;;  %v3707_v32 = vcombine.high %v3699_v22, %v3699_v22  ;;  %v14292_v52 = vrot.slane %v3699_v22, %v13882_v39 }
 0x242   : > { %v1581_v51 = vrot.slane %v1567_v26, %v13882_v39  ;;  %v2641_v37 = vrot.slane %v14254_v5, %v13882_v39  ;;  %v2494_v55 = vcombine.low %v1559_v20, %v1574_v29  ;;  %v1686_v8 = vrot.slane %v1311_v46, %v13882_v39 }
 0x243   : > { %v3708_v56 = vcombine.high %v3706_v38, %v3706_v38  ;;  %v3722_v59 = vrot.slane %v3706_v38, %v13882_v39  ;;  %v3729_v2 = vrot.slane %v3707_v32, %v13882_v39  ;;  %v3737_v6 = vcombine.high %v14292_v52, %v14292_v52 }
 0x244   : > { %v2546_v4 = vrot.slane %v1581_v51, %v13882_v39  ;;  %v2522_v10 = vrot.slane %v2494_v55, %v13882_v39  ;;  %v1687_v14 = vcombine.high %v1686_v8, %v1686_v8  ;;  %v1694_v15 = vrot.slane %v1686_v8, %v13882_v39 }
 0x245   : > { %v14306_v20 = vrot.slane %v3708_v56, %v13882_v39  ;;  %v3738_v5 = vcombine.high %v3722_v59, %v3722_v59  ;;  %v3739_v11 = vcombine.high %v3729_v2, %v3729_v2  ;;  %v14311_v3 = vcombine.low %v3729_v2, %v3737_v6 }
 0x246   : > { %v14309_v34 = vrot.slane %v2546_v4, %v13882_v39  ;;  %v2524_v17 = vcombine.low %v2515_v63, %v2522_v10  ;;  %v3812_v26 = vcombine.high %v3376_v9, %v3376_v9  ;;  %v1701_v38 = vrot.slane %v1687_v14, %v13882_v39 }
 0x247   : > { %v14314_v19 = vcombine.low %v3739_v11, %v3722_v59  ;;  %v14317_v22 = vcombine.low %v14306_v20, %v3738_v5  ;;  %v2620_v32 = vcombine.low %v1679_v13, %v1694_v15  ;;  %v3819_v46 = vrot.slane %v3376_v9, %v13882_v39  ;;  %v3366_v13 = vpop.permute.xlu1 %3365 }
 0x248   : > { %v2538_v51 = vrot.slane %v2524_v17, %v13882_v39  ;;  %v3826_v63 = vrot.slane %v3812_v26, %v13882_v39  ;;  %v3620_v56 = vcombine.high %v14265_v12, %v14265_v12  ;;  %v2672_v2 = vrot.slane %v1701_v38, %v13882_v39 }
 0x249   : > { %v2648_v59 = vrot.slane %v2620_v32, %v13882_v39  ;;  %v3827_v4 = vcombine.high %v3819_v46, %v3819_v46  ;;  %v14332_v6 = vrot.slane %v3819_v46, %v13882_v39  ;;  %v4576_v12 = vrot.slane %v14280_v24, %v13882_v39  ;;  %v3382_v46 = vpop.permute.xlu0 %3381 }
 0x24a   : > { %v14337_v8 = vcombine.low %v2531_v21, %v2538_v51  ;;  %v3828_v9 = vcombine.high %v3826_v63, %v3826_v63  ;;  %v3842_v10 = vrot.slane %v3826_v63, %v13882_v39  ;;  %v14343_v11 = vrot.slane %v2672_v2, %v13882_v39 }
 0x24b   : > { %v2650_v5 = vcombine.low %v2641_v37, %v2648_v59  ;;  %v3849_v14 = vrot.slane %v3827_v4, %v13882_v39  ;;  %v3857_v15 = vcombine.high %v14332_v6, %v14332_v6  ;;  %v3627_v32 = vrot.slane %v3366_v13, %v13882_v39 }
 0x24c   : > { %v14351_v21 = vrot.slane %v3828_v9, %v13882_v39  ;;  %v3858_v17 = vcombine.high %v3842_v10, %v3842_v10  ;;  %v4521_v63 = vcombine.low %v14142_v53, %v14145_v54  ;;  %v4522_v59 = vcombine.low %v14152_v61, %v14155_v62  ;;  %v1315_v53 = vpop.permute.xlu1 %1314 }
 0x24d   : > { %v2664_v24 = vrot.slane %v2650_v5, %v13882_v39  ;;  %v3859_v37 = vcombine.high %v3849_v14, %v3849_v14  ;;  %v14356_v38 = vcombine.low %v3849_v14, %v3857_v15  ;;  %v4551_v2 = vrot.slane %v4544_v40, %v13882_v39 }
 0x24e   : > { %v14360_v51 = vcombine.low %v14351_v21, %v3858_v17  ;;  %v3628_v5 = vcombine.high %v3627_v32, %v3627_v32  ;;  %v3635_v54 = vrot.slane %v3627_v32, %v13882_v39  ;;  %v4529_v61 = vrot.slane %v4521_v63, %v13882_v39 }
 0x24f   : > { %v14373_v4 = vcombine.low %v2657_v27, %v2664_v24  ;;  %v14375_v13 = vcombine.low %v3859_v37, %v3842_v10  ;;  %v4536_v62 = vrot.slane %v4522_v59, %v13882_v39  ;;  %v3932_v60 = vcombine.high %v3382_v46, %v3382_v46 }
 0x250   : > { %v14387_v27 = vrot.slane %v3628_v5, %v13882_v39  ;;  %v3939_v10 = vrot.slane %v3382_v46, %v13882_v39  ;;  %v4555_v14 = vcombine.low %v3620_v56, %v3635_v54  ;;  %v1751_v24 = vcombine.high %v1315_v53, %v1315_v53 }
 0x251   : > { %v4537_v15 = vcombine.low %v4529_v61, %v4536_v62  ;;  %v3946_v17 = vrot.slane %v3932_v60, %v13882_v39  ;;  %v1758_v59 = vrot.slane %v1315_v53, %v13882_v39  ;;  %v3380_v60 = vpop.permute.xlu0 %3379 }
 0x252   : > { %v3947_v32 = vcombine.high %v3939_v10, %v3939_v10  ;;  %v14394_v63 = vrot.slane %v3939_v10, %v13882_v39  ;;  %v4583_v0 = vrot.slane %v4555_v14, %v13882_v39  ;;  %v1765_v62 = vrot.slane %v1751_v24, %v13882_v39 }
 0x253   : > { %v5405_v5 = vpack.c.bf16 %v4551_v2, %v4537_v15  ;;  %v3948_v40 = vcombine.high %v3946_v17, %v3946_v17  ;;  %v3962_v46 = vrot.slane %v3946_v17, %v13882_v39  ;;  %v1774_v24 = vrot.slane %v1758_v59, %v13882_v39 }
 0x254   : > { %v3969_v56 = vrot.slane %v3947_v32, %v13882_v39  ;;  %v3977_v54 = vcombine.high %v14394_v63, %v14394_v63  ;;  %v14405_v10 = vcombine.low %v4576_v12, %v4583_v0  ;;  %v1766_v32 = vcombine.high %v1758_v59, %v1758_v59 }
 0x255   : > { %v7579_v53 = vsel %vm7480_vm1, %v5405_v5, 0  ;;  %v14409_v2 = vrot.slane %v3948_v40, %v13882_v39  ;;  %v3978_v14 = vcombine.high %v3962_v46, %v3962_v46  ;;  %v1767_v9 = vcombine.high %v1765_v62, %v1765_v62  ;;  %v1313_v5 = vpop.permute.xlu1 %1312  ;;  %v3388_v37 = vpop.permute.xlu0 %3387 }
 0x256   : > { %12747 = vmatpush3.bf16.xpose.msra.mxu1 %v7579_v53  ;;  %v3979_v15 = vcombine.high %v3969_v56, %v3969_v56  ;;  %v14411_v17 = vcombine.low %v3969_v56, %v3977_v54  ;;  %v1781_v0 = vrot.slane %v1765_v62, %v13882_v39  ;;  %v3883_v12 = vcombine.high %v3380_v60, %v3380_v60 }
 0x257   : > { %v14414_v18 = vcombine.low %v14409_v2, %v3978_v14  ;;  %12758 = vmatprep.subr.bf16.mxu1 %v16429_v28  ;;  %v1788_v56 = vrot.slane %v1766_v32, %v13882_v39  ;;  %v14425_v54 = vrot.slane %v1767_v9, %v13882_v39  ;;  %v1796_v14 = vcombine.high %v1774_v24, %v1774_v24 }
 0x258   : > { %v14419_v40 = vcombine.low %v3979_v15, %v3962_v46  ;;  %v1797_v29 = vcombine.high %v1781_v0, %v1781_v0  ;;  %v2735_v59 = vrot.slane %v1774_v24, %v13882_v39  ;;  %v3890_v62 = vrot.slane %v3380_v60, %v13882_v39 }
 0x259   : > { %v1798_v61 = vcombine.high %v1788_v56, %v1788_v56  ;;  %v3897_v46 = vrot.slane %v3883_v12, %v13882_v39  ;;  %v1702_v15 = vcombine.high %v1313_v5, %v1313_v5  ;;  %v2743_v32 = vcombine.low %v1788_v56, %v1796_v14 }
 0x25a   : > { %v14433_v53 = vrot.slane %v2735_v59, %v13882_v39  ;;  %v14436_v9 = vcombine.low %v14425_v54, %v1797_v29  ;;  %v3898_v1 = vcombine.high %v3890_v62, %v3890_v62  ;;  %v3906_v60 = vrot.slane %v3890_v62, %v13882_v39 }
 0x25b   : > { %v2744_v25 = vcombine.low %v1798_v61, %v1781_v0  ;;  %v3899_v24 = vcombine.high %v3897_v46, %v3897_v46  ;;  %v3913_v45 = vrot.slane %v3897_v46, %v13882_v39  ;;  %v2753_v55 = vrot.slane %v2743_v32, %v13882_v39 }
 0x25c   : > { %v3920_v12 = vrot.slane %v3898_v1, %v13882_v39  ;;  %v1709_v56 = vrot.slane %v1313_v5, %v13882_v39  ;;  %v1716_v29 = vrot.slane %v1702_v15, %v13882_v39  ;;  %v4052_v0 = vcombine.high %v3388_v37, %v3388_v37 }
 0x25d   : > { %12749 = vmatmul.mubr.msk.bf16.vlgmr.msra.gmra.mrb[4].mxu1 %vm7480_vm1, %v14212_v48  ;;  %v2760_v14 = vrot.slane %v2744_v25, %v13882_v39  ;;  %v3927_v61 = vrot.slane %v3899_v24, %v13882_v39  ;;  %v4059_v59 = vrot.slane %v3388_v37, %v13882_v39 }
 0x25e   : > { %12760 = vmatprep.mubr.msk.bf16.mxu1 %vm13491_vm0, %v16429_v28  ;;  %v4867_v62 = vcombine.low %v3906_v60, %v3920_v12  ;;  %v12473_v46 = vcombine.high %v3906_v60, %v3920_v12  ;;  %v1717_v1 = vcombine.high %v1709_v56, %v1709_v56  ;;  %v1718_v32 = vcombine.high %v1716_v29, %v1716_v29 }
 0x25f   : > { %v14451_v26 = vcombine.low %v2753_v55, %v2760_v14  ;;  %v4869_v48 = vcombine.low %v3913_v45, %v3927_v61  ;;  %v12474_v5 = vcombine.high %v3913_v45, %v3927_v61  ;;  %v1725_v15 = vrot.slane %v1709_v56, %v13882_v39 }
 0x260   : > { %v14455_v25 = vrot.slane %v4867_v62, %v13882_v39  ;;  %v14458_v24 = vrot.slane %v12473_v46, %v13882_v39  ;;  %v1732_v37 = vrot.slane %v1716_v29, %v13882_v39  ;;  %v1739_v28 = vrot.slane %v1717_v1, %v13882_v39 }
 0x261   : > { %v14465_v55 = vrot.slane %v4869_v48, %v13882_v39  ;;  %v14468_v45 = vrot.slane %v12474_v5, %v13882_v39  ;;  %v1746_v12 = vrot.slane %v1718_v32, %v13882_v39  ;;  %v4066_v61 = vrot.slane %v4052_v0, %v13882_v39  ;;  %v1317_v48 = vpop.permute.xlu1 %1316 }
 0x262   : > { %v2680_v56 = vcombine.low %v1725_v15, %v1739_v28  ;;  %v12455_v14 = vcombine.high %v1725_v15, %v1739_v28  ;;  %v4067_v62 = vcombine.high %v4059_v59, %v4059_v59  ;;  %v14473_v1 = vrot.slane %v4059_v59, %v13882_v39  ;;  %v3372_v28 = vpop.permute.xlu0 %3371 }
 0x263   : > { %v2682_v46 = vcombine.low %v1732_v37, %v1746_v12  ;;  %v12456_v29 = vcombine.high %v1732_v37, %v1746_v12  ;;  %v4647_v60 = vcombine.low %v14187_v47, %v14190_v50  ;;  %v4068_v35 = vcombine.high %v4066_v61, %v4066_v61 }
 0x264   : > { %v2690_v7 = vrot.slane %v2680_v56, %v13882_v39  ;;  %v2697_v5 = vrot.slane %v12455_v14, %v13882_v39  ;;  %v4082_v32 = vrot.slane %v4066_v61, %v13882_v39  ;;  %v4089_v37 = vrot.slane %v4067_v62, %v13882_v39 }
 0x265   : > { %v2704_v0 = vrot.slane %v2682_v46, %v13882_v39  ;;  %v2711_v15 = vrot.slane %v12456_v29, %v13882_v39  ;;  %v4097_v59 = vcombine.high %v14473_v1, %v14473_v1  ;;  %v14486_v47 = vrot.slane %v4068_v35, %v13882_v39 }
 0x266   : > { %v2712_v12 = vcombine.low %v2690_v7, %v2697_v5  ;;  %v4098_v50 = vcombine.high %v4082_v32, %v4082_v32  ;;  %v4099_v61 = vcombine.high %v4089_v37, %v4089_v37  ;;  %v4648_v46 = vcombine.low %v14196_v57, %v14199_v58 }
 0x267   : > { %v2713_v14 = vcombine.low %v2704_v0, %v2711_v15  ;;  %v14490_v33 = vcombine.low %v4089_v37, %v4097_v59  ;;  %v4655_v35 = vrot.slane %v4647_v60, %v13882_v39  ;;  %v16492_v7 = vrot.slane %v14292_v52, %v13882_v39  ;;  %v1321_v37 = vpop.permute.xlu1 %1320 }
 0x268   : > { %v14495_v62 = vrot.slane %v2712_v12, %v13882_v39  ;;  %v14498_v29 = vcombine.low %v14486_v47, %v4098_v50  ;;  %v14508_v15 = vcombine.low %v4099_v61, %v4082_v32  ;;  %v4662_v58 = vrot.slane %v4648_v46, %v13882_v39  ;;  %v3386_v50 = vpop.permute.xlu0 %3385 }
 0x269   : > { %v4677_v5 = vrot.slane %v16492_v7, %v13882_v39  ;;  %v14506_v0 = vrot.slane %v2713_v14, %v13882_v39  ;;  %v1799_v59 = vcombine.high %v14425_v54, %v14425_v54  ;;  %v2767_v60 = vrot.slane %v14436_v9, %v13882_v39 }
 0x26a   : > { %v1806_v52 = vrot.slane %v1317_v48, %v13882_v39  ;;  %v3740_v12 = vcombine.high %v14306_v20, %v14306_v20  ;;  %v4663_v14 = vcombine.low %v4655_v35, %v4662_v58  ;;  %v4702_v61 = vrot.slane %v14317_v22, %v13882_v39 }
 0x26b   : > { %v3747_v46 = vrot.slane %v3372_v28, %v13882_v39  ;;  %v1871_v57 = vcombine.high %v1321_v37, %v1321_v37  ;;  %v1878_v9 = vrot.slane %v1321_v37, %v13882_v39  ;;  %v4003_v43 = vcombine.high %v3386_v50, %v3386_v50 }
 0x26c   : > { %v1807_v7 = vcombine.high %v1806_v52, %v1806_v52  ;;  %v1814_v54 = vrot.slane %v1806_v52, %v13882_v39  ;;  %v5407_v48 = vpack.c.bf16 %v4677_v5, %v4663_v14 }
 0x26d   : > { %v3748_v56 = vcombine.high %v3747_v46, %v3747_v46  ;;  %v3755_v20 = vrot.slane %v3747_v46, %v13882_v39  ;;  %v1885_v35 = vrot.slane %v1871_v57, %v13882_v39  ;;  %v1886_v58 = vcombine.high %v1878_v9, %v1878_v9 }
 0x26e   : > { %v1821_v49 = vrot.slane %v1807_v7, %v13882_v39  ;;  %v2746_v32 = vcombine.low %v1799_v59, %v1814_v54  ;;  %v7673_v22 = vsel %vm7480_vm1, %v5407_v48, 0  ;;  %v1894_v30 = vrot.slane %v1878_v9, %v13882_v39 }
 0x26f   : > { %v14532_v28 = vrot.slane %v3748_v56, %v13882_v39  ;;  %v4681_v52 = vcombine.low %v3740_v12, %v3755_v20  ;;  %12759 = vmatpush3.bf16.xpose.msra.mxu1 %v7673_v22  ;;  %v1887_v14 = vcombine.high %v1885_v35, %v1885_v35  ;;  %v1901_v46 = vrot.slane %v1885_v35, %v13882_v39 }
 0x270   : > { %v2774_v5 = vrot.slane %v2746_v32, %v13882_v39  ;;  %v2798_v37 = vrot.slane %v1821_v49, %v13882_v39  ;;  %v16493_v7 = vmov 0.0   ;;  %v1908_v56 = vrot.slane %v1886_v58, %v13882_v39 }
 0x271   : > { %v4709_v59 = vrot.slane %v4681_v52, %v13882_v39  ;;  %12770 = vmatprep.subr.bf16.mxu1 %v16493_v7  ;;  %v1916_v12 = vcombine.high %v1894_v30, %v1894_v30  ;;  %v14547_v32 = vrot.slane %v1887_v14, %v13882_v39  ;;  %v1917_v49 = vcombine.high %v1901_v46, %v1901_v46 }
 0x272   : > { %v2776_v54 = vcombine.low %v2767_v60, %v2774_v5  ;;  %v14544_v9 = vrot.slane %v2798_v37, %v13882_v39  ;;  %v1918_v20 = vcombine.high %v1908_v56, %v1908_v56  ;;  %v2861_v35 = vrot.slane %v1894_v30, %v13882_v39 }
 0x273   : > { %v14549_v48 = vcombine.low %v4702_v61, %v4709_v59  ;;  %v2869_v22 = vcombine.low %v1908_v56, %v1916_v12  ;;  %v14554_v57 = vcombine.low %v14547_v32, %v1917_v49  ;;  %v4010_v60 = vrot.slane %v3386_v50, %v13882_v39 }
 0x274   : > { %v2790_v52 = vrot.slane %v2776_v54, %v13882_v39  ;;  %v4017_v58 = vrot.slane %v4003_v43, %v13882_v39  ;;  %v14559_v5 = vrot.slane %v2861_v35, %v13882_v39  ;;  %v2870_v37 = vcombine.low %v1918_v20, %v1901_v46 }
 0x275   : > { %v2879_v61 = vrot.slane %v2869_v22, %v13882_v39  ;;  %v4773_v14 = vcombine.low %v14229_v31, %v14232_v36  ;;  %v16494_v30 = vrot.slane %v14451_v26, %v13882_v39  ;;  %v4018_v56 = vcombine.high %v4010_v60, %v4010_v60 }
 0x276   : > { %v4019_v12 = vcombine.high %v4017_v58, %v4017_v58  ;;  %v4026_v50 = vrot.slane %v4010_v60, %v13882_v39  ;;  %12761 = vmatmul.mubr.msk.bf16.vlgmr.msra.gmra.mrb[8].mxu1 %vm7480_vm1, %v14262_v41  ;;  %v2886_v43 = vrot.slane %v2870_v37, %v13882_v39  ;;  %v4033_v46 = vrot.slane %v4017_v58, %v13882_v39  ;;  %v1319_v58 = vpop.permute.xlu1 %1318 }
 0x277   : > { %v14567_v59 = vcombine.low %v16494_v30, %v2790_v52  ;;  %v4774_v54 = vcombine.low %v14237_v42, %v14240_v44  ;;  %v4781_v31 = vrot.slane %v4773_v14, %v13882_v39  ;;  %v4040_v26 = vrot.slane %v4018_v56, %v13882_v39  ;;  %12772 = vmatprep.mubr.msk.bf16.mxu1 %vm13491_vm0, %v16493_v7 }
 0x278   : > { %v4047_v49 = vrot.slane %v4019_v12, %v13882_v39  ;;  %v16495_v41 = vrot.slane %v14332_v6, %v13882_v39  ;;  %v14587_v35 = vcombine.low %v2879_v61, %v2886_v43  ;;  %v16496_v44 = vrot.slane %v14277_v23, %v13882_v39  ;;  %v3378_v6 = vpop.permute.xlu0 %3377 }
 0x279   : > { %v4788_v42 = vrot.slane %v4774_v54, %v13882_v39  ;;  %v16497_v22 = vrot.slane %v14269_v16, %v13882_v39  ;;  %v4599_v60 = vrot.slane %v14405_v10, %v13882_v39  ;;  %v4993_v37 = vcombine.low %v4026_v50, %v4040_v26 }
 0x27a   : > { %v4803_v20 = vrot.slane %v16495_v41, %v13882_v39  ;;  %v12475_v14 = vcombine.high %v4026_v50, %v4040_v26  ;;  %v4995_v30 = vcombine.low %v4033_v46, %v4047_v49  ;;  %v12476_v56 = vcombine.high %v4033_v46, %v4047_v49 }
 0x27b   : > { %v4584_v52 = vcombine.low %v16497_v22, %v16496_v44  ;;  %v2909_v61 = vrot.slane %v14587_v35, %v13882_v39  ;;  %v4789_v12 = vcombine.low %v4781_v31, %v4788_v42  ;;  %v16498_v16 = vrot.slane %v14387_v27, %v13882_v39 }
 0x27c   : > { %v14606_v54 = vrot.slane %v4993_v37, %v13882_v39  ;;  %v14609_v10 = vrot.slane %v12475_v14, %v13882_v39  ;;  %v14612_v50 = vrot.slane %v4995_v30, %v13882_v39  ;;  %v14615_v46 = vrot.slane %v12476_v56, %v13882_v39  ;;  %v1323_v14 = vpop.permute.xlu1 %1322  ;;  %v3394_v30 = vpop.permute.xlu0 %3393 }
 0x27d   : > { %v4592_v43 = vrot.slane %v4584_v52, %v13882_v39  ;;  %v4614_v23 = vrot.slane %v16498_v16, %v13882_v39  ;;  %v5409_v31 = vpack.c.bf16 %v4803_v20, %v4789_v12  ;;  %v1822_v49 = vcombine.high %v1319_v58, %v1319_v58 }
 0x27e   : > { %v1829_v41 = vrot.slane %v1319_v58, %v13882_v39  ;;  %v3860_v27 = vcombine.high %v14351_v21, %v14351_v21  ;;  %v4828_v42 = vrot.slane %v14360_v51, %v13882_v39  ;;  %v3867_v44 = vrot.slane %v3378_v6, %v13882_v39 }
 0x27f   : > { %v4600_v26 = vcombine.low %v4592_v43, %v4599_v60  ;;  %v1919_v22 = vcombine.high %v14547_v32, %v14547_v32  ;;  %v7767_v52 = vsel %vm7480_vm1, %v5409_v31, 0  ;;  %v1836_v20 = vrot.slane %v1822_v49, %v13882_v39 }
 0x280   : > { %v1837_v60 = vcombine.high %v1829_v41, %v1829_v41  ;;  %12771 = vmatpush3.bf16.xpose.msra.mxu1 %v7767_v52  ;;  %v1845_v58 = vrot.slane %v1829_v41, %v13882_v39  ;;  %v3868_v21 = vcombine.high %v3867_v44, %v3867_v44  ;;  %v3875_v56 = vrot.slane %v3867_v44, %v13882_v39 }
 0x281   : > { %v5406_v37 = vpack.c.bf16 %v4614_v23, %v4600_v26  ;;  %v2893_v51 = vrot.slane %v14554_v57, %v13882_v39  ;;  %v1838_v32 = vcombine.high %v1836_v20, %v1836_v20  ;;  %v1852_v12 = vrot.slane %v1836_v20, %v13882_v39  ;;  %12782 = vmatprep.subr.bf16.mxu1 %v16493_v7 }
 0x282   : > { %v1859_v43 = vrot.slane %v1837_v60, %v13882_v39  ;;  %v14636_v16 = vrot.slane %v3868_v21, %v13882_v39  ;;  %v4807_v23 = vcombine.low %v3860_v27, %v3875_v56  ;;  %v1926_v31 = vrot.slane %v1323_v14, %v13882_v39 }
 0x283   : > { %v7626_v6 = vsel %vm7480_vm1, %v5406_v37, 0  ;;  %v4172_v26 = vcombine.high %v3394_v30, %v3394_v30  ;;  %v1866_v49 = vrot.slane %v1838_v32, %v13882_v39  ;;  %v4179_v44 = vrot.slane %v3394_v30, %v13882_v39 }
 0x284   : > { %12753 = vmatpush3.bf16.xpose.msra.mxu0 %v7626_v6  ;;  %v2806_v57 = vcombine.low %v1845_v58, %v1859_v43  ;;  %v12457_v41 = vcombine.high %v1845_v58, %v1859_v43  ;;  %v4835_v52 = vrot.slane %v4807_v23, %v13882_v39  ;;  %v1927_v20 = vcombine.high %v1926_v31, %v1926_v31 }
 0x285   : > { %12764 = vmatprep.subr.bf16.mxu0 %v16493_v7  ;;  %v1934_v60 = vrot.slane %v1926_v31, %v13882_v39  ;;  %v2808_v27 = vcombine.low %v1852_v12, %v1866_v49  ;;  %v12458_v21 = vcombine.high %v1852_v12, %v1866_v49  ;;  %v4186_v32 = vrot.slane %v4172_v26, %v13882_v39 }
 0x286   : > { %v2816_v14 = vrot.slane %v2806_v57, %v13882_v39  ;;  %v2823_v56 = vrot.slane %v12457_v41, %v13882_v39  ;;  %v14648_v6 = vcombine.low %v4828_v42, %v4835_v52  ;;  %v1941_v30 = vrot.slane %v1927_v20, %v13882_v39  ;;  %v1327_v20 = vpop.permute.xlu1 %1326 }
 0x287   : > { %v2872_v58 = vcombine.low %v1919_v22, %v1934_v60  ;;  %v2830_v43 = vrot.slane %v2808_v27, %v13882_v39  ;;  %v2837_v23 = vrot.slane %v12458_v21, %v13882_v39  ;;  %v4187_v37 = vcombine.high %v4179_v44, %v4179_v44 }
 0x288   : > { %v2838_v36 = vcombine.low %v2816_v14, %v2823_v56  ;;  %v2924_v12 = vrot.slane %v1941_v30, %v13882_v39  ;;  %v4188_v49 = vcombine.high %v4186_v32, %v4186_v32  ;;  %v14657_v57 = vrot.slane %v4179_v44, %v13882_v39 }
 0x289   : > { %v2900_v31 = vrot.slane %v2872_v58, %v13882_v39  ;;  %v2839_v42 = vcombine.low %v2830_v43, %v2837_v23  ;;  %v4202_v22 = vrot.slane %v4186_v32, %v13882_v39  ;;  %v4209_v26 = vrot.slane %v4187_v37, %v13882_v39  ;;  %v3384_v58 = vpop.permute.xlu0 %3383 }
 0x28a   : > { %v14660_v41 = vrot.slane %v2838_v36, %v13882_v39  ;;  %v16499_v52 = vpack.c.bf16 %v14309_v34, %v14337_v8  ;;  %v14669_v27 = vrot.slane %v2924_v12, %v13882_v39  ;;  %v14672_v44 = vrot.slane %v4188_v49, %v13882_v39 }
 0x28b   : > { %v2902_v60 = vcombine.low %v2893_v51, %v2900_v31  ;;  %v4217_v36 = vcombine.high %v14657_v57, %v14657_v57  ;;  %v14679_v37 = vrot.slane %v2839_v42, %v13882_v39  ;;  %v4218_v34 = vcombine.high %v4202_v22, %v4202_v22 }
 0x28c   : > { %12755 = vmatmul.mubr.msk.bf16.vlgmr.msra.gmra.mrb[16].mxu0 %vm7480_vm1, %v16499_v52  ;;  %v4219_v8 = vcombine.high %v4209_v26, %v4209_v26  ;;  %v1991_v56 = vcombine.high %v1327_v20, %v1327_v20  ;;  %v1998_v30 = vrot.slane %v1327_v20, %v13882_v39  ;;  %v3980_v23 = vcombine.high %v14409_v2, %v14409_v2 }
 0x28d   : > { %12766 = vmatprep.mubr.msk.bf16.mxu0 %vm13491_vm0, %v16493_v7  ;;  %v2916_v21 = vrot.slane %v2902_v60, %v13882_v39  ;;  %v14684_v14 = vcombine.low %v4209_v26, %v4217_v36  ;;  %v14690_v43 = vcombine.low %v14672_v44, %v4218_v34  ;;  %v4954_v31 = vrot.slane %v14414_v18, %v13882_v39 }
 0x28e   : > { %v14687_v32 = vcombine.low %v4219_v8, %v4202_v22  ;;  %v2005_v42 = vrot.slane %v1991_v56, %v13882_v39  ;;  %v2006_v22 = vcombine.high %v1998_v30, %v1998_v30  ;;  %v2014_v52 = vrot.slane %v1998_v30, %v13882_v39 }
 0x28f   : > { %v14699_v12 = vcombine.low %v2909_v61, %v2916_v21  ;;  %v3987_v2 = vrot.slane %v3384_v58, %v13882_v39  ;;  %v2728_v18 = vcombine.low %v14495_v62, %v14506_v0 }
 0x290   : > { %v2007_v61 = vcombine.high %v2005_v42, %v2005_v42  ;;  %v2021_v20 = vrot.slane %v2005_v42, %v13882_v39  ;;  %v2028_v60 = vrot.slane %v2006_v22, %v13882_v39  ;;  %v2036_v36 = vcombine.high %v2014_v52, %v2014_v52 }
 0x291   : > { %v2987_v34 = vrot.slane %v2014_v52, %v13882_v39  ;;  %v3988_v8 = vcombine.high %v3987_v2, %v3987_v2  ;;  %v3995_v21 = vrot.slane %v3987_v2, %v13882_v39  ;;  %v3348_v58 = vpack.c.bf16 %v14433_v53, %v2728_v18  ;;  %v1325_v18 = vpop.permute.xlu1 %1324 }
 0x292   : > { %v14719_v30 = vrot.slane %v2007_v61, %v13882_v39  ;;  %v2037_v62 = vcombine.high %v2021_v20, %v2021_v20  ;;  %v2038_v0 = vcombine.high %v2028_v60, %v2028_v60  ;;  %v2995_v22 = vcombine.low %v2028_v60, %v2036_v36 }
 0x293   : > { %v14723_v42 = vrot.slane %v2987_v34, %v13882_v39  ;;  %v14726_v26 = vrot.slane %v3988_v8, %v13882_v39  ;;  %v4933_v52 = vcombine.low %v3980_v23, %v3995_v21  ;;  %12773 = vmatmul.mubr.msk.bf16.vlgmr.msra.gmra.mrb[12].mxu1 %vm7480_vm1, %v3348_v58  ;;  %v4899_v53 = vcombine.low %v14455_v25, %v14458_v24 }
 0x294   : > { %v14716_v56 = vpop.f32.mrb[8].mxu0  ;;  %v2996_v2 = vcombine.low %v2038_v0, %v2021_v20  ;;  %v14731_v35 = vcombine.low %v14719_v30, %v2037_v62  ;;  %v3005_v60 = vrot.slane %v2995_v22, %v13882_v39  ;;  %v16500_v36 = vrot.slane %v14394_v63, %v13882_v39  ;;  %12784 = vmatprep.mubr.msk.bf16.mxu1 %vm13491_vm0, %v16493_v7  ;;  %v3392_v62 = vpop.permute.xlu0 %3391 }
 0x295   : > { %v12738_v49 = vpop.f32.mrb[9].mxu0  ;;  %v4961_v23 = vrot.slane %v4933_v52, %v13882_v39  ;;  %v4907_v24 = vrot.slane %v4899_v53, %v13882_v39  ;;  %v16502_v8 = vrot.slane %v14311_v3, %v13882_v39  ;;  %v4725_v63 = vrot.slane %v14549_v48, %v13882_v39 }
 0x296   : > { %v14728_v51 = vpop.f32.mrb[10].mxu0  ;;  %v4900_v49 = vcombine.low %v14465_v55, %v14468_v45  ;;  %v4929_v34 = vrot.slane %v16500_v36, %v13882_v39  ;;  %v3012_v25 = vrot.slane %v2996_v2, %v13882_v39  ;;  %v16501_v45 = vrot.slane %v14314_v19, %v13882_v39 }
 0x297   : > { %v12739_v61 = vpop.f32.mrb[11].mxu0  ;;  %v14757_v0 = vcombine.low %v4954_v31, %v4961_v23  ;;  %v16503_v58 = vrot.slane %v14532_v28, %v13882_v39  ;;  %v1942_v52 = vcombine.high %v1325_v18, %v1325_v18  ;;  %v1949_v3 = vrot.slane %v1325_v18, %v13882_v39 }
 0x298   : > { %v4914_v55 = vrot.slane %v4900_v49, %v13882_v39  ;;  %v4710_v21 = vcombine.low %v16502_v8, %v16501_v45  ;;  %v14765_v2 = vcombine.low %v3005_v60, %v3012_v25  ;;  %v4123_v31 = vcombine.high %v3392_v62, %v3392_v62 }
 0x299   : > { %v4740_v22 = vrot.slane %v16503_v58, %v13882_v39  ;;  %v1956_v49 = vrot.slane %v1942_v52, %v13882_v39  ;;  %v4130_v61 = vrot.slane %v3392_v62, %v13882_v39  ;;  %v2039_v48 = vcombine.high %v14719_v30, %v14719_v30  ;;  %v1329_v52 = vpop.permute.xlu1 %1328 }
 0x29a   : > { %v4915_v53 = vcombine.low %v4907_v24, %v4914_v55  ;;  %v4718_v19 = vrot.slane %v4710_v21, %v13882_v39  ;;  %v3035_v28 = vrot.slane %v14765_v2, %v13882_v39  ;;  %v1957_v60 = vcombine.high %v1949_v3, %v1949_v3 }
 0x29b   : > { %v1958_v25 = vcombine.high %v1956_v49, %v1956_v49  ;;  %v1965_v24 = vrot.slane %v1949_v3, %v13882_v39  ;;  %v1972_v55 = vrot.slane %v1956_v49, %v13882_v39  ;;  %v4137_v18 = vrot.slane %v4123_v31, %v13882_v39 }
 0x29c   : > { %v5411_v23 = vpack.c.bf16 %v4929_v34, %v4915_v53  ;;  %v4726_v36 = vcombine.low %v4718_v19, %v4725_v63  ;;  %v1979_v21 = vrot.slane %v1957_v60, %v13882_v39  ;;  %v4138_v62 = vcombine.high %v4130_v61, %v4130_v61  ;;  %v3390_v60 = vpop.permute.xlu0 %3389 }
 0x29d   : > { %v1986_v30 = vrot.slane %v1958_v25, %v13882_v39  ;;  %v4139_v58 = vcombine.high %v4137_v18, %v4137_v18  ;;  %v4146_v34 = vrot.slane %v4130_v61, %v13882_v39  ;;  %v4153_v63 = vrot.slane %v4137_v18, %v13882_v39 }
 0x29e   : > { %v7861_v45 = vsel %vm7480_vm1, %v5411_v23, 0  ;;  %v5408_v8 = vpack.c.bf16 %v4740_v22, %v4726_v36  ;;  %v2932_v19 = vcombine.low %v1965_v24, %v1979_v21  ;;  %v12459_v3 = vcombine.high %v1965_v24, %v1979_v21 }
 0x29f   : > { %12783 = vmatpush3.bf16.xpose.msra.mxu1 %v7861_v45  ;;  %v4160_v49 = vrot.slane %v4138_v62, %v13882_v39  ;;  %v2934_v31 = vcombine.low %v1972_v55, %v1986_v30  ;;  %v12460_v23 = vcombine.high %v1972_v55, %v1986_v30  ;;  %v4167_v36 = vrot.slane %v4139_v58, %v13882_v39 }
 0x2a0   : > { %v7720_v53 = vsel %vm7480_vm1, %v5408_v8, 0  ;;  %12794 = vmatprep.subr.bf16.mxu1 %v16493_v7  ;;  %v14786_v22 = vpop.f32.mrb[12].mxu0  ;;  %v3019_v61 = vrot.slane %v14731_v35, %v13882_v39  ;;  %v2942_v18 = vrot.slane %v2932_v19, %v13882_v39  ;;  %v2949_v24 = vrot.slane %v12459_v3, %v13882_v39 }
 0x2a1   : > { %12765 = vmatpush3.bf16.xpose.msra.mxu0 %v7720_v53  ;;  %v12744_v25 = vpop.f32.mrb[13].mxu0  ;;  %v5119_v45 = vcombine.low %v4146_v34, %v4160_v49  ;;  %v12477_v8 = vcombine.high %v4146_v34, %v4160_v49  ;;  %v2956_v62 = vrot.slane %v2934_v31, %v13882_v39  ;;  %v2963_v55 = vrot.slane %v12460_v23, %v13882_v39  ;;  %v1333_v23 = vpop.permute.xlu1 %1332 }
 0x2a2   : > { %12776 = vmatprep.subr.bf16.mxu0 %v16493_v7  ;;  %v14794_v21 = vpop.f32.mrb[14].mxu0  ;;  %v5121_v30 = vcombine.low %v4153_v63, %v4167_v36  ;;  %v12478_v58 = vcombine.high %v4153_v63, %v4167_v36  ;;  %v2964_v35 = vcombine.low %v2942_v18, %v2949_v24  ;;  %v2046_v34 = vrot.slane %v1329_v52, %v13882_v39 }
 0x2a3   : > { %v12745_v53 = vpop.f32.mrb[15].mxu0  ;;  %v14799_v25 = vrot.slane %v5119_v45, %v13882_v39  ;;  %v14802_v19 = vrot.slane %v12477_v8, %v13882_v39  ;;  %v2965_v3 = vcombine.low %v2956_v62, %v2963_v55  ;;  %v4100_v63 = vcombine.high %v14486_v47, %v14486_v47 }
 0x2a4   : > { %v14806_v49 = vrot.slane %v5121_v30, %v13882_v39  ;;  %v14809_v31 = vrot.slane %v12478_v58, %v13882_v39  ;;  %v14814_v36 = vrot.slane %v2964_v35, %v13882_v39  ;;  %v2047_v18 = vcombine.high %v2046_v34, %v2046_v34  ;;  %v3400_v58 = vpop.permute.xlu0 %3399 }
 0x2a5   : > { %v2054_v24 = vrot.slane %v2046_v34, %v13882_v39  ;;  %v5080_v52 = vrot.slane %v14498_v29, %v13882_v39  ;;  %v14820_v45 = vrot.slane %v2965_v3, %v13882_v39  ;;  %v4107_v8 = vrot.slane %v3390_v60, %v13882_v39 }
 0x2a6   : > { %v16504_v62 = vrot.slane %v14375_v13, %v13882_v39  ;;  %v16505_v47 = vrot.slane %v14356_v38, %v13882_v39  ;;  %v4851_v30 = vrot.slane %v14648_v6, %v13882_v39  ;;  %v2061_v53 = vrot.slane %v2047_v18, %v13882_v39 }
 0x2a7   : > { %v2998_v35 = vcombine.low %v2039_v48, %v2054_v24  ;;  %v16506_v29 = vpack.c.bf16 %v14343_v11, %v14373_v4  ;;  %v16507_v13 = vrot.slane %v14636_v16, %v13882_v39  ;;  %v2111_v34 = vcombine.high %v1333_v23, %v1333_v23 }
 0x2a8   : > { %v4836_v55 = vcombine.low %v16505_v47, %v16504_v62  ;;  %v4108_v38 = vcombine.high %v4107_v8, %v4107_v8  ;;  %v4115_v3 = vrot.slane %v4107_v8, %v13882_v39  ;;  %v2118_v62 = vrot.slane %v1333_v23, %v13882_v39 }
 0x2a9   : > { %12767 = vmatmul.mubr.msk.bf16.vlgmr.msra.gmra.mrb[20].mxu0 %vm7480_vm1, %v16506_v29  ;;  %v4866_v60 = vrot.slane %v16507_v13, %v13882_v39  ;;  %v3026_v11 = vrot.slane %v2998_v35, %v13882_v39  ;;  %v3050_v4 = vrot.slane %v2061_v53, %v13882_v39  ;;  %v2125_v48 = vrot.slane %v2111_v34, %v13882_v39 }
 0x2aa   : > { %v4844_v6 = vrot.slane %v4836_v55, %v13882_v39  ;;  %12778 = vmatprep.mubr.msk.bf16.mxu0 %vm13491_vm0, %v16493_v7  ;;  %v4292_v18 = vcombine.high %v3400_v58, %v3400_v58  ;;  %v14849_v16 = vrot.slane %v4108_v38, %v13882_v39  ;;  %v5059_v24 = vcombine.low %v4100_v63, %v4115_v3 }
 0x2ab   : > { %v2126_v8 = vcombine.high %v2118_v62, %v2118_v62  ;;  %v3028_v29 = vcombine.low %v3019_v61, %v3026_v11  ;;  %v14852_v55 = vrot.slane %v3050_v4, %v13882_v39  ;;  %v2127_v23 = vcombine.high %v2125_v48, %v2125_v48 }
 0x2ac   : > { %v4852_v47 = vcombine.low %v4844_v6, %v4851_v30  ;;  %v2134_v13 = vrot.slane %v2118_v62, %v13882_v39  ;;  %v5087_v35 = vrot.slane %v5059_v24, %v13882_v39  ;;  %v5111_v53 = vrot.slane %v14849_v16, %v13882_v39 }
 0x2ad   : > { %v2141_v20 = vrot.slane %v2125_v48, %v13882_v39  ;;  %v3042_v38 = vrot.slane %v3028_v29, %v13882_v39  ;;  %v2148_v63 = vrot.slane %v2126_v8, %v13882_v39  ;;  %v14862_v61 = vrot.slane %v2127_v23, %v13882_v39 }
 0x2ae   : > { %v5410_v34 = vpack.c.bf16 %v4866_v60, %v4852_v47  ;;  %v2156_v30 = vcombine.high %v2134_v13, %v2134_v13  ;;  %v14864_v3 = vcombine.low %v5080_v52, %v5087_v35  ;;  %v3113_v11 = vrot.slane %v2134_v13, %v13882_v39 }
 0x2af   : > { %v2157_v62 = vcombine.high %v2141_v20, %v2141_v20  ;;  %v14871_v60 = vcombine.low %v3035_v28, %v3042_v38  ;;  %v2158_v4 = vcombine.high %v2148_v63, %v2148_v63  ;;  %v4299_v24 = vrot.slane %v3400_v58, %v13882_v39 }
 0x2b0   : > { %v7814_v6 = vsel %vm7480_vm1, %v5410_v34, 0  ;;  %v3121_v48 = vcombine.low %v2148_v63, %v2156_v30  ;;  %v14875_v47 = vrot.slane %v3113_v11, %v13882_v39  ;;  %v4306_v8 = vrot.slane %v4292_v18, %v13882_v39  ;;  %v1331_v63 = vpop.permute.xlu1 %1330 }
 0x2b1   : > { %12777 = vmatpush3.bf16.xpose.msra.mxu0 %v7814_v6  ;;  %v14878_v52 = vcombine.low %v14862_v61, %v2157_v62  ;;  %v2854_v29 = vcombine.low %v14660_v41, %v14679_v37  ;;  %v3353_v2 = vpack.c.bf16 %v14852_v55, %v14871_v60  ;;  %v3122_v28 = vcombine.low %v2158_v4, %v2141_v20 }
 0x2b2   : > { %12788 = vmatprep.subr.bf16.mxu0 %v16493_v7  ;;  %v3131_v23 = vrot.slane %v3121_v48, %v13882_v39  ;;  %v4307_v58 = vcombine.high %v4299_v24, %v4299_v24  ;;  %v4308_v13 = vcombine.high %v4306_v8, %v4306_v8  ;;  %v14888_v35 = vrot.slane %v4299_v24, %v13882_v39 }
 0x2b3   : > { %v4322_v34 = vrot.slane %v4306_v8, %v13882_v39  ;;  %v3350_v18 = vpack.c.bf16 %v14559_v5, %v2854_v29  ;;  %v3138_v38 = vrot.slane %v3122_v28, %v13882_v39  ;;  %v5025_v37 = vcombine.low %v14606_v54, %v14609_v10 }
 0x2b4   : > { %v4329_v41 = vrot.slane %v4307_v58, %v13882_v39  ;;  %v5026_v20 = vcombine.low %v14612_v50, %v14615_v46  ;;  %v14899_v30 = vrot.slane %v4308_v13, %v13882_v39  ;;  %v4337_v6 = vcombine.high %v14888_v35, %v14888_v35 }
 0x2b5   : > { %v4338_v62 = vcombine.high %v4322_v34, %v4322_v34  ;;  %v5300_v5 = vrot.slane %v14888_v35, %v13882_v39  ;;  %12785 = vmatmul.mubr.msk.bf16.vlgmr.msra.gmra.mrb[16].mxu1 %vm7480_vm1, %v3350_v18  ;;  %v14906_v11 = vcombine.low %v3131_v23, %v3138_v38  ;;  %v5033_v54 = vrot.slane %v5025_v37, %v13882_v39  ;;  %v3396_v18 = vpop.permute.xlu0 %3395 }
 0x2b6   : > { %v4339_v4 = vcombine.high %v4329_v41, %v4329_v41  ;;  %v5040_v10 = vrot.slane %v5026_v20, %v13882_v39  ;;  %12796 = vmatprep.mubr.msk.bf16.mxu1 %vm13491_vm0, %v16493_v7  ;;  %v14912_v50 = vcombine.low %v4329_v41, %v4337_v6  ;;  %v16508_v48 = vrot.slane %v14473_v1, %v13882_v39 }
 0x2b7   : > { %v14915_v46 = vcombine.low %v14899_v30, %v4338_v62  ;;  %v2062_v8 = vcombine.high %v1331_v63, %v1331_v63  ;;  %v16509_v29 = vpack.c.bf16 %v14544_v9, %v14567_v59  ;;  %v3161_v28 = vrot.slane %v14906_v11, %v13882_v39 }
 0x2b8   : > { %v5055_v24 = vrot.slane %v16508_v48, %v13882_v39  ;;  %v14927_v23 = vcombine.low %v4339_v4, %v4322_v34  ;;  %v5041_v58 = vcombine.low %v5033_v54, %v5040_v10  ;;  %v2069_v13 = vrot.slane %v1331_v63, %v13882_v39 }
 0x2b9   : > { %12779 = vmatmul.mubr.msk.bf16.vlgmr.msra.gmra.mrb[24].mxu0 %vm7480_vm1, %v16509_v29  ;;  %v5318_v1 = vrot.slane %v14912_v50, %v13882_v39  ;;  %v2076_v38 = vrot.slane %v2062_v8, %v13882_v39  ;;  %v4220_v9 = vcombine.high %v14672_v44, %v14672_v44  ;;  %v5206_v59 = vrot.slane %v14690_v43, %v13882_v39 }
 0x2ba   : > { %12790 = vmatprep.mubr.msk.bf16.mxu0 %vm13491_vm0, %v16493_v7  ;;  %v5325_v34 = vrot.slane %v14927_v23, %v13882_v39  ;;  %v5413_v41 = vpack.c.bf16 %v5055_v24, %v5041_v58  ;;  %v2077_v37 = vcombine.high %v2069_v13, %v2069_v13  ;;  %v2085_v20 = vrot.slane %v2069_v13, %v13882_v39  ;;  %v1335_v13 = vpop.permute.xlu1 %1334  ;;  %v16519_v23 = vld [vmem:[#allocation22_spill] sm:$0xff] }
 0x2bb   : > { %v2078_v63 = vcombine.high %v2076_v38, %v2076_v38  ;;  %v2092_v6 = vrot.slane %v2076_v38, %v13882_v39  ;;  %v4227_v62 = vrot.slane %v3396_v18, %v13882_v39  ;;  %v16510_v4 = vrot.slane %v14419_v40, %v13882_v39 }
 0x2bc   : > { %v16511_v44 = vrot.slane %v14411_v17, %v13882_v39  ;;  %v7955_v43 = vsel %vm7480_vm1, %v5413_v41, 0  ;;  %v2099_v10 = vrot.slane %v2077_v37, %v13882_v39  ;;  %v4977_v48 = vrot.slane %v14757_v0, %v13882_v39 }
 0x2bd   : > { %v16512_v24 = vrot.slane %v14726_v26, %v13882_v39  ;;  %12795 = vmatpush3.bf16.xpose.msra.mxu1 %v7955_v43  ;;  %v2106_v29 = vrot.slane %v2078_v63, %v13882_v39  ;;  %v4228_v40 = vcombine.high %v4227_v62, %v4227_v62  ;;  %v4235_v58 = vrot.slane %v4227_v62, %v13882_v39  ;;  %v3398_v43 = vpop.permute.xlu0 %3397 }
 0x2be   : > { %v4962_v54 = vcombine.low %v16511_v44, %v16510_v4  ;;  %v3058_v18 = vcombine.low %v2085_v20, %v2099_v10  ;;  %v12461_v38 = vcombine.high %v2085_v20, %v2099_v10  ;;  %v2159_v41 = vcombine.high %v14862_v61, %v14862_v61  ;;  %12806 = vmatprep.subr.bf16.mxu1 %v16493_v7 }
 0x2bf   : > { %v4992_v8 = vrot.slane %v16512_v24, %v13882_v39  ;;  %v3145_v0 = vrot.slane %v14878_v52, %v13882_v39  ;;  %v3060_v26 = vcombine.low %v2092_v6, %v2106_v29  ;;  %v12462_v37 = vcombine.high %v2092_v6, %v2106_v29 }
 0x2c0   : > { %v4970_v17 = vrot.slane %v4962_v54, %v13882_v39  ;;  %v14967_v63 = vrot.slane %v4228_v40, %v13882_v39  ;;  %v5185_v4 = vcombine.low %v4220_v9, %v4235_v58  ;;  %v3068_v62 = vrot.slane %v3058_v18, %v13882_v39 }
 0x2c1   : > { %v3075_v44 = vrot.slane %v12461_v38, %v13882_v39  ;;  %v2166_v20 = vrot.slane %v1335_v13, %v13882_v39  ;;  %v3082_v61 = vrot.slane %v3060_v26, %v13882_v39  ;;  %v3089_v52 = vrot.slane %v12462_v37, %v13882_v39  ;;  %v1339_v13 = vpop.permute.xlu1 %1338 }
 0x2c2   : > { %v4978_v54 = vcombine.low %v4970_v17, %v4977_v48  ;;  %v5213_v10 = vrot.slane %v5185_v4, %v13882_v39  ;;  %v5237_v6 = vrot.slane %v14967_v63, %v13882_v39  ;;  %v4243_v48 = vcombine.high %v3398_v43, %v3398_v43 }
 0x2c3   : > { %v3090_v24 = vcombine.low %v3068_v62, %v3075_v44  ;;  %v2167_v9 = vcombine.high %v2166_v20, %v2166_v20  ;;  %v2174_v40 = vrot.slane %v2166_v20, %v13882_v39  ;;  %v3091_v58 = vcombine.low %v3082_v61, %v3089_v52 }
 0x2c4   : > { %v5412_v29 = vpack.c.bf16 %v4992_v8, %v4978_v54  ;;  %v14978_v18 = vcombine.low %v5206_v59, %v5213_v10  ;;  %v4250_v17 = vrot.slane %v3398_v43, %v13882_v39  ;;  %v4257_v62 = vrot.slane %v4243_v48, %v13882_v39 }
 0x2c5   : > { %v14982_v38 = vrot.slane %v3090_v24, %v13882_v39  ;;  %v2181_v37 = vrot.slane %v2167_v9, %v13882_v39  ;;  %v3124_v4 = vcombine.low %v2159_v41, %v2174_v40  ;;  %v14987_v8 = vrot.slane %v3091_v58, %v13882_v39 }
 0x2c6   : > { %v7908_v26 = vsel %vm7480_vm1, %v5412_v29, 0  ;;  %v4258_v59 = vcombine.high %v4250_v17, %v4250_v17  ;;  %v4266_v44 = vrot.slane %v4250_v17, %v13882_v39  ;;  %v2231_v43 = vcombine.high %v1339_v13, %v1339_v13 }
 0x2c7   : > { %12789 = vmatpush3.bf16.xpose.msra.mxu0 %v7908_v26  ;;  %v3152_v54 = vrot.slane %v3124_v4, %v13882_v39  ;;  %v3176_v20 = vrot.slane %v2181_v37, %v13882_v39  ;;  %v2238_v61 = vrot.slane %v1339_v13, %v13882_v39  ;;  %v4259_v52 = vcombine.high %v4257_v62, %v4257_v62 }
 0x2c8   : > { %12800 = vmatprep.subr.bf16.mxu0 %v16493_v7  ;;  %v4273_v41 = vrot.slane %v4257_v62, %v13882_v39  ;;  %v4280_v10 = vrot.slane %v4258_v59, %v13882_v39  ;;  %v4340_v24 = vcombine.high %v14899_v30, %v14899_v30  ;;  %v2245_v40 = vrot.slane %v2231_v43, %v13882_v39 }
 0x2c9   : > { %v3154_v29 = vcombine.low %v3145_v0, %v3152_v54  ;;  %v15000_v9 = vrot.slane %v3176_v20, %v13882_v39  ;;  %v2246_v58 = vcombine.high %v2238_v61, %v2238_v61  ;;  %v4287_v48 = vrot.slane %v4259_v52, %v13882_v39 }
 0x2ca   : > { %v5245_v17 = vcombine.low %v4266_v44, %v4280_v10  ;;  %v12479_v13 = vcombine.high %v4266_v44, %v4280_v10  ;;  %v2254_v26 = vrot.slane %v2238_v61, %v13882_v39  ;;  %v2247_v4 = vcombine.high %v2245_v40, %v2245_v40  ;;  %v3402_v10 = vpop.permute.xlu0 %3401 }
 0x2cb   : > { %v3168_v37 = vrot.slane %v3154_v29, %v13882_v39  ;;  %v2261_v62 = vrot.slane %v2245_v40, %v13882_v39  ;;  %v2268_v30 = vrot.slane %v2246_v58, %v13882_v39  ;;  %v5247_v0 = vcombine.low %v4273_v41, %v4287_v48 }
 0x2cc   : > { %v12480_v59 = vcombine.high %v4273_v41, %v4287_v48  ;;  %v15009_v54 = vrot.slane %v5245_v17, %v13882_v39  ;;  %v15012_v20 = vrot.slane %v12479_v13, %v13882_v39  ;;  %v2275_v43 = vrot.slane %v2247_v4, %v13882_v39 }
 0x2cd   : > { %v15017_v44 = vcombine.low %v3161_v28, %v3168_v37  ;;  %v2276_v61 = vcombine.high %v2254_v26, %v2254_v26  ;;  %v2277_v52 = vcombine.high %v2261_v62, %v2261_v62  ;;  %v16513_v29 = vpack.c.bf16 %v14669_v27, %v14699_v12 }
 0x2ce   : > { %v15025_v41 = vrot.slane %v5247_v0, %v13882_v39  ;;  %v15028_v40 = vrot.slane %v12480_v59, %v13882_v39  ;;  %v2278_v58 = vcombine.high %v2268_v30, %v2268_v30  ;;  %v3239_v11 = vrot.slane %v2254_v26, %v13882_v39 }
 0x2cf   : > { %12791 = vmatmul.mubr.msk.bf16.vlgmr.msra.gmra.mrb[28].mxu0 %vm7480_vm1, %v16513_v29  ;;  %v3355_v28 = vpack.c.bf16 %v15000_v9, %v15017_v44  ;;  %v3247_v48 = vcombine.low %v2268_v30, %v2276_v61  ;;  %v15035_v17 = vcombine.low %v2275_v43, %v2277_v52  ;;  %v5332_v27 = vrot.slane %v14915_v46, %v13882_v39 }
 0x2d0   : > { %12802 = vmatprep.mubr.msk.bf16.mxu0 %vm13491_vm0, %v16493_v7  ;;  %v15040_v12 = vrot.slane %v3239_v11, %v13882_v39  ;;  %v3248_v13 = vcombine.low %v2278_v58, %v2261_v62  ;;  %v4347_v37 = vrot.slane %v3402_v10, %v13882_v39  ;;  %v2980_v26 = vcombine.low %v14814_v36, %v14820_v45  ;;  %v1341_v10 = vpop.permute.xlu1 %1340 }
 0x2d1   : > { %v3257_v4 = vrot.slane %v3247_v48, %v13882_v39  ;;  %v16514_v0 = vrot.slane %v14508_v15, %v13882_v39  ;;  %v16515_v30 = vrot.slane %v14490_v33, %v13882_v39  ;;  %v5103_v46 = vrot.slane %v14864_v3, %v13882_v39  ;;  %v1337_v48 = vpop.permute.xlu0 %1336 }
 0x2d2   : > { %v5118_v62 = vrot.slane %v5111_v53, %v13882_v39  ;;  %v3264_v61 = vrot.slane %v3248_v13, %v13882_v39  ;;  %v4348_v36 = vcombine.high %v4347_v37, %v4347_v37  ;;  %v4355_v45 = vrot.slane %v4347_v37, %v13882_v39 }
 0x2d3   : > { %v5088_v59 = vcombine.low %v16515_v30, %v16514_v0  ;;  %v3352_v52 = vpack.c.bf16 %v14723_v42, %v2980_v26  ;;  %v5151_v33 = vcombine.low %v14799_v25, %v14802_v19  ;;  %v5152_v3 = vcombine.low %v14806_v49, %v14809_v31 }
 0x2d4   : > { %v16516_v16 = vrot.slane %v14657_v57, %v13882_v39  ;;  %v15070_v29 = vcombine.low %v3257_v4, %v3264_v61  ;;  %v15073_v58 = vrot.slane %v4348_v36, %v13882_v39  ;;  %v5311_v42 = vcombine.low %v4340_v24, %v4355_v45 }
 0x2d5   : > { %v5096_v15 = vrot.slane %v5088_v59, %v13882_v39  ;;  %12797 = vmatmul.mubr.msk.bf16.vlgmr.msra.gmra.mrb[20].mxu1 %vm7480_vm1, %v3352_v52  ;;  %v2279_v11 = vcombine.high %v2275_v43, %v2275_v43  ;;  %v5159_v19 = vrot.slane %v5151_v33, %v13882_v39  ;;  %v5166_v49 = vrot.slane %v5152_v3, %v13882_v39 }
 0x2d6   : > { %v5181_v53 = vrot.slane %v16516_v16, %v13882_v39  ;;  %v3271_v57 = vrot.slane %v15035_v17, %v13882_v39  ;;  %12808 = vmatprep.mubr.msk.bf16.mxu1 %vm13491_vm0, %v16493_v7  ;;  %v3287_v31 = vrot.slane %v15070_v29, %v13882_v39  ;;  %v5339_v24 = vrot.slane %v5311_v42, %v13882_v39 }
 0x2d7   : > { %v5104_v25 = vcombine.low %v5096_v15, %v5103_v46  ;;  %v5363_v43 = vrot.slane %v15073_v58, %v13882_v39  ;;  %v2286_v13 = vrot.slane %v1341_v10, %v13882_v39  ;;  %v5167_v26 = vcombine.low %v5159_v19, %v5166_v49 }
 0x2d8   : > { %v2182_v4 = vcombine.high %v1337_v48, %v1337_v48  ;;  %v2189_v0 = vrot.slane %v1337_v48, %v13882_v39  ;;  %v15089_v30 = vcombine.low %v5332_v27, %v5339_v24  ;;  %v16517_v46 = vrot.slane %v14687_v32, %v13882_v39 }
 0x2d9   : > { %v5414_v37 = vpack.c.bf16 %v5118_v62, %v5104_v25  ;;  %v2287_v17 = vcombine.high %v2286_v13, %v2286_v13  ;;  %v2294_v59 = vrot.slane %v2286_v13, %v13882_v39  ;;  %v16518_v61 = vrot.slane %v14684_v14, %v13882_v39 }
 0x2da   : > { %v5415_v52 = vpack.c.bf16 %v5181_v53, %v5167_v26  ;;  %v2196_v62 = vrot.slane %v2182_v4, %v13882_v39  ;;  %v2197_v15 = vcombine.high %v2189_v0, %v2189_v0  ;;  %v2205_v3 = vrot.slane %v2189_v0, %v13882_v39 }
 0x2db   : > { %v5214_v36 = vcombine.low %v16518_v61, %v16517_v46  ;;  %v8002_v45 = vsel %vm7480_vm1, %v5414_v37, 0  ;;  %v2301_v27 = vrot.slane %v2287_v17, %v13882_v39  ;;  %v3250_v33 = vcombine.low %v2279_v11, %v2294_v59 }
 0x2dc   : > { %12801 = vmatpush3.bf16.xpose.msra.mxu0 %v8002_v45  ;;  %v8049_v32 = vsel %vm7480_vm1, %v5415_v52, 0  ;;  %v2198_v10 = vcombine.high %v2196_v62, %v2196_v62  ;;  %v2212_v14 = vrot.slane %v2196_v62, %v13882_v39  ;;  %v2219_v29 = vrot.slane %v2197_v15, %v13882_v39  ;;  %v16520_v52 = vld [vmem:[#allocation21_spill] sm:$0xff] }
 0x2dd   : > { %v5222_v16 = vrot.slane %v5214_v36, %v13882_v39  ;;  %12812 = vmatprep.subr.bf16.mxu0 %v16493_v7  ;;  %12807 = vmatpush3.bf16.xpose.msra.mxu1 %v8049_v32  ;;  %v3278_v53 = vrot.slane %v3250_v33, %v13882_v39  ;;  %v3302_v42 = vrot.slane %v2301_v27, %v13882_v39 }
 0x2de   : > { %v5229_v11 = vrot.slane %v14978_v18, %v13882_v39  ;;  %v5244_v48 = vrot.slane %v5237_v6, %v13882_v39  ;;  %v2226_v25 = vrot.slane %v2198_v10, %v13882_v39  ;;  %v3184_v19 = vcombine.low %v2205_v3, %v2219_v29  ;;  %12818 = vmatprep.subr.bf16.mxu1 %v16493_v7 }
 0x2df   : > { %v12463_v49 = vcombine.high %v2205_v3, %v2219_v29  ;;  %v3106_v24 = vcombine.low %v14982_v38, %v14987_v8  ;;  %v3280_v13 = vcombine.low %v3271_v57, %v3278_v53  ;;  %v15120_v37 = vrot.slane %v3302_v42, %v13882_v39 }
 0x2e0   : > { %v5230_v26 = vcombine.low %v5222_v16, %v5229_v11  ;;  %v5277_v18 = vcombine.low %v15009_v54, %v15012_v20  ;;  %v3186_v4 = vcombine.low %v2212_v14, %v2226_v25  ;;  %v12464_v63 = vcombine.high %v2212_v14, %v2226_v25 }
 0x2e1   : > { %v3194_v6 = vrot.slane %v3184_v19, %v13882_v39  ;;  %v3201_v0 = vrot.slane %v12463_v49, %v13882_v39  ;;  %v3294_v17 = vrot.slane %v3280_v13, %v13882_v39  ;;  %v3354_v38 = vpack.c.bf16 %v14875_v47, %v3106_v24 }
 0x2e2   : > { %v5416_v59 = vpack.c.bf16 %v5244_v48, %v5230_v26  ;;  %v5278_v8 = vcombine.low %v15025_v41, %v15028_v40  ;;  %v3208_v57 = vrot.slane %v3186_v4, %v13882_v39  ;;  %v3215_v46 = vrot.slane %v12464_v63, %v13882_v39  ;;  %v16521_v63 = vld [vmem:[#allocation23_spill] sm:$0xff] }
 0x2e3   : > { %v3216_v61 = vcombine.low %v3194_v6, %v3201_v0  ;;  %12803 = vmatmul.mubr.msk.bf16.vlgmr.msra.gmra.mrb[32].mxu0 %vm7480_vm1, %v3353_v2  ;;  %v5285_v54 = vrot.slane %v5277_v18, %v13882_v39  ;;  %v15137_v20 = vcombine.low %v3287_v31, %v3294_v17  ;;  %v5307_v41 = vrot.slane %v5300_v5, %v13882_v39 }
 0x2e4   : > { %v8096_v36 = vsel %vm7480_vm1, %v5416_v59, 0  ;;  %12814 = vmatprep.mubr.msk.bf16.mxu0 %vm13491_vm0, %v16493_v7  ;;  %v5292_v47 = vrot.slane %v5278_v8, %v13882_v39  ;;  %v3217_v40 = vcombine.low %v3208_v57, %v3215_v46  ;;  %12809 = vmatmul.mubr.msk.bf16.vlgmr.msra.gmra.mrb[24].mxu1 %vm7480_vm1, %v3354_v38  ;;  %v5340_v60 = vcombine.low %v5318_v1, %v5325_v34 }
 0x2e5   : > { %v3224_v55 = vrot.slane %v3216_v61, %v13882_v39  ;;  %12813 = vmatpush3.bf16.xpose.msra.mxu0 %v8096_v36  ;;  %v3357_v2 = vpack.c.bf16 %v15120_v37, %v15137_v20  ;;  %v5355_v5 = vrot.slane %v15089_v30, %v13882_v39  ;;  %12820 = vmatprep.mubr.msk.bf16.mxu1 %vm13491_vm0, %v16493_v7  ;;  %v13500_v19 = vmov 65535  }
 0x2e6   : > { %12824 = vmatprep.subr.bf16.mxu0 %v16493_v7  ;;  %v5293_v35 = vcombine.low %v5285_v54, %v5292_v47  ;;  %v3231_v31 = vrot.slane %v3217_v40, %v13882_v39  ;;  %v5348_v45 = vrot.slane %v5340_v60, %v13882_v39  ;;  %v5464_v50 = vcombine.high %v16519_v23, %v16519_v23 }
 0x2e7   : > { %v5471_v1 = vrot.slane %v16519_v23, %v13882_v39  ;;  %v5370_v30 = vrot.slane %v5363_v43, %v13882_v39  ;;  %v5520_v62 = vrot.slane %v16520_v52, %v13882_v39  ;;  %v8608_v9 = vsel %vm8606_vm2, 4294967295, %v13500_v19 }
 0x2e8   : > { %v5417_v34 = vpack.c.bf16 %v5307_v41, %v5293_v35  ;;  %v5356_v15 = vcombine.low %v5348_v45, %v5355_v5  ;;  %v3232_v27 = vcombine.low %v3224_v55, %v3231_v31  ;;  %v5478_v33 = vrot.slane %v5464_v50, %v13882_v39 }
 0x2e9   : > { %v5479_v3 = vcombine.high %v5471_v1, %v5471_v1  ;;  %v5487_v32 = vrot.slane %v5471_v1, %v13882_v39  ;;  %v5528_v10 = vcombine.high %v5520_v62, %v5520_v62  ;;  %v5536_v14 = vrot.slane %v5520_v62, %v13882_v39 }
 0x2ea   : > { %v8143_v16 = vsel %vm7480_vm1, %v5417_v34, 0  ;;  %v5418_v29 = vpack.c.bf16 %v5370_v30, %v5356_v15  ;;  %v3356_v58 = vpack.c.bf16 %v15040_v12, %v3232_v27  ;;  %v5480_v43 = vcombine.high %v5478_v33, %v5478_v33 }
 0x2eb   : > { %12819 = vmatpush3.bf16.xpose.msra.mxu1 %v8143_v16  ;;  %v5494_v53 = vrot.slane %v5478_v33, %v13882_v39  ;;  %v5501_v42 = vrot.slane %v5479_v3, %v13882_v39  ;;  %v5558_v11 = vcombine.high %v5536_v14, %v5536_v14  ;;  %v6479_v48 = vrot.slane %v5536_v14, %v13882_v39 }
 0x2ec   : > { %12815 = vmatmul.mubr.msk.bf16.vlgmr.msra.gmra.mrb[36].mxu0 %vm7480_vm1, %v3355_v28  ;;  %12830 = vmatprep.subr.bf16.mxu1 %v16493_v7  ;;  %v8190_v25 = vsel %vm7480_vm1, %v5418_v29, 0  ;;  %v5508_v12 = vrot.slane %v5480_v43, %v13882_v39  ;;  %v5513_v44 = vcombine.high %v16520_v52, %v16520_v52  ;;  %v5550_v13 = vrot.slane %v5528_v10, %v13882_v39 }
 0x2ed   : > { %12826 = vmatprep.mubr.msk.bf16.mxu0 %vm13491_vm0, %v16493_v7  ;;  %12825 = vmatpush3.bf16.xpose.msra.mxu0 %v8190_v25  ;;  %v6424_v28 = vcombine.low %v5487_v32, %v5501_v42  ;;  %v12481_v49 = vcombine.high %v5487_v32, %v5501_v42  ;;  %v6486_v24 = vrot.slane %v6479_v48, %v13882_v39  ;;  %v8234_v30 = vsel %vm8233_vm4, %v14716_v56, -inf }
 0x2ee   : > { %12836 = vmatprep.subr.bf16.mxu0 %v16493_v7  ;;  %v6426_v26 = vcombine.low %v5494_v53, %v5508_v12  ;;  %v12482_v18 = vcombine.high %v5494_v53, %v5508_v12  ;;  %v5527_v4 = vrot.slane %v5513_v44, %v13882_v39  ;;  %v5568_v6 = vrot.slane %v16521_v63, %v13882_v39 }
 0x2ef   : > { %v6434_v0 = vrot.slane %v6424_v28, %v13882_v39  ;;  %v6441_v17 = vrot.slane %v12481_v49, %v13882_v39  ;;  %v5560_v59 = vcombine.high %v5550_v13, %v5550_v13  ;;  %v6487_v38 = vcombine.low %v5550_v13, %v5558_v11  ;;  %8235 = vmax.xlane.f32.xlu0 %v8234_v30  ;;  %v15292_v30 = vpop.permute.xlu0 %5422 }
 0x2f0   : > { %v6448_v8 = vrot.slane %v6426_v26, %v13882_v39  ;;  %v6455_v57 = vrot.slane %v12482_v18, %v13882_v39  ;;  %v5529_v46 = vcombine.high %v5527_v4, %v5527_v4  ;;  %v5543_v61 = vrot.slane %v5527_v4, %v13882_v39 }
 0x2f1   : > { %v6456_v54 = vcombine.low %v6434_v0, %v6441_v17  ;;  %v5569_v36 = vcombine.high %v5568_v6, %v5568_v6  ;;  %v5576_v47 = vrot.slane %v5568_v6, %v13882_v39  ;;  %v6497_v41 = vrot.slane %v6487_v38, %v13882_v39  ;;  %v15262_v38 = vpop.permute.xlu1 %5424 }
 0x2f2   : > { %12821 = vmatmul.mubr.msk.bf16.vlgmr.msra.gmra.mrb[28].mxu1 %vm7480_vm1, %v3356_v58  ;;  %v6457_v40 = vcombine.low %v6448_v8, %v6455_v57  ;;  %v5557_v55 = vrot.slane %v5529_v46, %v13882_v39  ;;  %v5559_v60 = vcombine.high %v5543_v61, %v5543_v61  ;;  %v6488_v35 = vcombine.low %v5560_v59, %v5543_v61 }
 0x2f3   : > { %12832 = vmatprep.mubr.msk.bf16.mxu1 %vm13491_vm0, %v16493_v7  ;;  %v6464_v5 = vrot.slane %v6456_v54, %v13882_v39  ;;  %v5583_v31 = vrot.slane %v5569_v36, %v13882_v39  ;;  %v8238_v62 = vsel %vm8237_vm5, %v14728_v51, -inf  ;;  %v8241_v33 = vsel %vm8233_vm4, %v14786_v22, -inf }
 0x2f4   : > { %12827 = vmatmul.mubr.msk.bf16.vlgmr.msra.gmra.mrb[40].mxu0 %vm7480_vm1, %v3357_v2  ;;  %v6471_v45 = vrot.slane %v6457_v40, %v13882_v39  ;;  %v5561_v50 = vcombine.high %v5557_v55, %v5557_v55  ;;  %v6489_v1 = vcombine.low %v5557_v55, %v5559_v60  ;;  %v6504_v34 = vrot.slane %v6488_v35, %v13882_v39 }
 0x2f5   : > { %12838 = vmatprep.mubr.msk.bf16.mxu0 %vm13491_vm0, %v16493_v7  ;;  %v15227_v2 = vsel %vm8607_vm3, %v8608_v9, 0  ;;  %8239 = vmax.xlane.f32.xlu1 %v8238_v62  ;;  %v6542_v32 = vrot.slane %v5583_v31, %v13882_v39  ;;  %v8244_v53 = vsel %vm8237_vm5, %v14794_v21, -inf  ;;  %v15268_v46 = vpop.permute.xlu1 %5426 }
 0x2f6   : > { %v6472_v15 = vcombine.low %v6464_v5, %v6471_v45  ;;  %v6490_v27 = vcombine.low %v5561_v50, %v5576_v47  ;;  %v6511_v37 = vrot.slane %v6489_v1, %v13882_v39  ;;  %v6519_v20 = vcombine.low %v6497_v41, %v6504_v34  ;;  %8242 = vmax.xlane.f32.xlu0 %v8241_v33 }
 0x2f7   : > { %v6549_v43 = vrot.slane %v6542_v32, %v13882_v39 }
 0x2f8   : > { %v7464_v3 = vpack.c.bf16 %v6486_v24, %v6472_v15  ;;  %v6518_v16 = vrot.slane %v6490_v27, %v13882_v39  ;;  %v6527_v29 = vrot.slane %v6519_v20, %v13882_v39  ;;  %v15298_v27 = vpop.permute.xlu0 %5430 }
 0x2f9   : > { %v15274_v41 = vpop.permute.xlu1 %5428 }
 0x2fa   : > { %v8611_v10 = vand.u32 %v15227_v2, %v7464_v3  ;;  %v6520_v14 = vcombine.low %v6511_v37, %v6518_v16  ;;  %8245 = vmax.xlane.f32.xlu0 %v8244_v53 }
 0x2fc   : > { %12831 = vmatpush3.bf16.msra.mxu1 %v8611_v10  ;;  %v6534_v58 = vrot.slane %v6520_v14, %v13882_v39  ;;  %v15314_v53 = vpop.permute.xlu0 %5434 }
 0x2fd   : > { %12842 = vmatprep.subr.bf16.mxu1 %v16493_v7  ;;  %v15276_v40 = vpop.permute.xlu1 %5432 }
 0x2fe   : > { %v6535_v42 = vcombine.low %v6527_v29, %v6534_v58 }
 0x300   : > { %v7465_v11 = vpack.c.bf16 %v6549_v43, %v6535_v42 }
 0x301   : > { %v15278_v55 = vpop.permute.xlu1 %5436 }
 0x302   : > { %v8658_v48 = vand.u32 %v15227_v2, %v7465_v11 }
 0x304   : > { %12837 = vmatpush3.bf16.msra.mxu0 %v8658_v48 }
 0x305   : > { %12848 = vmatprep.subr.bf16.mxu0 %v16493_v7  ;;  %v15288_v1 = vpop.permute.xlu1 %5438 }
 0x309   : > { %v15296_v15 = vpop.permute.xlu1 %5440 }
 0x30d   : > { %v15308_v14 = vpop.permute.xlu1 %5444 }
 0x311   : > { %v15320_v48 = vpop.permute.xlu1 %5448 }
 0x312   : > { %16522 = vst [vmem:[#allocation22_spill] sm:$0xff] %v15320_v48 }
 0x330   : > { %v15242_v25 = vpop.f32.mrb[4].mxu1 }
 0x331   : > { %v12750_v12 = vpop.f32.mrb[5].mxu1  ;;  %v8247_v44 = vsel %vm8233_vm4, %v15242_v25, -inf }
 0x332   : > { %v15244_v19 = vpop.f32.mrb[6].mxu1  ;;  %8248 = vmax.xlane.f32.xlu1 %v8247_v44  ;;  %v15322_v12 = vpop.permute.xlu0 %5442 }
 0x333   : > { %v12751_v9 = vpop.f32.mrb[7].mxu1  ;;  %v8250_v28 = vsel %vm8237_vm5, %v15244_v19, -inf }
 0x334   : > { %8251 = vmax.xlane.f32.xlu0 %v8250_v28  ;;  %v15324_v9 = vpop.permute.xlu1 %5450 }
 0x335   : > { %16523 = vst [vmem:[#allocation21_spill] sm:$0xff] %v15324_v9 }
 0x336   : > { %v15326_v44 = vpop.permute.xlu0 %5446 }
 0x338   : > { %v15328_v28 = vpop.permute.xlu1 %5452 }
 0x339   : > { %16524 = vst [vmem:[#allocation23_spill] sm:$0xff] %v15328_v28 }
 0x349   : > { %v15250_v49 = vpop.f32.mrb[8].mxu1 }
 0x34a   : > { %v12762_v24 = vpop.f32.mrb[9].mxu1  ;;  %v8259_v8 = vsel %vm8233_vm4, %v15250_v49, -inf }
 0x34b   : > { %v15252_v13 = vpop.f32.mrb[10].mxu1 }
 0x34c   : > { %v12763_v26 = vpop.f32.mrb[11].mxu1  ;;  %v8262_v57 = vsel %vm8237_vm5, %v15252_v13, -inf }
 0x34d   : > { %v15332_v26 = vpop.permute.xlu0 %5454 }
 0x34e   : > { %16525 = vst [vmem:[#allocation24_spill] sm:$0xff] %v15332_v26 }
 0x35f   : > { %v15254_v18 = vpop.f32.mrb[16].mxu0 }
 0x360   : > { %v12756_v4 = vpop.f32.mrb[17].mxu0  ;;  %v8253_v6 = vsel %vm8233_vm4, %v15254_v18, -inf }
 0x361   : > { %8254 = vmax.xlane.f32.xlu1 %v8253_v6  ;;  %v15258_v0 = vpop.f32.mrb[18].mxu0 }
 0x362   : > { %v12757_v17 = vpop.f32.mrb[19].mxu0  ;;  %v8256_v59 = vsel %vm8237_vm5, %v15258_v0, -inf }
 0x363   : > { %8257 = vmax.xlane.f32.xlu0 %v8256_v59  ;;  %v15338_v59 = vpop.permute.xlu1 %5456 }
 0x364   : > { %16526 = vst [vmem:[#allocation25_spill] sm:$0xff] %v15338_v59 }
 0x365   : > { %8260 = vmax.xlane.f32.xlu1 %v8259_v8 }
 0x366   : > { %v15270_v61 = vpop.f32.mrb[12].mxu1 }
 0x367   : > { %8263 = vmax.xlane.f32.xlu0 %v8262_v57  ;;  %v12774_v54 = vpop.f32.mrb[13].mxu1  ;;  %v8271_v34 = vsel %vm8233_vm4, %v15270_v61, -inf }
 0x368   : > { %v15272_v36 = vpop.f32.mrb[14].mxu1 }
 0x369   : > { %v12775_v47 = vpop.f32.mrb[15].mxu1  ;;  %v8274_v62 = vsel %vm8237_vm5, %v15272_v36, -inf }
 0x37c   : > { %v15280_v60 = vpop.f32.mrb[20].mxu0  ;;  %v8236_v54 = vpop.xlane.xlu0 %8235 }
 0x37d   : > { %v12768_v35 = vpop.f32.mrb[21].mxu0  ;;  %v8265_v5 = vsel %vm8233_vm4, %v15280_v60, -inf }
 0x37e   : > { %8266 = vmax.xlane.f32.xlu1 %v8265_v5  ;;  %v15284_v31 = vpop.f32.mrb[22].mxu0  ;;  %v8331_v5 = vsub.f32 %v14716_v56, %v8236_v54 }
 0x37f   : > { %v12769_v45 = vpop.f32.mrb[23].mxu0  ;;  %v8268_v50 = vsel %vm8237_vm5, %v15284_v31, -inf }
 0x380   : > { %8269 = vmax.xlane.f32.xlu0 %v8268_v50 }
 0x382   : > { %8272 = vmax.xlane.f32.xlu1 %v8271_v34  ;;  %v8240_v47 = vpop.xlane.xlu1 %8239 }
 0x384   : > { %8275 = vmax.xlane.f32.xlu0 %v8274_v62  ;;  %v8332_v62 = vsub.f32 %v14728_v51, %v8240_v47 }
 0x388   : > { %v15300_v37 = vpop.f32.mrb[16].mxu1 }
 0x389   : > { %v12786_v20 = vpop.f32.mrb[17].mxu1  ;;  %v8283_v42 = vsel %vm8233_vm4, %v15300_v37, -inf }
 0x38a   : > { %v15302_v33 = vpop.f32.mrb[18].mxu1 }
 0x38b   : > { %v12787_v16 = vpop.f32.mrb[19].mxu1  ;;  %v8286_v11 = vsel %vm8237_vm5, %v15302_v33, -inf }
 0x38c   : > { %v15304_v3 = vpop.f32.mrb[24].mxu0 }
 0x38d   : > { %v12780_v32 = vpop.f32.mrb[25].mxu0  ;;  %v8277_v10 = vsel %vm8233_vm4, %v15304_v3, -inf }
 0x38e   : > { %8278 = vmax.xlane.f32.xlu1 %v8277_v10  ;;  %v15310_v29 = vpop.f32.mrb[26].mxu0  ;;  %v8363_v32 = vmul.f32 1.442695, %v8331_v5  ;;  %v8243_v10 = vpop.xlane.xlu0 %8242 }
 0x38f   : > { %v12781_v58 = vpop.f32.mrb[27].mxu0  ;;  %v8280_v43 = vsel %vm8237_vm5, %v15310_v29, -inf }
 0x390   : > { %8281 = vmax.xlane.f32.xlu0 %v8280_v43  ;;  %v8365_v58 = vmul.f32 1.442695, %v8332_v62  ;;  %13158 = vpow2.f32 %v8363_v32  ;;  %v8333_v43 = vsub.f32 %v14786_v22, %v8243_v10 }
 0x392   : > { %8284 = vmax.xlane.f32.xlu1 %v8283_v42  ;;  %13160 = vpow2.f32 %v8365_v58  ;;  %v8246_v56 = vpop.xlane.xlu0 %8245  ;;  %v8367_v5 = vmul.f32 1.442695, %v8333_v43 }
 0x393   : > { %v8334_v51 = vsub.f32 %v14794_v21, %v8246_v56 }
 0x394   : > { %8287 = vmax.xlane.f32.xlu0 %v8286_v11  ;;  %13162 = vpow2.f32 %v8367_v5 }
 0x39a   : > { %v15370_v62 = vpop.eup %13158 }
 0x39b   : > { %v8427_v10 = vsel %vm8233_vm4, %v15370_v62, 0.0 }
 0x3a2   : > { %v15330_v24 = vpop.f32.mrb[28].mxu0 }
 0x3a3   : > { %v12792_v4 = vpop.f32.mrb[29].mxu0  ;;  %v8289_v6 = vsel %vm8233_vm4, %v15330_v24, -inf }
 0x3a4   : > { %8290 = vmax.xlane.f32.xlu1 %v8289_v6  ;;  %v15336_v17 = vpop.f32.mrb[30].mxu0 }
 0x3a5   : > { %v12793_v8 = vpop.f32.mrb[31].mxu0  ;;  %v8292_v57 = vsel %vm8237_vm5, %v15336_v17, -inf }
 0x3a6   : > { %8293 = vmax.xlane.f32.xlu0 %v8292_v57 }
 0x3a8   : > { %v15342_v35 = vpop.f32.mrb[20].mxu1 }
 0x3a9   : > { %v12798_v45 = vpop.f32.mrb[21].mxu1  ;;  %v8295_v50 = vsel %vm8233_vm4, %v15342_v35, -inf }
 0x3aa   : > { %v15347_v34 = vpop.f32.mrb[22].mxu1  ;;  %8296 = vmax.xlane.f32.xlu1 %v8295_v50 }
 0x3ab   : > { %v12799_v20 = vpop.f32.mrb[23].mxu1  ;;  %v8298_v16 = vsel %vm8237_vm5, %v15347_v34, -inf }
 0x3ac   : > { %8299 = vmax.xlane.f32.xlu0 %v8298_v16  ;;  %v8369_v20 = vmul.f32 1.442695, %v8334_v51  ;;  %v15372_v16 = vpop.eup %13160 }
 0x3ad   : > { %v8430_v43 = vsel %vm8237_vm5, %v15372_v16, 0.0  ;;  %v15392_v5 = vpop.eup %13162 }
 0x3ae   : > { %13164 = vpow2.f32 %v8369_v20 }
 0x3b6   : > { %v15353_v42 = vpop.f32.mrb[32].mxu0 }
 0x3b7   : > { %v12804_v11 = vpop.f32.mrb[33].mxu0  ;;  %v8301_v4 = vsel %vm8233_vm4, %v15353_v42, -inf  ;;  %v15360_v8 = vpop.f32.mrb[24].mxu1 }
 0x3b8   : > { %8302 = vmax.xlane.f32.xlu1 %v8301_v4  ;;  %v15358_v6 = vpop.f32.mrb[34].mxu0  ;;  %v12810_v54 = vpop.f32.mrb[25].mxu1  ;;  %v8307_v22 = vsel %vm8233_vm4, %v15360_v8, -inf }
 0x3b9   : > { %v12805_v57 = vpop.f32.mrb[35].mxu0  ;;  %v8304_v47 = vsel %vm8237_vm5, %v15358_v6, -inf  ;;  %v15366_v45 = vpop.f32.mrb[26].mxu1 }
 0x3ba   : > { %8305 = vmax.xlane.f32.xlu0 %v8304_v47  ;;  %v12811_v50 = vpop.f32.mrb[27].mxu1  ;;  %v8310_v21 = vsel %vm8237_vm5, %v15366_v45, -inf }
 0x3bc   : > { %8308 = vmax.xlane.f32.xlu1 %v8307_v22 }
 0x3be   : > { %8311 = vmax.xlane.f32.xlu0 %v8310_v21 }
 0x3bf   : > { %v15374_v32 = vpop.f32.mrb[36].mxu0 }
 0x3c0   : > { %v12816_v58 = vpop.f32.mrb[37].mxu0  ;;  %8428 = vadd.xlane.f32.xlu1 %v8427_v10  ;;  %v8313_v4 = vsel %vm8233_vm4, %v15374_v32, -inf }
 0x3c1   : > { %v15378_v56 = vpop.f32.mrb[38].mxu0  ;;  %v15398_v58 = vpop.eup %13164 }
 0x3c2   : > { %v12817_v11 = vpop.f32.mrb[39].mxu0  ;;  %8431 = vadd.xlane.f32.xlu0 %v8430_v43  ;;  %v8316_v57 = vsel %vm8237_vm5, %v15378_v56, -inf }
 0x3c4   : > { %8314 = vmax.xlane.f32.xlu1 %v8313_v4  ;;  %v8433_v4 = vsel %vm8233_vm4, %v15392_v5, 0.0 }
 0x3c5   : > { %v15384_v51 = vpop.f32.mrb[28].mxu1 }
 0x3c6   : > { %8317 = vmax.xlane.f32.xlu0 %v8316_v57  ;;  %v12822_v54 = vpop.f32.mrb[29].mxu1  ;;  %v8319_v47 = vsel %vm8233_vm4, %v15384_v51, -inf  ;;  %v8436_v57 = vsel %vm8237_vm5, %v15398_v58, 0.0 }
 0x3c7   : > { %v15390_v22 = vpop.f32.mrb[30].mxu1  ;;  %v15394_v50 = vpop.f32.mrb[40].mxu0 }
 0x3c8   : > { %8320 = vmax.xlane.f32.xlu1 %v8319_v47  ;;  %v12823_v21 = vpop.f32.mrb[31].mxu1  ;;  %v8322_v20 = vsel %vm8237_vm5, %v15390_v22, -inf  ;;  %v12828_v10 = vpop.f32.mrb[41].mxu0  ;;  %v8325_v54 = vsel %vm8233_vm4, %v15394_v50, -inf }
 0x3c9   : > { %v15400_v43 = vpop.f32.mrb[42].mxu0  ;;  %v8252_v47 = vpop.xlane.xlu0 %8251 }
 0x3ca   : > { %8323 = vmax.xlane.f32.xlu0 %v8322_v20  ;;  %v12829_v11 = vpop.f32.mrb[43].mxu0  ;;  %v8328_v21 = vsel %vm8237_vm5, %v15400_v43, -inf  ;;  %v8336_v10 = vsub.f32 %v15244_v19, %v8252_v47 }
 0x3cc   : > { %8434 = vadd.xlane.f32.xlu1 %v8433_v4  ;;  %v8373_v20 = vmul.f32 1.442695, %v8336_v10 }
 0x3ce   : > { %8437 = vadd.xlane.f32.xlu0 %v8436_v57  ;;  %13166 = vpow2.f32 %v8373_v20  ;;  %v8249_v57 = vpop.xlane.xlu1 %8248 }
 0x3d0   : > { %8326 = vmax.xlane.f32.xlu1 %v8325_v54  ;;  %v8335_v54 = vsub.f32 %v15242_v25, %v8249_v57 }
 0x3d2   : > { %8329 = vmax.xlane.f32.xlu0 %v8328_v21  ;;  %v8371_v26 = vmul.f32 1.442695, %v8335_v54 }
 0x3d4   : > { %13168 = vpow2.f32 %v8371_v26 }
 0x3d8   : > { %v15411_v11 = vpop.eup %13166 }
 0x3d9   : > { %v8442_v4 = vsel %vm8237_vm5, %v15411_v11, 0.0 }
 0x3da   : > { %8443 = vadd.xlane.f32.xlu0 %v8442_v4 }
 0x3de   : > { %v15422_v57 = vpop.eup %13168 }
 0x3e1   : > { %5460 = vrot.lane.b32.xlu1 %v16520_v52, %s13499_s13 }
 0x3ee   : > { %v8255_v59 = vpop.xlane.xlu1 %8254 }
 0x3ef   : > { %v8337_v9 = vsub.f32 %v15254_v18, %v8255_v59 }
 0x3f0   : > { %v8258_v19 = vpop.xlane.xlu0 %8257 }
 0x3f1   : > { %v8338_v47 = vsub.f32 %v15258_v0, %v8258_v19  ;;  %v8375_v10 = vmul.f32 1.442695, %v8337_v9  ;;  %v8439_v0 = vsel %vm8233_vm4, %v15422_v57, 0.0 }
 0x3f2   : > { %v8261_v21 = vpop.xlane.xlu1 %8260 }
 0x3f3   : > { %v8377_v20 = vmul.f32 1.442695, %v8338_v47  ;;  %v8339_v28 = vsub.f32 %v15250_v49, %v8261_v21 }
 0x3f4   : > { %v8264_v48 = vpop.xlane.xlu0 %8263 }
 0x3f5   : > { %13170 = vpow2.f32 %v8377_v20  ;;  %v8340_v52 = vsub.f32 %v15252_v13, %v8264_v48  ;;  %v8379_v4 = vmul.f32 1.442695, %v8339_v28 }
 0x3f6   : > { %13172 = vpow2.f32 %v8375_v10 }
 0x3f7   : > { %v8381_v25 = vmul.f32 1.442695, %v8340_v52 }
 0x3f9   : > { %13174 = vpow2.f32 %v8381_v25 }
 0x3fa   : > { %13176 = vpow2.f32 %v8379_v4 }
 0x3ff   : > { %v15424_v18 = vpop.eup %13170 }
 0x400   : > { %v8448_v9 = vsel %vm8237_vm5, %v15424_v18, 0.0  ;;  %v15430_v49 = vpop.eup %13172 }
 0x401   : > { %8449 = vadd.xlane.f32.xlu0 %v8448_v9  ;;  %v8445_v13 = vsel %vm8233_vm4, %v15430_v49, 0.0 }
 0x403   : > { %v15432_v26 = vpop.eup %13174 }
 0x404   : > { %v8454_v48 = vsel %vm8237_vm5, %v15432_v26, 0.0  ;;  %v15438_v28 = vpop.eup %13176 }
 0x405   : > { %8440 = vadd.xlane.f32.xlu1 %v8439_v0  ;;  %8455 = vadd.xlane.f32.xlu0 %v8454_v48  ;;  %v8451_v59 = vsel %vm8233_vm4, %v15438_v28, 0.0 }
 0x409   : > { %8446 = vadd.xlane.f32.xlu1 %v8445_v13 }
 0x40b   : > { %v8267_v54 = vpop.xlane.xlu1 %8266 }
 0x40c   : > { %v8341_v19 = vsub.f32 %v15280_v60, %v8267_v54 }
 0x40d   : > { %8452 = vadd.xlane.f32.xlu1 %v8451_v59  ;;  %v8270_v47 = vpop.xlane.xlu0 %8269 }
 0x40e   : > { %v8383_v21 = vmul.f32 1.442695, %v8341_v19  ;;  %v8342_v10 = vsub.f32 %v15284_v31, %v8270_v47 }
 0x40f   : > { %v8273_v20 = vpop.xlane.xlu1 %8272 }
 0x410   : > { %13178 = vpow2.f32 %v8383_v21  ;;  %v8385_v52 = vmul.f32 1.442695, %v8342_v10  ;;  %v8343_v4 = vsub.f32 %v15270_v61, %v8273_v20 }
 0x411   : > { %v8276_v25 = vpop.xlane.xlu0 %8275 }
 0x412   : > { %13180 = vpow2.f32 %v8385_v52  ;;  %v8387_v0 = vmul.f32 1.442695, %v8343_v4  ;;  %v8344_v9 = vsub.f32 %v15272_v36, %v8276_v25 }
 0x414   : > { %13182 = vpow2.f32 %v8387_v0  ;;  %v8389_v13 = vmul.f32 1.442695, %v8344_v9 }
 0x416   : > { %13184 = vpow2.f32 %v8389_v13 }
 0x41a   : > { %v15446_v48 = vpop.eup %13178 }
 0x41b   : > { %v8279_v60 = vpop.xlane.xlu1 %8278  ;;  %v8457_v31 = vsel %vm8233_vm4, %v15446_v48, 0.0 }
 0x41c   : > { %v8345_v59 = vsub.f32 %v15304_v3, %v8279_v60  ;;  %v15451_v54 = vpop.eup %13180  ;;  %8458 = vadd.xlane.f32.xlu0 %v8457_v31 }
 0x41d   : > { %v8282_v19 = vpop.xlane.xlu0 %8281  ;;  %v8460_v36 = vsel %vm8237_vm5, %v15451_v54, 0.0 }
 0x41e   : > { %v8391_v61 = vmul.f32 1.442695, %v8345_v59  ;;  %v8346_v47 = vsub.f32 %v15310_v29, %v8282_v19  ;;  %v15456_v21 = vpop.eup %13182  ;;  %8461 = vadd.xlane.f32.xlu1 %v8460_v36 }
 0x41f   : > { %v8285_v10 = vpop.xlane.xlu1 %8284  ;;  %v8463_v52 = vsel %vm8233_vm4, %v15456_v21, 0.0 }
 0x420   : > { %13186 = vpow2.f32 %v8391_v61  ;;  %v8393_v20 = vmul.f32 1.442695, %v8346_v47  ;;  %v8347_v3 = vsub.f32 %v15300_v37, %v8285_v10  ;;  %v15461_v4 = vpop.eup %13184  ;;  %8464 = vadd.xlane.f32.xlu0 %v8463_v52 }
 0x421   : > { %v8288_v25 = vpop.xlane.xlu0 %8287  ;;  %v8466_v9 = vsel %vm8237_vm5, %v15461_v4, 0.0 }
 0x422   : > { %13188 = vpow2.f32 %v8393_v20  ;;  %v8395_v29 = vmul.f32 1.442695, %v8347_v3  ;;  %v8348_v0 = vsub.f32 %v15302_v33, %v8288_v25  ;;  %8467 = vadd.xlane.f32.xlu1 %v8466_v9 }
 0x424   : > { %13190 = vpow2.f32 %v8395_v29  ;;  %v8397_v13 = vmul.f32 1.442695, %v8348_v0  ;;  %v5584_v29 = vcombine.high %v15292_v30, %v15292_v30 }
 0x426   : > { %13192 = vpow2.f32 %v8397_v13 }
 0x42a   : > { %v15466_v60 = vpop.eup %13186 }
 0x42b   : > { %16527 = vst [vmem:[#allocation26_spill] sm:$0xff] %v15466_v60  ;;  %v8469_v37 = vsel %vm8233_vm4, %v15466_v60, 0.0 }
 0x42c   : > { %v15470_v59 = vpop.eup %13188  ;;  %8470 = vadd.xlane.f32.xlu0 %v8469_v37  ;;  %v5598_v37 = vrot.slane %v5584_v29, %v13882_v39 }
 0x42d   : > { %16528 = vst [vmem:[#allocation27_spill] sm:$0xff] %v15470_v59  ;;  %v8472_v19 = vsel %vm8237_vm5, %v15470_v59, 0.0 }
 0x42e   : > { %v15472_v31 = vpop.eup %13190 }
 0x42f   : > { %16529 = vst [vmem:[#allocation28_spill] sm:$0xff] %v15472_v31  ;;  %v8475_v33 = vsel %vm8233_vm4, %v15472_v31, 0.0 }
 0x430   : > { %v15478_v61 = vpop.eup %13192  ;;  %8476 = vadd.xlane.f32.xlu1 %v8475_v33  ;;  %8473 = vadd.xlane.f32.xlu0 %v8472_v19  ;;  %v5633_v19 = vcombine.high %v15262_v38, %v15262_v38 }
 0x431   : > { %16530 = vst [vmem:[#allocation29_spill] sm:$0xff] %v15478_v61  ;;  %v8291_v47 = vpop.xlane.xlu1 %8290  ;;  %v8478_v52 = vsel %vm8237_vm5, %v15478_v61, 0.0 }
 0x432   : > { %v8349_v36 = vsub.f32 %v15330_v24, %v8291_v47  ;;  %v5591_v24 = vrot.slane %v15292_v30, %v13882_v39  ;;  %v5647_v30 = vrot.slane %v5633_v19, %v13882_v39 }
 0x433   : > { %v8294_v10 = vpop.xlane.xlu0 %8293 }
 0x434   : > { %v8399_v20 = vmul.f32 1.442695, %v8349_v36  ;;  %v8350_v3 = vsub.f32 %v15336_v17, %v8294_v10  ;;  %8479 = vadd.xlane.f32.xlu0 %v8478_v52  ;;  %v5599_v36 = vcombine.high %v5591_v24, %v5591_v24  ;;  %v5600_v10 = vcombine.high %v5598_v37, %v5598_v37 }
 0x436   : > { %13194 = vpow2.f32 %v8399_v20  ;;  %v8401_v25 = vmul.f32 1.442695, %v8350_v3  ;;  %v5621_v29 = vrot.slane %v5599_v36, %v13882_v39  ;;  %v15513_v36 = vrot.slane %v15268_v46, %v13882_v39 }
 0x437   : > { %v8297_v0 = vpop.xlane.xlu1 %8296 }
 0x438   : > { %13196 = vpow2.f32 %v8401_v25  ;;  %v8351_v9 = vsub.f32 %v15342_v35, %v8297_v0  ;;  %v5640_v35 = vrot.slane %v15262_v38, %v13882_v39  ;;  %v5614_v25 = vrot.slane %v5598_v37, %v13882_v39 }
 0x439   : > { %v8300_v13 = vpop.xlane.xlu0 %8299  ;;  %v5628_v0 = vrot.slane %v5600_v10, %v13882_v39 }
 0x43a   : > { %v8403_v17 = vmul.f32 1.442695, %v8351_v9  ;;  %v8352_v33 = vsub.f32 %v15347_v34, %v8300_v13  ;;  %v5607_v34 = vrot.slane %v5591_v24, %v13882_v39  ;;  %v5648_v38 = vcombine.high %v5640_v35, %v5640_v35 }
 0x43b   : > { %v5649_v13 = vcombine.high %v5647_v30, %v5647_v30 }
 0x43c   : > { %13198 = vpow2.f32 %v8403_v17  ;;  %v8405_v47 = vmul.f32 1.442695, %v8352_v33  ;;  %v12483_v24 = vcombine.high %v5607_v34, %v5621_v29 }
 0x43e   : > { %13200 = vpow2.f32 %v8405_v47  ;;  %v6550_v47 = vcombine.low %v5607_v34, %v5621_v29  ;;  %v5670_v34 = vrot.slane %v5648_v38, %v13882_v39 }
 0x440   : > { %v15493_v20 = vpop.eup %13194 }
 0x441   : > { %16531 = vst [vmem:[#allocation30_spill] sm:$0xff] %v15493_v20  ;;  %v8481_v3 = vsel %vm8233_vm4, %v15493_v20, 0.0  ;;  %v12484_v20 = vcombine.high %v5614_v25, %v5628_v0 }
 0x442   : > { %v15500_v52 = vpop.eup %13196  ;;  %8482 = vadd.xlane.f32.xlu0 %v8481_v3  ;;  %v6552_v3 = vcombine.low %v5614_v25, %v5628_v0  ;;  %v5677_v25 = vrot.slane %v5649_v13, %v13882_v39 }
 0x443   : > { %16532 = vst [vmem:[#allocation31_spill] sm:$0xff] %v15500_v52  ;;  %v8484_v9 = vsel %vm8237_vm5, %v15500_v52, 0.0 }
 0x444   : > { %8485 = vadd.xlane.f32.xlu1 %v8484_v9 }
 0x445   : > { %v8303_v17 = vpop.xlane.xlu1 %8302 }
 0x446   : > { %v8353_v33 = vsub.f32 %v15353_v42, %v8303_v17  ;;  %v15509_v19 = vpop.eup %13198  ;;  %v5656_v42 = vrot.slane %v5640_v35, %v13882_v39  ;;  %v5663_v17 = vrot.slane %v5647_v30, %v13882_v39  ;;  %v6574_v35 = vrot.slane %v6552_v3, %v13882_v39 }
 0x447   : > { %16533 = vst [vmem:[#allocation32_spill] sm:$0xff] %v15509_v19  ;;  %v8306_v37 = vpop.xlane.xlu0 %8305  ;;  %v8487_v9 = vsel %vm8233_vm4, %v15509_v19, 0.0  ;;  %v6581_v30 = vrot.slane %v12484_v20, %v13882_v39 }
 0x448   : > { %v8407_v10 = vmul.f32 1.442695, %v8353_v33  ;;  %v8354_v52 = vsub.f32 %v15358_v6, %v8306_v37  ;;  %v15518_v61 = vpop.eup %13200  ;;  %8488 = vadd.xlane.f32.xlu0 %v8487_v9  ;;  %v6560_v33 = vrot.slane %v6550_v47, %v13882_v39  ;;  %v6567_v37 = vrot.slane %v12483_v24, %v13882_v39 }
 0x449   : > { %16534 = vst [vmem:[#allocation33_spill] sm:$0xff] %v15518_v61  ;;  %v8309_v29 = vpop.xlane.xlu1 %8308  ;;  %v8490_v6 = vsel %vm8237_vm5, %v15518_v61, 0.0  ;;  %v5680_v61 = vcombine.high %v5670_v34, %v5670_v34  ;;  %v5681_v24 = vcombine.high %v5677_v25, %v5677_v25  ;;  %v6583_v3 = vcombine.low %v6574_v35, %v6581_v30 }
 0x44a   : > { %13202 = vpow2.f32 %v8407_v10  ;;  %v8409_v46 = vmul.f32 1.442695, %v8354_v52  ;;  %v8355_v0 = vsub.f32 %v15360_v8, %v8309_v29  ;;  %8491 = vadd.xlane.f32.xlu1 %v8490_v6  ;;  %v5678_v52 = vcombine.high %v5656_v42, %v5656_v42 }
 0x44b   : > { %v8312_v38 = vpop.xlane.xlu0 %8311  ;;  %v5696_v8 = vrot.slane %v15513_v36, %v13882_v39  ;;  %v5679_v29 = vcombine.high %v5663_v17, %v5663_v17  ;;  %v6582_v19 = vcombine.low %v6560_v33, %v6567_v37  ;;  %v6614_v31 = vcombine.low %v5680_v61, %v5663_v17 }
 0x44c   : > { %13204 = vpow2.f32 %v8409_v46  ;;  %v8411_v13 = vmul.f32 1.442695, %v8355_v0  ;;  %v8356_v10 = vsub.f32 %v15366_v45, %v8312_v38  ;;  %v6605_v46 = vrot.slane %v5656_v42, %v13882_v39 }
 0x44d   : > { %v8429_v9 = vpop.xlane.xlu1 %8428  ;;  %v6613_v45 = vcombine.low %v5670_v34, %v5678_v52  ;;  %v6615_v6 = vcombine.low %v5677_v25, %v5679_v29  ;;  %v6616_v59 = vcombine.low %v5681_v24, %v5696_v8  ;;  %v5689_v34 = vcombine.high %v15513_v36, %v15513_v36 }
 0x44e   : > { %13206 = vpow2.f32 %v8411_v13  ;;  %v8413_v47 = vmul.f32 1.442695, %v8356_v10  ;;  %v6590_v13 = vrot.slane %v6582_v19, %v13882_v39  ;;  %v6597_v10 = vrot.slane %v6583_v3, %v13882_v39 }
 0x44f   : > { %13208 = vrcp.f32 %v8429_v9  ;;  %v8432_v20 = vpop.xlane.xlu0 %8431  ;;  %v6612_v42 = vrot.slane %v6605_v46, %v13882_v39  ;;  %v6623_v19 = vrot.slane %v6613_v45, %v13882_v39  ;;  %v6644_v52 = vrot.slane %v6616_v59, %v13882_v39 }
 0x450   : > { %13210 = vpow2.f32 %v8413_v47  ;;  %v6598_v8 = vcombine.low %v6590_v13, %v6597_v10  ;;  %v5703_v59 = vrot.slane %v5689_v34, %v13882_v39 }
 0x451   : > { %13212 = vrcp.f32 %v8432_v20  ;;  %v8315_v0 = vpop.xlane.xlu1 %8314 }
 0x452   : > { %v8357_v38 = vsub.f32 %v15374_v32, %v8315_v0 }
 0x453   : > { %v8318_v60 = vpop.xlane.xlu0 %8317 }
 0x454   : > { %v15538_v33 = vpop.eup %13202  ;;  %v8415_v37 = vmul.f32 1.442695, %v8357_v38  ;;  %v8358_v35 = vsub.f32 %v15378_v56, %v8318_v60  ;;  %v6630_v56 = vrot.slane %v6614_v31, %v13882_v39  ;;  %v6637_v60 = vrot.slane %v6615_v6, %v13882_v39 }
 0x455   : > { %v8321_v25 = vpop.xlane.xlu1 %8320  ;;  %v8493_v32 = vsel %vm8233_vm4, %v15538_v33, 0.0  ;;  %v7466_v38 = vpack.c.bf16 %v6612_v42, %v6598_v8 }
 0x456   : > { %v15546_v61 = vpop.eup %13204  ;;  %13214 = vpow2.f32 %v8415_v37  ;;  %v8417_v17 = vmul.f32 1.442695, %v8358_v35  ;;  %v8359_v30 = vsub.f32 %v15384_v51, %v8321_v25  ;;  %8494 = vadd.xlane.f32.xlu0 %v8493_v32  ;;  %v6645_v45 = vcombine.low %v6623_v19, %v6630_v56 }
 0x457   : > { %v8324_v36 = vpop.xlane.xlu0 %8323  ;;  %v8496_v31 = vsel %vm8237_vm5, %v15546_v61, 0.0  ;;  %v6646_v6 = vcombine.low %v6637_v60, %v6644_v52  ;;  %v6668_v19 = vrot.slane %v5703_v59, %v13882_v39  ;;  %v8705_v42 = vand.u32 %v15227_v2, %v7466_v38 }
 0x458   : > { %v15553_v9 = vpop.eup %13206  ;;  %13216 = vpow2.f32 %v8417_v17  ;;  %v8419_v29 = vmul.f32 1.442695, %v8359_v30  ;;  %v8360_v47 = vsub.f32 %v15390_v22, %v8324_v36 }
 0x459   : > { %v13209_v24 = vpop.eup %13208  ;;  %v8435_v3 = vpop.xlane.xlu1 %8434  ;;  %v8499_v51 = vsel %vm8233_vm4, %v15553_v9, 0.0  ;;  %v6660_v32 = vrot.slane %v6646_v6, %v13882_v39  ;;  %v6675_v36 = vrot.slane %v6668_v19, %v13882_v39 }
 0x45a   : > { %v15560_v20 = vpop.eup %13210  ;;  %13218 = vpow2.f32 %v8419_v29  ;;  %v8421_v46 = vmul.f32 1.442695, %v8360_v47  ;;  %8500 = vadd.xlane.f32.xlu1 %v8499_v51  ;;  %8497 = vadd.xlane.f32.xlu0 %v8496_v31  ;;  %v8555_v13 = vmul.f32 %v13209_v24, %v15370_v62  ;;  %v6653_v62 = vrot.slane %v6645_v45, %v13882_v39 }
 0x45b   : > { %v13213_v0 = vpop.eup %13212  ;;  %13220 = vrcp.f32 %v8435_v3  ;;  %v8438_v22 = vpop.xlane.xlu0 %8437  ;;  %v8502_v35 = vsel %vm8237_vm5, %v15560_v20, 0.0 }
 0x45c   : > { %v8556_v10 = vmul.f32 %v13213_v0, %v15372_v16  ;;  %13222 = vpow2.f32 %v8421_v46 }
 0x45d   : > { %13224 = vrcp.f32 %v8438_v22  ;;  %v8327_v37 = vpop.xlane.xlu1 %8326 }
 0x45e   : > { %v8361_v34 = vsub.f32 %v15394_v50, %v8327_v37  ;;  %v8587_v25 = vpack.c.bf16 %v8556_v10, %v8555_v13  ;;  %8503 = vadd.xlane.f32.xlu0 %v8502_v35  ;;  %v5753_v10 = vcombine.high %v15298_v27, %v15298_v27  ;;  %v5711_v37 = vrot.slane %v15274_v41, %v13882_v39 }
 0x45f   : > { %v8330_v17 = vpop.xlane.xlu0 %8329  ;;  %v5760_v35 = vrot.slane %v15298_v27, %v13882_v39 }
 0x460   : > { %v15572_v16 = vpop.eup %13214  ;;  %v8423_v30 = vmul.f32 1.442695, %v8361_v34  ;;  %12833 = vmatmul.mubr.msk.bf16.vlgmr.msra.gmra.mrb[32].mxu1 %vm8233_vm4, %v8587_v25  ;;  %v8362_v56 = vsub.f32 %v15400_v43, %v8330_v17  ;;  %v6661_v43 = vcombine.low %v6653_v62, %v6660_v32  ;;  %v5767_v25 = vrot.slane %v5753_v10, %v13882_v39 }
 0x461   : > { %12843 = vmatpush3.bf16.msra.mxu1 %v8705_v42  ;;  %v8505_v50 = vsel %vm8233_vm4, %v15572_v16, 0.0  ;;  %12844 = vmatprep.mubr.msk.bf16.mxu1 %vm13491_vm0, %v16493_v7  ;;  %v5719_v32 = vcombine.high %v5711_v37, %v5711_v37  ;;  %v5768_v19 = vcombine.high %v5760_v35, %v5760_v35  ;;  %v5824_v42 = vcombine.high %v15314_v53, %v15314_v53 }
 0x462   : > { %v15580_v60 = vpop.eup %13216  ;;  %13226 = vpow2.f32 %v8423_v30  ;;  %v8425_v52 = vmul.f32 1.442695, %v8362_v56  ;;  %8506 = vadd.xlane.f32.xlu0 %v8505_v50  ;;  %12854 = vmatprep.subr.bf16.mxu1 %v16493_v7  ;;  %v7467_v59 = vpack.c.bf16 %v6675_v36, %v6661_v43  ;;  %v5769_v62 = vcombine.high %v5767_v25, %v5767_v25 }
 0x463   : > { %v8508_v8 = vsel %vm8237_vm5, %v15580_v60, 0.0  ;;  %v5727_v30 = vrot.slane %v5711_v37, %v13882_v39  ;;  %v5790_v27 = vrot.slane %v5768_v19, %v13882_v39  ;;  %v5808_v56 = vrot.slane %v15276_v40, %v13882_v39 }
 0x464   : > { %v15586_v29 = vpop.eup %13218  ;;  %13228 = vpow2.f32 %v8425_v52  ;;  %8509 = vadd.xlane.f32.xlu1 %v8508_v8  ;;  %v8752_v6 = vand.u32 %v15227_v2, %v7467_v59  ;;  %v5831_v50 = vrot.slane %v15314_v53, %v13882_v39  ;;  %v5838_v52 = vrot.slane %v5824_v42, %v13882_v39 }
 0x465   : > { %v13221_v47 = vpop.eup %13220  ;;  %v8511_v24 = vsel %vm8233_vm4, %v15586_v29, 0.0  ;;  %v5783_v43 = vrot.slane %v5767_v25, %v13882_v39  ;;  %v5800_v59 = vcombine.high %v5790_v27, %v5790_v27  ;;  %v5816_v40 = vrot.slane %v5808_v56, %v13882_v39 }
 0x466   : > { %v15590_v3 = vpop.eup %13222  ;;  %8512 = vadd.xlane.f32.xlu0 %v8511_v24  ;;  %v8557_v46 = vmul.f32 %v13221_v47, %v15392_v5  ;;  %v5797_v47 = vrot.slane %v5769_v62, %v13882_v39  ;;  %v5840_v53 = vcombine.high %v5838_v52, %v5838_v52 }
 0x467   : > { %v13225_v51 = vpop.eup %13224  ;;  %v8514_v31 = vsel %vm8237_vm5, %v15590_v3, 0.0  ;;  %v6740_v37 = vcombine.low %v5800_v59, %v5783_v43  ;;  %v8444_v19 = vpop.xlane.xlu0 %8443 }
 0x468   : > { %v8558_v0 = vmul.f32 %v13225_v51, %v15398_v58  ;;  %8515 = vadd.xlane.f32.xlu1 %v8514_v31  ;;  %v5704_v58 = vcombine.high %v15274_v41, %v15274_v41  ;;  %v15626_v41 = vrot.slane %v5760_v35, %v13882_v39  ;;  %v5847_v35 = vrot.slane %v5831_v50, %v13882_v39 }
 0x469   : > { %13230 = vrcp.f32 %v8444_v19 }
 0x46a   : > { %v8588_v45 = vpack.c.bf16 %v8558_v0, %v8557_v46  ;;  %v5718_v34 = vrot.slane %v5704_v58, %v13882_v39  ;;  %v5798_v31 = vcombine.high %v15626_v41, %v15626_v41  ;;  %v5839_v46 = vcombine.high %v5831_v50, %v5831_v50 }
 0x46c   : > { %v15597_v22 = vpop.eup %13226  ;;  %12839 = vmatmul.mubr.msk.bf16.vlgmr.msra.gmra.mrb[44].mxu0 %vm8233_vm4, %v8588_v45  ;;  %v5720_v17 = vcombine.high %v5718_v34, %v5718_v34  ;;  %v5734_v36 = vrot.slane %v5718_v34, %v13882_v39  ;;  %v6739_v10 = vcombine.low %v5790_v27, %v5798_v31  ;;  %v5854_v34 = vrot.slane %v5838_v52, %v13882_v39  ;;  %v15653_v27 = vpop.permute.xlu1 %5460 }
 0x46d   : > { %12849 = vmatpush3.bf16.msra.mxu0 %v8752_v6  ;;  %v8517_v38 = vsel %vm8233_vm4, %v15597_v22, 0.0  ;;  %12850 = vmatprep.mubr.msk.bf16.mxu0 %vm13491_vm0, %v16493_v7  ;;  %v5799_v6 = vcombine.high %v5783_v43, %v5783_v43  ;;  %v5861_v25 = vrot.slane %v5839_v46, %v13882_v39  ;;  %v5880_v52 = vrot.slane %v15278_v55, %v13882_v39 }
 0x46e   : > { %v15604_v13 = vpop.eup %13228  ;;  %8518 = vadd.xlane.f32.xlu0 %v8517_v38  ;;  %12860 = vmatprep.subr.bf16.mxu0 %v16493_v7  ;;  %v5748_v8 = vrot.slane %v5720_v17, %v13882_v39  ;;  %v5801_v38 = vcombine.high %v5797_v47, %v5797_v47 }
 0x46f   : > { %v8520_v5 = vsel %vm8237_vm5, %v15604_v13, 0.0  ;;  %v6741_v17 = vcombine.low %v5797_v47, %v5799_v6  ;;  %v6802_v43 = vcombine.low %v5847_v35, %v5861_v25 }
 0x470   : > { %v6678_v0 = vcombine.low %v5734_v36, %v5748_v8  ;;  %v12486_v45 = vcombine.high %v5734_v36, %v5748_v8  ;;  %v6742_v62 = vcombine.low %v5801_v38, %v5816_v40  ;;  %v6749_v36 = vrot.slane %v6739_v10, %v13882_v39 }
 0x471   : > { %v6756_v8 = vrot.slane %v6740_v37, %v13882_v39  ;;  %v6812_v38 = vrot.slane %v6802_v43, %v13882_v39 }
 0x472   : > { %8521 = vadd.xlane.f32.xlu0 %v8520_v5  ;;  %v6707_v42 = vrot.slane %v12486_v45, %v13882_v39  ;;  %v6770_v59 = vrot.slane %v6742_v62, %v13882_v39  ;;  %v6731_v45 = vrot.slane %v15626_v41, %v13882_v39  ;;  %v5896_v41 = vrot.slane %v5880_v52, %v13882_v39 }
 0x473   : > { %v6771_v6 = vcombine.low %v6749_v36, %v6756_v8 }
 0x474   : > { %v6738_v62 = vrot.slane %v6731_v45, %v13882_v39 }
 0x475   : > { %v6779_v43 = vrot.slane %v6771_v6, %v13882_v39 }
 0x479   : > { %5462 = vrot.lane.b32.xlu1 %v16521_v63, %s13499_s13  ;;  %v5741_v63 = vrot.slane %v5719_v32, %v13882_v39  ;;  %v5868_v32 = vrot.slane %v5840_v53, %v13882_v39 }
 0x47b   : > { %v6676_v24 = vcombine.low %v5727_v30, %v5741_v63  ;;  %v12485_v51 = vcombine.high %v5727_v30, %v5741_v63  ;;  %v5809_v30 = vcombine.high %v5808_v56, %v5808_v56  ;;  %v5873_v63 = vcombine.high %v15278_v55, %v15278_v55 }
 0x47c   : > { %v6763_v56 = vrot.slane %v6741_v17, %v13882_v39  ;;  %v12488_v40 = vcombine.high %v5854_v34, %v5868_v32 }
 0x47d   : > { %v6686_v5 = vrot.slane %v6676_v24, %v13882_v39  ;;  %v6693_v58 = vrot.slane %v12485_v51, %v13882_v39  ;;  %v12487_v24 = vcombine.high %v5847_v35, %v5861_v25  ;;  %v6804_v51 = vcombine.low %v5854_v34, %v5868_v32 }
 0x47e   : > { %v5823_v46 = vrot.slane %v5809_v30, %v13882_v39  ;;  %v5887_v53 = vrot.slane %v5873_v63, %v13882_v39  ;;  %v6833_v37 = vrot.slane %v12488_v40, %v13882_v39  ;;  %v6772_v25 = vcombine.low %v6763_v56, %v6770_v59 }
 0x47f   : > { %v6708_v50 = vcombine.low %v6686_v5, %v6693_v58  ;;  %v6819_v5 = vrot.slane %v12487_v24, %v13882_v39  ;;  %v6826_v58 = vrot.slane %v6804_v51, %v13882_v39  ;;  %v5944_v30 = vcombine.high %v15296_v15, %v15296_v15 }
 0x480   : > { %v6794_v32 = vrot.slane %v5823_v46, %v13882_v39  ;;  %v5889_v19 = vcombine.high %v5887_v53, %v5887_v53  ;;  %v6857_v56 = vrot.slane %v5896_v41, %v13882_v39  ;;  %v5928_v59 = vrot.slane %v15288_v1, %v13882_v39 }
 0x481   : > { %v6716_v35 = vrot.slane %v6708_v50, %v13882_v39  ;;  %v6834_v63 = vcombine.low %v6812_v38, %v6819_v5  ;;  %v13231_v50 = vpop.eup %13230  ;;  %v6835_v36 = vcombine.low %v6826_v58, %v6833_v37  ;;  %v5951_v40 = vrot.slane %v15296_v15, %v13882_v39 }
 0x482   : > { %v6801_v24 = vrot.slane %v6794_v32, %v13882_v39  ;;  %v5917_v51 = vrot.slane %v5889_v19, %v13882_v39  ;;  %v8560_v45 = vmul.f32 %v13231_v50, %v15411_v11  ;;  %v6864_v15 = vrot.slane %v6857_v56, %v13882_v39 }
 0x483   : > { %v6842_v58 = vrot.slane %v6834_v63, %v13882_v39 }
 0x488   : > { %5458 = vrot.lane.b32.xlu0 %v16519_v23, %s13499_s13  ;;  %v6700_v23 = vrot.slane %v6678_v0, %v13882_v39  ;;  %v5888_v0 = vcombine.high %v5880_v52, %v5880_v52  ;;  %v6786_v52 = vrot.slane %v6772_v25, %v13882_v39  ;;  %v5959_v25 = vcombine.high %v5951_v40, %v5951_v40 }
 0x48a   : > { %v6709_v31 = vcombine.low %v6700_v23, %v6707_v42  ;;  %v5903_v42 = vrot.slane %v5887_v53, %v13882_v39  ;;  %v5910_v17 = vrot.slane %v5888_v0, %v13882_v39  ;;  %v5958_v0 = vrot.slane %v5944_v30, %v13882_v39 }
 0x48b   : > { %v6787_v5 = vcombine.low %v6779_v43, %v6786_v52  ;;  %v5967_v52 = vrot.slane %v5951_v40, %v13882_v39 }
 0x48c   : > { %v6723_v34 = vrot.slane %v6709_v31, %v13882_v39  ;;  %v5919_v53 = vcombine.high %v5903_v42, %v5903_v42 }
 0x48d   : > { %v7469_v50 = vpack.c.bf16 %v6801_v24, %v6787_v5  ;;  %v5974_v24 = vrot.slane %v5958_v0, %v13882_v39 }
 0x48e   : > { %v8450_v47 = vpop.xlane.xlu0 %8449  ;;  %v6724_v8 = vcombine.low %v6716_v35, %v6723_v34  ;;  %v5921_v35 = vcombine.high %v5917_v51, %v5917_v51  ;;  %v5936_v34 = vrot.slane %v5928_v59, %v13882_v39  ;;  %v6867_v30 = vcombine.low %v5917_v51, %v5919_v53 }
 0x48f   : > { %13232 = vrcp.f32 %v8450_v47  ;;  %v5918_v47 = vcombine.high %v5896_v41, %v5896_v41  ;;  %v5960_v41 = vcombine.high %v5958_v0, %v5958_v0  ;;  %v8846_v40 = vand.u32 %v15227_v2, %v7469_v50 }
 0x490   : > { %v7468_v38 = vpack.c.bf16 %v6738_v62, %v6724_v8  ;;  %v5993_v8 = vcombine.high %v15322_v12, %v15322_v12 }
 0x491   : > { %v6865_v37 = vcombine.low %v5910_v17, %v5918_v47  ;;  %v5988_v51 = vrot.slane %v5960_v41, %v13882_v39 }
 0x492   : > { %v8441_v55 = vpop.xlane.xlu1 %8440  ;;  %v8456_v10 = vpop.xlane.xlu0 %8455  ;;  %v8799_v63 = vand.u32 %v15227_v2, %v7468_v38  ;;  %v6007_v0 = vrot.slane %v5993_v8, %v13882_v39 }
 0x493   : > { %13234 = vrcp.f32 %v8441_v55  ;;  %v5920_v55 = vcombine.high %v5910_v17, %v5910_v17  ;;  %v6930_v5 = vcombine.low %v5974_v24, %v5988_v51 }
 0x494   : > { %13236 = vrcp.f32 %v8456_v10  ;;  %v6849_v10 = vrot.slane %v6835_v36, %v13882_v39  ;;  %v5929_v36 = vcombine.high %v5928_v59, %v5928_v59  ;;  %v6889_v59 = vrot.slane %v6867_v30, %v13882_v39 }
 0x495   : > { %v6866_v19 = vcombine.low %v5920_v55, %v5903_v42  ;;  %v6868_v42 = vcombine.low %v5921_v35, %v5936_v34  ;;  %v6000_v55 = vrot.slane %v15322_v12, %v13882_v39  ;;  %v6064_v12 = vcombine.high %v15326_v44, %v15326_v44 }
 0x496   : > { %v8447_v23 = vpop.xlane.xlu1 %8446  ;;  %v6850_v17 = vcombine.low %v6842_v58, %v6849_v10  ;;  %v5943_v53 = vrot.slane %v5929_v36, %v13882_v39  ;;  %v12490_v58 = vcombine.high %v5974_v24, %v5988_v51  ;;  %v6009_v35 = vcombine.high %v6007_v0, %v6007_v0 }
 0x497   : > { %13238 = vrcp.f32 %v8447_v23  ;;  %v6882_v56 = vrot.slane %v6866_v19, %v13882_v39  ;;  %v6952_v41 = vrot.slane %v6930_v5, %v13882_v39  ;;  %v6016_v30 = vrot.slane %v6000_v55, %v13882_v39 }
 0x498   : > { %v6037_v36 = vrot.slane %v6009_v35, %v13882_v39 }
 0x499   : > { %v13233_v46 = vpop.eup %13232 }
 0x49a   : > { %v8453_v31 = vpop.xlane.xlu1 %8452  ;;  %v8562_v23 = vmul.f32 %v13233_v46, %v15424_v18  ;;  %v5981_v18 = vrot.slane %v5959_v25, %v13882_v39  ;;  %v7470_v46 = vpack.c.bf16 %v6864_v15, %v6850_v17  ;;  %v6008_v15 = vcombine.high %v6000_v55, %v6000_v55  ;;  %v16535_v55 = vld [vmem:[#allocation22_spill] sm:$0xff] }
 0x49b   : > { %13240 = vrcp.f32 %v8453_v31  ;;  %v6023_v17 = vrot.slane %v6007_v0, %v13882_v39  ;;  %v6113_v0 = vcombine.high %v16535_v55, %v16535_v55 }
 0x49c   : > { %v12489_v38 = vcombine.high %v5967_v52, %v5981_v18 }
 0x49d   : > { %v13235_v6 = vpop.eup %13234 }
 0x49e   : > { %v8559_v1 = vmul.f32 %v13235_v6, %v15422_v57  ;;  %v13237_v32 = vpop.eup %13236  ;;  %v6875_v57 = vrot.slane %v6865_v37, %v13882_v39  ;;  %v6928_v6 = vcombine.low %v5967_v52, %v5981_v18 }
 0x49f   : > { %v8564_v47 = vmul.f32 %v13237_v32, %v15432_v26  ;;  %v6945_v32 = vrot.slane %v12489_v38, %v13882_v39 }
 0x4a0   : > { %v8589_v11 = vpack.c.bf16 %v8560_v45, %v8559_v1  ;;  %v6896_v45 = vrot.slane %v6868_v42, %v13882_v39  ;;  %v6897_v37 = vcombine.low %v6875_v57, %v6882_v56  ;;  %v6920_v1 = vrot.slane %v5943_v53, %v13882_v39 }
 0x4a1   : > { %v13239_v62 = vpop.eup %13238  ;;  %v6938_v25 = vrot.slane %v6928_v6, %v13882_v39  ;;  %v6030_v57 = vrot.slane %v6008_v15, %v13882_v39  ;;  %v6039_v56 = vcombine.high %v6023_v17, %v6023_v17  ;;  %v6983_v53 = vrot.slane %v6016_v30, %v13882_v39 }
 0x4a2   : > { %v8561_v43 = vmul.f32 %v13239_v62, %v15430_v49  ;;  %12845 = vmatmul.mubr.msk.bf16.vlgmr.msra.gmra.mrb[36].mxu1 %vm8233_vm4, %v8589_v11  ;;  %v6898_v34 = vcombine.low %v6889_v59, %v6896_v45  ;;  %v6959_v11 = vrot.slane %v12490_v58, %v13882_v39  ;;  %v6048_v62 = vrot.slane %v15308_v14, %v13882_v39 }
 0x4a3   : > { %12855 = vmatpush3.bf16.msra.mxu1 %v8799_v63  ;;  %12856 = vmatprep.mubr.msk.bf16.mxu1 %vm13491_vm0, %v16493_v7  ;;  %v6078_v63 = vrot.slane %v6064_v12, %v13882_v39  ;;  %v6927_v8 = vrot.slane %v6920_v1, %v13882_v39  ;;  %v6905_v18 = vrot.slane %v6897_v37, %v13882_v39 }
 0x4a4   : > { %v8590_v31 = vpack.c.bf16 %v8562_v23, %v8561_v43  ;;  %12866 = vmatprep.subr.bf16.mxu1 %v16493_v7  ;;  %v6071_v23 = vrot.slane %v15326_v44, %v13882_v39  ;;  %v6912_v44 = vrot.slane %v6898_v34, %v13882_v39  ;;  %v6960_v43 = vcombine.low %v6938_v25, %v6945_v32 }
 0x4a5   : > { %v13241_v49 = vpop.eup %13240  ;;  %v6961_v52 = vcombine.low %v6952_v41, %v6959_v11  ;;  %v6049_v24 = vcombine.high %v6048_v62, %v6048_v62  ;;  %v6056_v51 = vrot.slane %v6048_v62, %v13882_v39  ;;  %v6040_v59 = vcombine.high %v6030_v57, %v6030_v57 }
 0x4a6   : > { %v8563_v26 = vmul.f32 %v13241_v49, %v15438_v28  ;;  %12851 = vmatmul.mubr.msk.bf16.vlgmr.msra.gmra.mrb[48].mxu0 %vm8233_vm4, %v8590_v31  ;;  %v8893_v28 = vand.u32 %v15227_v2, %v7470_v46  ;;  %v6079_v14 = vcombine.high %v6071_v23, %v6071_v23  ;;  %v6080_v31 = vcombine.high %v6078_v63, %v6078_v63 }
 0x4a7   : > { %12861 = vmatpush3.bf16.msra.mxu0 %v8846_v40  ;;  %12862 = vmatprep.mubr.msk.bf16.mxu0 %vm13491_vm0, %v16493_v7  ;;  %v6041_v40 = vcombine.high %v6037_v36, %v6037_v36  ;;  %v6968_v46 = vrot.slane %v6960_v43, %v13882_v39  ;;  %v6087_v45 = vrot.slane %v6071_v23, %v13882_v39 }
 0x4a8   : > { %v8591_v10 = vpack.c.bf16 %v8564_v47, %v8563_v26  ;;  %12872 = vmatprep.subr.bf16.mxu0 %v16493_v7  ;;  %v6038_v47 = vcombine.high %v6016_v30, %v6016_v30  ;;  %v6120_v26 = vrot.slane %v16535_v55, %v13882_v39  ;;  %v6101_v6 = vrot.slane %v6079_v14, %v13882_v39 }
 0x4a9   : > { %v8459_v19 = vpop.xlane.xlu0 %8458  ;;  %v6913_v38 = vcombine.low %v6905_v18, %v6912_v44  ;;  %v6975_v5 = vrot.slane %v6961_v52, %v13882_v39  ;;  %v6094_v58 = vrot.slane %v6078_v63, %v13882_v39  ;;  %v6992_v37 = vcombine.low %v6040_v59, %v6023_v17 }
 0x4aa   : > { %12857 = vmatmul.mubr.msk.bf16.vlgmr.msra.gmra.mrb[40].mxu1 %vm8233_vm4, %v8591_v10  ;;  %13242 = vrcp.f32 %v8459_v19  ;;  %v6108_v10 = vrot.slane %v6080_v31, %v13882_v39  ;;  %v6993_v1 = vcombine.low %v6037_v36, %v6039_v56  ;;  %v6994_v15 = vcombine.low %v6041_v40, %v6056_v51 }
 0x4ab   : > { %12867 = vmatpush3.bf16.msra.mxu1 %v8893_v28  ;;  %12868 = vmatprep.mubr.msk.bf16.mxu1 %vm13491_vm0, %v16493_v7  ;;  %v8462_v50 = vpop.xlane.xlu1 %8461  ;;  %v6991_v28 = vcombine.low %v6030_v57, %v6038_v47  ;;  %v15759_v35 = vrot.slane %v6049_v24, %v13882_v39  ;;  %v6990_v34 = vrot.slane %v6983_v53, %v13882_v39 }
 0x4ac   : > { %12878 = vmatprep.subr.bf16.mxu1 %v16493_v7  ;;  %13244 = vrcp.f32 %v8462_v50  ;;  %v6127_v25 = vrot.slane %v6113_v0, %v13882_v39  ;;  %v6128_v32 = vcombine.high %v6120_v26, %v6120_v26  ;;  %v7054_v41 = vcombine.low %v6087_v45, %v6101_v6 }
 0x4ad   : > { %v8465_v42 = vpop.xlane.xlu0 %8464  ;;  %v12491_v11 = vcombine.high %v6087_v45, %v6101_v6  ;;  %v7471_v23 = vpack.c.bf16 %v6927_v8, %v6913_v38  ;;  %v6976_v62 = vcombine.low %v6968_v46, %v6975_v5  ;;  %v7056_v30 = vcombine.low %v6094_v58, %v6108_v10 }
 0x4ae   : > { %13246 = vrcp.f32 %v8465_v42  ;;  %v12492_v63 = vcombine.high %v6094_v58, %v6108_v10  ;;  %v7001_v36 = vrot.slane %v6991_v28, %v13882_v39  ;;  %v7008_v44 = vrot.slane %v6992_v37, %v13882_v39  ;;  %v16537_v58 = vld [vmem:[#allocation21_spill] sm:$0xff] }
 0x4af   : > { %v8468_v49 = vpop.xlane.xlu1 %8467  ;;  %v7015_v43 = vrot.slane %v6993_v1, %v13882_v39  ;;  %v7022_v42 = vrot.slane %v6994_v15, %v13882_v39  ;;  %v6129_v14 = vcombine.high %v6127_v25, %v6127_v25  ;;  %v6136_v8 = vrot.slane %v6120_v26, %v13882_v39 }
 0x4b0   : > { %13248 = vrcp.f32 %v8468_v49  ;;  %v6150_v18 = vrot.slane %v6128_v32, %v13882_v39  ;;  %v8940_v47 = vand.u32 %v15227_v2, %v7471_v23  ;;  %v7472_v31 = vpack.c.bf16 %v6990_v34, %v6976_v62 }
 0x4b1   : > { %v7078_v49 = vrot.slane %v7056_v30, %v13882_v39  ;;  %v7085_v56 = vrot.slane %v12492_v63, %v13882_v39  ;;  %v7046_v46 = vrot.slane %v15759_v35, %v13882_v39  ;;  %v7023_v53 = vcombine.low %v7001_v36, %v7008_v44 }
 0x4b2   : > { %v7024_v26 = vcombine.low %v7015_v43, %v7022_v42  ;;  %v6143_v45 = vrot.slane %v6127_v25, %v13882_v39  ;;  %v6158_v6 = vcombine.high %v6136_v8, %v6136_v8  ;;  %v6157_v5 = vrot.slane %v6129_v14, %v13882_v39 }
 0x4b3   : > { %v15790_v10 = vrot.slane %v16537_v58, %v13882_v39  ;;  %v6160_v28 = vcombine.high %v6150_v18, %v6150_v18  ;;  %v7087_v1 = vcombine.low %v7078_v49, %v7085_v56  ;;  %v7031_v34 = vrot.slane %v7023_v53, %v13882_v39 }
 0x4b4   : > { %v13243_v12 = vpop.eup %13242  ;;  %v7038_v25 = vrot.slane %v7024_v26, %v13882_v39  ;;  %v7109_v23 = vrot.slane %v6136_v8, %v13882_v39  ;;  %v7117_v62 = vcombine.low %v6150_v18, %v6158_v6 }
 0x4b5   : > { %v8565_v50 = vmul.f32 %v13243_v12, %v15446_v48  ;;  %v7064_v48 = vrot.slane %v7054_v41, %v13882_v39  ;;  %v8987_v12 = vand.u32 %v15227_v2, %v7472_v31  ;;  %v6161_v41 = vcombine.high %v6157_v5, %v6157_v5 }
 0x4b6   : > { %v13245_v19 = vpop.eup %13244  ;;  %v7101_v63 = vrot.slane %v7087_v1, %v13882_v39  ;;  %v7039_v36 = vcombine.low %v7031_v34, %v7038_v25  ;;  %v7116_v14 = vrot.slane %v7109_v23, %v13882_v39  ;;  %v16542_v1 = vld [vmem:[#allocation29_spill] sm:$0xff] }
 0x4b7   : > { %v8566_v17 = vmul.f32 %v13245_v19, %v15451_v54  ;;  %v7071_v54 = vrot.slane %v12491_v11, %v13882_v39  ;;  %v6159_v19 = vcombine.high %v6143_v45, %v6143_v45  ;;  %v6176_v11 = vrot.slane %v15790_v10, %v13882_v39 }
 0x4b8   : > { %v13247_v57 = vpop.eup %13246 }
 0x4b9   : > { %v8471_v52 = vpop.xlane.xlu0 %8470  ;;  %v8592_v24 = vpack.c.bf16 %v8566_v17, %v8565_v50  ;;  %v8567_v59 = vmul.f32 %v13247_v57, %v15456_v21  ;;  %v16536_v21 = vld [vmem:[#allocation23_spill] sm:$0xff]  ;;  %v7086_v37 = vcombine.low %v7064_v48, %v7071_v54  ;;  %v7053_v50 = vrot.slane %v7046_v46, %v13882_v39  ;;  %v16539_v46 = vld [vmem:[#allocation26_spill] sm:$0xff] }
 0x4ba   : > { %v13249_v51 = vpop.eup %13248  ;;  %13250 = vrcp.f32 %v8471_v52  ;;  %v6191_v15 = vrot.slane %v16536_v21, %v13882_v39  ;;  %v7118_v17 = vcombine.low %v6160_v28, %v6143_v45  ;;  %v7119_v42 = vcombine.low %v6157_v5, %v6159_v19  ;;  %v16541_v28 = vld [vmem:[#allocation28_spill] sm:$0xff] }
 0x4bb   : > { %v8568_v40 = vmul.f32 %v13249_v51, %v15461_v4  ;;  %12863 = vmatmul.mubr.msk.bf16.vlgmr.msra.gmra.mrb[52].mxu0 %vm8233_vm4, %v8592_v24  ;;  %v6184_v4 = vcombine.high %v16536_v21, %v16536_v21  ;;  %v7094_v30 = vrot.slane %v7086_v37, %v13882_v39  ;;  %v7120_v52 = vcombine.low %v6161_v41, %v6176_v11  ;;  %v16538_v51 = vld [vmem:[#allocation24_spill] sm:$0xff] }
 0x4bc   : > { %12873 = vmatpush3.bf16.msra.mxu0 %v8940_v47  ;;  %12874 = vmatprep.mubr.msk.bf16.mxu0 %vm13491_vm0, %v16493_v7  ;;  %v6199_v57 = vcombine.high %v6191_v15, %v6191_v15  ;;  %v7127_v24 = vrot.slane %v7117_v62, %v13882_v39  ;;  %v6233_v8 = vcombine.high %v16538_v51, %v16538_v51 }
 0x4bd   : > { %v8477_v55 = vpop.xlane.xlu1 %8476  ;;  %v8474_v0 = vpop.xlane.xlu0 %8473  ;;  %v8593_v38 = vpack.c.bf16 %v8568_v40, %v8567_v59  ;;  %12884 = vmatprep.subr.bf16.mxu0 %v16493_v7  ;;  %v6198_v32 = vrot.slane %v6184_v4, %v13882_v39  ;;  %v7102_v18 = vcombine.low %v7094_v30, %v7101_v63  ;;  %v7134_v54 = vrot.slane %v7118_v17, %v13882_v39 }
 0x4be   : > { %13252 = vrcp.f32 %v8474_v0  ;;  %v6207_v47 = vrot.slane %v6191_v15, %v13882_v39  ;;  %v6221_v31 = vrot.slane %v6199_v57, %v13882_v39  ;;  %v7473_v49 = vpack.c.bf16 %v7053_v50, %v7039_v36 }
 0x4bf   : > { %13254 = vrcp.f32 %v8477_v55  ;;  %12869 = vmatmul.mubr.msk.bf16.vlgmr.msra.gmra.mrb[44].mxu1 %vm8233_vm4, %v8593_v38  ;;  %v6200_v44 = vcombine.high %v6198_v32, %v6198_v32  ;;  %v6214_v59 = vrot.slane %v6198_v32, %v13882_v39  ;;  %v16540_v55 = vld [vmem:[#allocation27_spill] sm:$0xff]  ;;  %v7141_v26 = vrot.slane %v7119_v42, %v13882_v39 }
 0x4c0   : > { %12879 = vmatpush3.bf16.msra.mxu1 %v8987_v12  ;;  %12880 = vmatprep.mubr.msk.bf16.mxu1 %vm13491_vm0, %v16493_v7  ;;  %v6169_v45 = vcombine.high %v15790_v10, %v15790_v10  ;;  %v7148_v6 = vrot.slane %v7120_v52, %v13882_v39  ;;  %v6240_v4 = vrot.slane %v16538_v51, %v13882_v39 }
 0x4c1   : > { %v8480_v35 = vpop.xlane.xlu0 %8479  ;;  %12890 = vmatprep.subr.bf16.mxu1 %v16493_v7  ;;  %v6228_v40 = vrot.slane %v6200_v44, %v13882_v39  ;;  %v6247_v38 = vrot.slane %v6233_v8, %v13882_v39  ;;  %v7474_v58 = vpack.c.bf16 %v7116_v14, %v7102_v18  ;;  %v7180_v12 = vcombine.low %v6207_v47, %v6221_v31  ;;  %v16543_v18 = vld [vmem:[#allocation25_spill] sm:$0xff] }
 0x4c2   : > { %13256 = vrcp.f32 %v8480_v35  ;;  %v9034_v35 = vand.u32 %v15227_v2, %v7473_v49  ;;  %v7149_v34 = vcombine.low %v7127_v24, %v7134_v54  ;;  %v12493_v25 = vcombine.high %v6207_v47, %v6221_v31 }
 0x4c3   : > { %v7182_v10 = vcombine.low %v6214_v59, %v6228_v40  ;;  %v12494_v32 = vcombine.high %v6214_v59, %v6228_v40  ;;  %v6183_v41 = vrot.slane %v6169_v45, %v13882_v39  ;;  %v7150_v11 = vcombine.low %v7141_v26, %v7148_v6 }
 0x4c4   : > { %v13251_v43 = vpop.eup %13250  ;;  %v6248_v62 = vcombine.high %v6240_v4, %v6240_v4  ;;  %v9081_v63 = vand.u32 %v15227_v2, %v7474_v58  ;;  %v6249_v50 = vcombine.high %v6247_v38, %v6247_v38  ;;  %v7190_v17 = vrot.slane %v7180_v12, %v13882_v39 }
 0x4c5   : > { %v8569_v53 = vmul.f32 %v13251_v43, %v16539_v46  ;;  %v7197_v57 = vrot.slane %v12493_v25, %v13882_v39  ;;  %v7204_v36 = vrot.slane %v7182_v10, %v13882_v39  ;;  %v7211_v44 = vrot.slane %v12494_v32, %v13882_v39 }
 0x4c6   : > { %v7164_v43 = vrot.slane %v7150_v11, %v13882_v39  ;;  %v7172_v42 = vrot.slane %v6183_v41, %v13882_v39  ;;  %v7157_v52 = vrot.slane %v7149_v34, %v13882_v39  ;;  %v6256_v14 = vrot.slane %v6240_v4, %v13882_v39 }
 0x4c7   : > { %v6270_v24 = vrot.slane %v6248_v62, %v13882_v39  ;;  %v6263_v51 = vrot.slane %v6247_v38, %v13882_v39  ;;  %v6277_v8 = vrot.slane %v6249_v50, %v13882_v39  ;;  %v7212_v47 = vcombine.low %v7190_v17, %v7197_v57 }
 0x4c8   : > { %v13253_v48 = vpop.eup %13252  ;;  %v7213_v31 = vcombine.low %v7204_v36, %v7211_v44  ;;  %v7179_v49 = vrot.slane %v7172_v42, %v13882_v39  ;;  %v7165_v59 = vcombine.low %v7157_v52, %v7164_v43  ;;  %v6278_v40 = vcombine.high %v6256_v14, %v6256_v14  ;;  %v16547_v44 = vld [vmem:[#allocation33_spill] sm:$0xff] }
 0x4c9   : > { %v13255_v56 = vpop.eup %13254  ;;  %v8570_v0 = vmul.f32 %v13253_v48, %v16540_v55  ;;  %v6288_v48 = vrot.slane %v16543_v18, %v13882_v39  ;;  %v6280_v46 = vcombine.high %v6270_v24, %v6270_v24  ;;  %v6279_v55 = vcombine.high %v6263_v51, %v6263_v51 }
 0x4ca   : > { %v8571_v37 = vmul.f32 %v13255_v56, %v16541_v28  ;;  %v7235_v45 = vrot.slane %v6256_v14, %v13882_v39  ;;  %v7220_v6 = vrot.slane %v7212_v47, %v13882_v39  ;;  %v7227_v38 = vrot.slane %v7213_v31, %v13882_v39 }
 0x4cb   : > { %v8594_v5 = vpack.c.bf16 %v8570_v0, %v8569_v53  ;;  %v6281_v0 = vcombine.high %v6277_v8, %v6277_v8  ;;  %v6296_v26 = vrot.slane %v6288_v48, %v13882_v39  ;;  %v7475_v58 = vpack.c.bf16 %v7179_v49, %v7165_v59 }
 0x4cc   : > { %v13257_v21 = vpop.eup %13256  ;;  %v7243_v12 = vcombine.low %v6270_v24, %v6278_v40  ;;  %v7244_v28 = vcombine.low %v6280_v46, %v6263_v51  ;;  %v7242_v34 = vrot.slane %v7235_v45, %v13882_v39  ;;  %v7228_v10 = vcombine.low %v7220_v6, %v7227_v38 }
 0x4cd   : > { %v8572_v15 = vmul.f32 %v13257_v21, %v16542_v1  ;;  %12875 = vmatmul.mubr.msk.bf16.vlgmr.msra.gmra.mrb[56].mxu0 %vm8233_vm4, %v8594_v5  ;;  %v16544_v21 = vld [vmem:[#allocation30_spill] sm:$0xff]  ;;  %v9128_v32 = vand.u32 %v15227_v2, %v7475_v58  ;;  %v6353_v49 = vcombine.high %v15653_v27, %v15653_v27 }
 0x4ce   : > { %12885 = vmatpush3.bf16.msra.mxu0 %v9034_v35  ;;  %12886 = vmatprep.mubr.msk.bf16.mxu0 %vm13491_vm0, %v16493_v7  ;;  %v7246_v35 = vcombine.low %v6281_v0, %v6296_v26  ;;  %v7253_v41 = vrot.slane %v7243_v12, %v13882_v39  ;;  %v7260_v11 = vrot.slane %v7244_v28, %v13882_v39 }
 0x4cf   : > { %v8483_v19 = vpop.xlane.xlu0 %8482  ;;  %v8595_v23 = vpack.c.bf16 %v8572_v15, %v8571_v37  ;;  %12896 = vmatprep.subr.bf16.mxu0 %v16493_v7  ;;  %v16545_v37 = vld [vmem:[#allocation31_spill] sm:$0xff]  ;;  %v7245_v15 = vcombine.low %v6277_v8, %v6279_v55  ;;  %v7476_v36 = vpack.c.bf16 %v7242_v34, %v7228_v10 }
 0x4d0   : > { %13258 = vrcp.f32 %v8483_v19  ;;  %v7275_v42 = vcombine.low %v7253_v41, %v7260_v11 }
 0x4d1   : > { %v8486_v30 = vpop.xlane.xlu1 %8485  ;;  %12881 = vmatmul.mubr.msk.bf16.vlgmr.msra.gmra.mrb[48].mxu1 %vm8233_vm4, %v8595_v23  ;;  %v6289_v23 = vcombine.high %v6288_v48, %v6288_v48  ;;  %v7267_v62 = vrot.slane %v7245_v15, %v13882_v39  ;;  %v9175_v18 = vand.u32 %v15227_v2, %v7476_v36  ;;  %v6360_v48 = vrot.slane %v15653_v27, %v13882_v39 }
 0x4d2   : > { %13260 = vrcp.f32 %v8486_v30  ;;  %12891 = vmatpush3.bf16.msra.mxu1 %v9081_v63  ;;  %12892 = vmatprep.mubr.msk.bf16.mxu1 %vm13491_vm0, %v16493_v7  ;;  %v7274_v30 = vrot.slane %v7246_v35, %v13882_v39  ;;  %v16546_v63 = vld [vmem:[#allocation32_spill] sm:$0xff]  ;;  %v7283_v31 = vrot.slane %v7275_v42, %v13882_v39 }
 0x4d3   : > { %12902 = vmatprep.subr.bf16.mxu1 %v16493_v7  ;;  %v6303_v52 = vrot.slane %v6289_v23, %v13882_v39  ;;  %v6368_v59 = vcombine.high %v6360_v48, %v6360_v48  ;;  %v15888_v6 = vrot.slane %v6360_v48, %v13882_v39 }
 0x4d4   : > { %v7276_v14 = vcombine.low %v7267_v62, %v7274_v30 }
 0x4d5   : > { %v8489_v54 = vpop.xlane.xlu0 %8488  ;;  %v7298_v47 = vrot.slane %v6303_v52, %v13882_v39  ;;  %v6390_v0 = vrot.slane %v6368_v59, %v13882_v39  ;;  %v6398_v35 = vcombine.high %v15888_v6, %v15888_v6 }
 0x4d6   : > { %13262 = vrcp.f32 %v8489_v54  ;;  %v7290_v54 = vrot.slane %v7276_v14, %v13882_v39 }
 0x4d7   : > { %v8492_v56 = vpop.xlane.xlu1 %8491  ;;  %v7305_v40 = vrot.slane %v7298_v47, %v13882_v39  ;;  %v6400_v58 = vcombine.high %v6390_v0, %v6390_v0  ;;  %v7369_v62 = vcombine.low %v6390_v0, %v6398_v35 }
 0x4d8   : > { %13264 = vrcp.f32 %v8492_v56  ;;  %v7291_v46 = vcombine.low %v7283_v31, %v7290_v54 }
 0x4d9   : > { %v7379_v42 = vrot.slane %v7369_v62, %v13882_v39 }
 0x4da   : > { %v13259_v53 = vpop.eup %13258 }
 0x4db   : > { %v8573_v4 = vmul.f32 %v13259_v53, %v16544_v21  ;;  %v6367_v53 = vrot.slane %v6353_v49, %v13882_v39  ;;  %v7477_v21 = vpack.c.bf16 %v7305_v40, %v7291_v46 }
 0x4dc   : > { %v13261_v5 = vpop.eup %13260 }
 0x4dd   : > { %v8574_v1 = vmul.f32 %v13261_v5, %v16545_v37  ;;  %v6383_v38 = vrot.slane %v6367_v53, %v13882_v39 }
 0x4df   : > { %v8596_v25 = vpack.c.bf16 %v8574_v1, %v8573_v4  ;;  %v6369_v4 = vcombine.high %v6367_v53, %v6367_v53 }
 0x4e0   : > { %v13263_v19 = vpop.eup %13262 }
 0x4e1   : > { %12887 = vmatmul.mubr.msk.bf16.vlgmr.msra.gmra.mrb[60].mxu0 %vm8233_vm4, %v8596_v25  ;;  %v8575_v50 = vmul.f32 %v13263_v19, %v16546_v63  ;;  %v9222_v25 = vand.u32 %v15227_v2, %v7477_v21  ;;  %v6397_v10 = vrot.slane %v6369_v4, %v13882_v39 }
 0x4e2   : > { %12897 = vmatpush3.bf16.msra.mxu0 %v9128_v32  ;;  %12898 = vmatprep.mubr.msk.bf16.mxu0 %vm13491_vm0, %v16493_v7  ;;  %v13265_v17 = vpop.eup %13264  ;;  %v6399_v32 = vcombine.high %v6383_v38, %v6383_v38 }
 0x4e3   : > { %v8495_v57 = vpop.xlane.xlu0 %8494  ;;  %12908 = vmatprep.subr.bf16.mxu0 %v16493_v7  ;;  %v8576_v43 = vmul.f32 %v13265_v17, %v16547_v44 }
 0x4e4   : > { %13266 = vrcp.f32 %v8495_v57  ;;  %v7371_v63 = vcombine.low %v6397_v10, %v6399_v32  ;;  %v6401_v57 = vcombine.high %v6397_v10, %v6397_v10 }
 0x4e5   : > { %v8597_v24 = vpack.c.bf16 %v8576_v43, %v8575_v50 }
 0x4e7   : > { %v8501_v51 = vpop.xlane.xlu1 %8500  ;;  %v8498_v8 = vpop.xlane.xlu0 %8497  ;;  %12893 = vmatmul.mubr.msk.bf16.vlgmr.msra.gmra.mrb[52].mxu1 %vm8233_vm4, %v8597_v24 }
 0x4e8   : > { %13268 = vrcp.f32 %v8498_v8  ;;  %12903 = vmatpush3.bf16.msra.mxu1 %v9175_v18  ;;  %12904 = vmatprep.mubr.msk.bf16.mxu1 %vm13491_vm0, %v16493_v7  ;;  %v7393_v8 = vrot.slane %v7371_v63, %v13882_v39 }
 0x4e9   : > { %13270 = vrcp.f32 %v8501_v51  ;;  %12914 = vmatprep.subr.bf16.mxu1 %v16493_v7 }
 0x4eb   : > { %v8504_v56 = vpop.xlane.xlu0 %8503 }
 0x4ec   : > { %13272 = vrcp.f32 %v8504_v56 }
 0x4ee   : > { %v13267_v26 = vpop.eup %13266 }
 0x4ef   : > { %v8507_v55 = vpop.xlane.xlu0 %8506  ;;  %v8577_v12 = vmul.f32 %v13267_v26, %v15538_v33  ;;  %v7370_v33 = vcombine.low %v6400_v58, %v6383_v38 }
 0x4f0   : > { %13274 = vrcp.f32 %v8507_v55 }
 0x4f1   : > { %v8510_v45 = vpop.xlane.xlu1 %8509  ;;  %v7386_v17 = vrot.slane %v7370_v33, %v13882_v39 }
 0x4f2   : > { %13276 = vrcp.f32 %v8510_v45  ;;  %v13269_v27 = vpop.eup %13268 }
 0x4f3   : > { %v13271_v5 = vpop.eup %13270  ;;  %v8578_v28 = vmul.f32 %v13269_v27, %v15546_v61  ;;  %v8513_v1 = vpop.xlane.xlu0 %8512  ;;  %v7401_v51 = vcombine.low %v7379_v42, %v7386_v17 }
 0x4f4   : > { %v8579_v19 = vmul.f32 %v13271_v5, %v15553_v9 }
 0x4f5   : > { %v15893_v37 = vpop.xlane.xlu1 %8515  ;;  %v8598_v34 = vpack.c.bf16 %v8578_v28, %v8577_v12  ;;  %v7409_v56 = vrot.slane %v7401_v51, %v13882_v39 }
 0x4f6   : > { %v13273_v15 = vpop.eup %13272 }
 0x4f7   : > { %v8580_v41 = vmul.f32 %v13273_v15, %v15560_v20  ;;  %12899 = vmatmul.mubr.msk.bf16.vlgmr.msra.gmra.mrb[64].mxu0 %vm8233_vm4, %v8598_v34 }
 0x4f8   : > { %12909 = vmatpush3.bf16.msra.mxu0 %v9222_v25  ;;  %12910 = vmatprep.mubr.msk.bf16.mxu0 %vm13491_vm0, %v16493_v7 }
 0x4f9   : > { %v5463_v61 = vpop.permute.xlu1 %5462  ;;  %v8599_v11 = vpack.c.bf16 %v8580_v41, %v8579_v19  ;;  %12920 = vmatprep.subr.bf16.mxu0 %v16493_v7 }
 0x4fa   : > { %v13275_v23 = vpop.eup %13274  ;;  %v6408_v30 = vrot.slane %v5463_v61, %v13882_v39 }
 0x4fb   : > { %v8581_v9 = vmul.f32 %v13275_v23, %v15572_v16  ;;  %v8519_v50 = vpop.xlane.xlu0 %8518  ;;  %12905 = vmatmul.mubr.msk.bf16.vlgmr.msra.gmra.mrb[56].mxu1 %vm8233_vm4, %v8599_v11 }
 0x4fc   : > { %v13277_v20 = vpop.eup %13276  ;;  %v6409_v36 = vcombine.high %v6408_v30, %v6408_v30  ;;  %v6416_v44 = vrot.slane %v6408_v30, %v13882_v39  ;;  %12916 = vmatprep.mubr.msk.bf16.mxu1 %vm13491_vm0, %v16493_v7  ;;  %13278 = vrcp.f32 %v8519_v50 }
 0x4fd   : > { %v8582_v43 = vmul.f32 %v13277_v20, %v15580_v60 }
 0x4fe   : > { %v6423_v52 = vrot.slane %v6409_v36, %v13882_v39  ;;  %v7372_v16 = vcombine.low %v6401_v57, %v6416_v44 }
 0x4ff   : > { %v8522_v14 = vpop.xlane.xlu0 %8521  ;;  %v8600_v24 = vpack.c.bf16 %v8582_v43, %v8581_v9 }
 0x500   : > { %v7400_v18 = vrot.slane %v7372_v16, %v13882_v39  ;;  %13280 = vrcp.f32 %v8522_v14  ;;  %v7424_v54 = vrot.slane %v6423_v52, %v13882_v39 }
 0x501   : > { %12911 = vmatmul.mubr.msk.bf16.vlgmr.msra.gmra.mrb[68].mxu0 %vm8233_vm4, %v8600_v24  ;;  %13282 = vrcp.f32 %v8513_v1 }
 0x502   : > { %v7402_v48 = vcombine.low %v7393_v8, %v7400_v18  ;;  %12922 = vmatprep.mubr.msk.bf16.mxu0 %vm13491_vm0, %v16493_v7  ;;  %v7431_v59 = vrot.slane %v7424_v54, %v13882_v39  ;;  %13284 = vrcp.f32 %v15893_v37 }
 0x503   : > { %v5459_v60 = vpop.permute.xlu0 %5458 }
 0x504   : > { %v7416_v47 = vrot.slane %v7402_v48, %v13882_v39  ;;  %v6304_v31 = vcombine.high %v5459_v60, %v5459_v60  ;;  %v6311_v49 = vrot.slane %v5459_v60, %v13882_v39 }
 0x506   : > { %v6318_v40 = vrot.slane %v6304_v31, %v13882_v39  ;;  %v6319_v46 = vcombine.high %v6311_v49, %v6311_v49  ;;  %v7417_v53 = vcombine.low %v7409_v56, %v7416_v47  ;;  %v13279_v55 = vpop.eup %13278  ;;  %v6327_v26 = vrot.slane %v6311_v49, %v13882_v39 }
 0x507   : > { %v8585_v12 = vmul.f32 %v13279_v55, %v15597_v22  ;;  %v7361_v22 = vrot.slane %v15888_v6, %v13882_v39 }
 0x508   : > { %v6320_v0 = vcombine.high %v6318_v40, %v6318_v40  ;;  %v6341_v7 = vrot.slane %v6319_v46, %v13882_v39  ;;  %v7479_v45 = vpack.c.bf16 %v7431_v59, %v7417_v53  ;;  %v6334_v21 = vrot.slane %v6318_v40, %v13882_v39 }
 0x509   : > { %v7368_v11 = vrot.slane %v7361_v22, %v13882_v39 }
 0x50a   : > { %v13281_v27 = vpop.eup %13280  ;;  %v6348_v4 = vrot.slane %v6320_v0, %v13882_v39  ;;  %v7306_v38 = vcombine.low %v6327_v26, %v6341_v7  ;;  %v12495_v5 = vcombine.high %v6327_v26, %v6341_v7  ;;  %v9316_v58 = vand.u32 %v15227_v2, %v7479_v45 }
 0x50b   : > { %v8586_v28 = vmul.f32 %v13281_v27, %v15604_v13  ;;  %v16548_v13 = vmov 0   ;;  %v13283_v61 = vpop.eup %13282 }
 0x50c   : > { %v7308_v15 = vcombine.low %v6334_v21, %v6348_v4  ;;  %v12496_v35 = vcombine.high %v6334_v21, %v6348_v4  ;;  %v7316_v34 = vrot.slane %v7306_v38, %v13882_v39  ;;  %v7323_v1 = vrot.slane %v12495_v5, %v13882_v39  ;;  %12921 = vmatpush3.bf16.msra.mxu0 %v9316_v58  ;;  %v13285_v62 = vpop.eup %13284 }
 0x50d   : > { %v8602_v25 = vpack.c.bf16 %v8586_v28, %v8585_v12  ;;  %v8583_v63 = vmul.f32 %v13283_v61, %v15586_v29  ;;  %v8584_v50 = vmul.f32 %v13285_v62, %v15590_v3 }
 0x50e   : > { %v7330_v10 = vrot.slane %v7308_v15, %v13882_v39  ;;  %v7337_v32 = vrot.slane %v12496_v35, %v13882_v39  ;;  %v7338_v19 = vcombine.low %v7316_v34, %v7323_v1 }
 0x50f   : > { %12923 = vmatmul.mubr.msk.bf16.vlgmr.msra.gmra.mrb[72].mxu0 %vm8233_vm4, %v8602_v25  ;;  %v8601_v6 = vpack.c.bf16 %v8584_v50, %v8583_v63 }
 0x510   : > { %v7339_v37 = vcombine.low %v7330_v10, %v7337_v32  ;;  %11719 = vmatprep.mubr.bf16.mxu0 %v16548_v13  ;;  %v7346_v41 = vrot.slane %v7338_v19, %v13882_v39 }
 0x512   : > { %v7353_v33 = vrot.slane %v7339_v37, %v13882_v39 }
 0x514   : > { %v7354_v23 = vcombine.low %v7346_v41, %v7353_v33 }
 0x516   : > { %v7478_v30 = vpack.c.bf16 %v7368_v11, %v7354_v23 }
 0x518   : > { %v9269_v9 = vand.u32 %v15227_v2, %v7478_v30 }
 0x51a   : > { %12915 = vmatpush3.bf16.msra.mxu1 %v9269_v9 }
 0x51d   : > { %12917 = vmatmul.mubr.msk.bf16.vlgmr.msra.gmra.mrb[60].mxu1 %vm8233_vm4, %v8601_v6 }
 0x533   : > { %v15949_v20 = vpop.f32.mrb[32].mxu1 }
 0x534   : > { %v12834_v17 = vpop.f32.mrb[33].mxu1 }
 0x535   : > { %v8650_v57 = vpop.f32.mrb[34].mxu1 }
 0x536   : > { %v12835_v36 = vpop.f32.mrb[35].mxu1  ;;  %v9446_v44 = vrot.slane %v8650_v57, %v13882_v39 }
 0x538   : > { %v9453_v51 = vrot.slane %v9446_v44, %v13882_v39 }
 0x53f   : > { %v8694_v43 = vpop.f32.mrb[44].mxu0 }
 0x540   : > { %v9454_v42 = vcombine.high %v8694_v43, %v8694_v43  ;;  %v9461_v52 = vrot.slane %v8694_v43, %v13882_v39  ;;  %v12840_v29 = vpop.f32.mrb[45].mxu0 }
 0x541   : > { %v8697_v16 = vpop.f32.mrb[46].mxu0 }
 0x542   : > { %v9468_v2 = vrot.slane %v9454_v42, %v13882_v39  ;;  %v9469_v3 = vcombine.high %v9461_v52, %v9461_v52  ;;  %v9477_v14 = vrot.slane %v9461_v52, %v13882_v39  ;;  %v12841_v24 = vpop.f32.mrb[47].mxu0  ;;  %v9509_v8 = vrot.slane %v8697_v16, %v13882_v39 }
 0x544   : > { %v9470_v18 = vcombine.high %v9468_v2, %v9468_v2  ;;  %v9484_v48 = vrot.slane %v9468_v2, %v13882_v39  ;;  %v9491_v54 = vrot.slane %v9469_v3, %v13882_v39  ;;  %v9499_v60 = vcombine.high %v9477_v14, %v9477_v14 }
 0x545   : > { %v10448_v47 = vcombine.low %v9453_v51, %v9477_v14  ;;  %v9516_v46 = vrot.slane %v9509_v8, %v13882_v39 }
 0x546   : > { %v9498_v31 = vrot.slane %v9470_v18, %v13882_v39  ;;  %v9500_v49 = vcombine.high %v9484_v48, %v9484_v48  ;;  %v9501_v56 = vcombine.high %v9491_v54, %v9491_v54  ;;  %v10449_v59 = vcombine.low %v9491_v54, %v9499_v60 }
 0x547   : > { %v10458_v40 = vrot.slane %v10448_v47, %v13882_v39 }
 0x548   : > { %v10450_v53 = vcombine.low %v9501_v56, %v9484_v48  ;;  %v10451_v55 = vcombine.low %v9498_v31, %v9500_v49  ;;  %v10465_v0 = vrot.slane %v10449_v59, %v13882_v39  ;;  %v9502_v26 = vcombine.high %v9498_v31, %v9498_v31 }
 0x54a   : > { %v10472_v7 = vrot.slane %v10450_v53, %v13882_v39  ;;  %v10479_v45 = vrot.slane %v10451_v55, %v13882_v39  ;;  %v10480_v21 = vcombine.low %v10458_v40, %v10465_v0  ;;  %v15965_v27 = vcombine.low %v9502_v26, %v9516_v46 }
 0x54c   : > { %v10481_v4 = vcombine.low %v10472_v7, %v10479_v45  ;;  %v10488_v38 = vrot.slane %v10480_v21, %v13882_v39 }
 0x54e   : > { %v10495_v5 = vrot.slane %v10481_v4, %v13882_v39 }
 0x550   : > { %v15969_v58 = vcombine.low %v10488_v38, %v10495_v5 }
 0x575   : > { %v8741_v12 = vpop.f32.mrb[36].mxu1 }
 0x576   : > { %v9517_v28 = vcombine.high %v8741_v12, %v8741_v12  ;;  %v9524_v15 = vrot.slane %v8741_v12, %v13882_v39  ;;  %v12846_v35 = vpop.f32.mrb[37].mxu1 }
 0x577   : > { %v8744_v34 = vpop.f32.mrb[38].mxu1 }
 0x578   : > { %v9531_v1 = vrot.slane %v9517_v28, %v13882_v39  ;;  %v9532_v25 = vcombine.high %v9524_v15, %v9524_v15  ;;  %v12847_v10 = vpop.f32.mrb[39].mxu1  ;;  %v9572_v32 = vrot.slane %v8744_v34, %v13882_v39  ;;  %v9540_v37 = vrot.slane %v9524_v15, %v13882_v39 }
 0x579   : > { %v8788_v19 = vpop.f32.mrb[48].mxu0 }
 0x57a   : > { %v9533_v22 = vcombine.high %v9531_v1, %v9531_v1  ;;  %v9554_v41 = vrot.slane %v9532_v25, %v13882_v39  ;;  %v12852_v33 = vpop.f32.mrb[49].mxu0  ;;  %v9580_v61 = vcombine.high %v8788_v19, %v8788_v19  ;;  %v9587_v11 = vrot.slane %v8788_v19, %v13882_v39 }
 0x57b   : > { %v8791_v23 = vpop.f32.mrb[50].mxu0  ;;  %v9547_v62 = vrot.slane %v9531_v1, %v13882_v39  ;;  %v9579_v6 = vrot.slane %v9572_v32, %v13882_v39 }
 0x57c   : > { %v9561_v30 = vrot.slane %v9533_v22, %v13882_v39  ;;  %v10515_v63 = vcombine.low %v9540_v37, %v9554_v41  ;;  %v12531_v9 = vcombine.high %v9540_v37, %v9554_v41  ;;  %v12853_v50 = vpop.f32.mrb[51].mxu0  ;;  %v9594_v17 = vrot.slane %v9580_v61, %v13882_v39 }
 0x57d   : > { %v9595_v57 = vcombine.high %v9587_v11, %v9587_v11  ;;  %v9603_v36 = vrot.slane %v9587_v11, %v13882_v39  ;;  %v8835_v44 = vpop.f32.mrb[40].mxu1  ;;  %v9635_v29 = vrot.slane %v8791_v23, %v13882_v39 }
 0x57e   : > { %v10517_v43 = vcombine.low %v9547_v62, %v9561_v30  ;;  %v12532_v42 = vcombine.high %v9547_v62, %v9561_v30  ;;  %v10525_v52 = vrot.slane %v10515_v63, %v13882_v39  ;;  %v12858_v16 = vpop.f32.mrb[41].mxu1  ;;  %v9596_v2 = vcombine.high %v9594_v17, %v9594_v17 }
 0x57f   : > { %v9610_v3 = vrot.slane %v9594_v17, %v13882_v39  ;;  %v9617_v14 = vrot.slane %v9595_v57, %v13882_v39  ;;  %v9625_v24 = vcombine.high %v9603_v36, %v9603_v36  ;;  %v8838_v51 = vpop.f32.mrb[42].mxu1  ;;  %v10532_v8 = vrot.slane %v12531_v9, %v13882_v39 }
 0x580   : > { %v10539_v18 = vrot.slane %v10517_v43, %v13882_v39  ;;  %v10546_v48 = vrot.slane %v12532_v42, %v13882_v39  ;;  %v10564_v54 = vcombine.low %v9579_v6, %v9603_v36  ;;  %v12859_v60 = vpop.f32.mrb[43].mxu1  ;;  %v9624_v47 = vrot.slane %v9596_v2, %v13882_v39 }
 0x581   : > { %v9626_v31 = vcombine.high %v9610_v3, %v9610_v3  ;;  %v9627_v49 = vcombine.high %v9617_v14, %v9617_v14  ;;  %v10565_v56 = vcombine.low %v9617_v14, %v9625_v24  ;;  %v9642_v46 = vrot.slane %v9635_v29, %v13882_v39 }
 0x582   : > { %v10548_v59 = vcombine.low %v10539_v18, %v10546_v48  ;;  %v10574_v40 = vrot.slane %v10564_v54, %v13882_v39  ;;  %v9643_v53 = vcombine.high %v8835_v44, %v8835_v44  ;;  %v9628_v7 = vcombine.high %v9624_v47, %v9624_v47 }
 0x583   : > { %v10566_v55 = vcombine.low %v9627_v49, %v9610_v3  ;;  %v10567_v0 = vcombine.low %v9624_v47, %v9626_v31  ;;  %v10581_v26 = vrot.slane %v10565_v56, %v13882_v39  ;;  %v10547_v45 = vcombine.low %v10525_v52, %v10532_v8 }
 0x584   : > { %v9650_v21 = vrot.slane %v8835_v44, %v13882_v39  ;;  %v9657_v4 = vrot.slane %v9643_v53, %v13882_v39  ;;  %v10613_v28 = vcombine.low %v9628_v7, %v9642_v46  ;;  %v10562_v34 = vrot.slane %v10548_v59, %v13882_v39 }
 0x585   : > { %v10588_v38 = vrot.slane %v10566_v55, %v13882_v39  ;;  %v10595_v5 = vrot.slane %v10567_v0, %v13882_v39  ;;  %v10596_v12 = vcombine.low %v10574_v40, %v10581_v26  ;;  %v10555_v32 = vrot.slane %v10547_v45, %v13882_v39 }
 0x586   : > { %v10620_v35 = vrot.slane %v10613_v28, %v13882_v39  ;;  %v9658_v1 = vcombine.high %v9650_v21, %v9650_v21  ;;  %v9659_v25 = vcombine.high %v9657_v4, %v9657_v4  ;;  %v9666_v23 = vrot.slane %v9650_v21, %v13882_v39 }
 0x587   : > { %v10597_v15 = vcombine.low %v10588_v38, %v10595_v5  ;;  %v10604_v19 = vrot.slane %v10596_v12, %v13882_v39  ;;  %v10563_v37 = vcombine.low %v10555_v32, %v10562_v34  ;;  %v9673_v62 = vrot.slane %v9657_v4, %v13882_v39 }
 0x588   : > { %v10627_v10 = vrot.slane %v10620_v35, %v13882_v39  ;;  %v9680_v33 = vrot.slane %v9658_v1, %v13882_v39  ;;  %v9687_v61 = vrot.slane %v9659_v25, %v13882_v39  ;;  %v9698_v30 = vrot.slane %v8838_v51, %v13882_v39 }
 0x589   : > { %v10611_v22 = vrot.slane %v10597_v15, %v13882_v39 }
 0x58a   : > { %10632 = vrot.lane.b32.xlu0 %v10627_v10, %s13499_s13  ;;  %v10637_v63 = vcombine.low %v9666_v23, %v9680_v33  ;;  %v10639_v9 = vcombine.low %v9673_v62, %v9687_v61  ;;  %v12534_v50 = vcombine.high %v9673_v62, %v9687_v61  ;;  %v12533_v44 = vcombine.high %v9666_v23, %v9680_v33 }
 0x58b   : > { %v10612_v41 = vcombine.low %v10604_v19, %v10611_v22  ;;  %v9705_v42 = vrot.slane %v9698_v30, %v13882_v39 }
 0x58c   : > { %v10647_v3 = vrot.slane %v10637_v63, %v13882_v39  ;;  %v10661_v14 = vrot.slane %v10639_v9, %v13882_v39  ;;  %v10668_v24 = vrot.slane %v12534_v50, %v13882_v39  ;;  %v10654_v31 = vrot.slane %v12533_v44, %v13882_v39 }
 0x58d   : > { %v13043_v11 = vpack.i.bf16 %v10612_v41, %v10563_v37 }
 0x58e   : > { %v8882_v6 = vpop.f32.mrb[52].mxu0  ;;  %v10670_v7 = vcombine.low %v10661_v14, %v10668_v24  ;;  %v10669_v15 = vcombine.low %v10647_v3, %v10654_v31 }
 0x58f   : > { %13044 = vrot.lane.b32.xlu1 %v13043_v11, %s13499_s13  ;;  %v9706_v17 = vcombine.high %v8882_v6, %v8882_v6  ;;  %v9713_v57 = vrot.slane %v8882_v6, %v13882_v39  ;;  %v12864_v36 = vpop.f32.mrb[53].mxu0 }
 0x590   : > { %v8885_v43 = vpop.f32.mrb[54].mxu0  ;;  %v10684_v41 = vrot.slane %v10670_v7, %v13882_v39  ;;  %v10677_v23 = vrot.slane %v10669_v15, %v13882_v39 }
 0x591   : > { %v9720_v52 = vrot.slane %v9706_v17, %v13882_v39  ;;  %v9721_v29 = vcombine.high %v9713_v57, %v9713_v57  ;;  %v9729_v16 = vrot.slane %v9713_v57, %v13882_v39  ;;  %v12865_v2 = vpop.f32.mrb[55].mxu0  ;;  %v9761_v51 = vrot.slane %v8885_v43, %v13882_v39 }
 0x592   : > { %v8929_v8 = vpop.f32.mrb[44].mxu1  ;;  %v10685_v6 = vcombine.low %v10677_v23, %v10684_v41 }
 0x593   : > { %v9722_v18 = vcombine.high %v9720_v52, %v9720_v52  ;;  %v9736_v48 = vrot.slane %v9720_v52, %v13882_v39  ;;  %v9743_v54 = vrot.slane %v9721_v29, %v13882_v39  ;;  %v9751_v60 = vcombine.high %v9729_v16, %v9729_v16  ;;  %v12870_v47 = vpop.f32.mrb[45].mxu1 }
 0x594   : > { %v10686_v49 = vcombine.low %v9705_v42, %v9729_v16  ;;  %v9769_v56 = vcombine.high %v8929_v8, %v8929_v8  ;;  %v9776_v59 = vrot.slane %v8929_v8, %v13882_v39  ;;  %v8932_v40 = vpop.f32.mrb[46].mxu1  ;;  %v9768_v21 = vrot.slane %v9761_v51, %v13882_v39 }
 0x595   : > { %v9750_v46 = vrot.slane %v9722_v18, %v13882_v39  ;;  %v9752_v53 = vcombine.high %v9736_v48, %v9736_v48  ;;  %v9753_v55 = vcombine.high %v9743_v54, %v9743_v54  ;;  %v10687_v0 = vcombine.low %v9743_v54, %v9751_v60  ;;  %v12871_v26 = vpop.f32.mrb[47].mxu1 }
 0x596   : > { %v10696_v45 = vrot.slane %v10686_v49, %v13882_v39  ;;  %v9783_v4 = vrot.slane %v9769_v56, %v13882_v39  ;;  %v9784_v35 = vcombine.high %v9776_v59, %v9776_v59  ;;  %v9792_v63 = vrot.slane %v9776_v59, %v13882_v39 }
 0x597   : > { %v10688_v38 = vcombine.low %v9753_v55, %v9736_v48  ;;  %v10689_v5 = vcombine.low %v9750_v46, %v9752_v53  ;;  %v10703_v12 = vrot.slane %v10687_v0, %v13882_v39  ;;  %v9754_v28 = vcombine.high %v9750_v46, %v9750_v46 }
 0x598   : > { %v9785_v34 = vcombine.high %v9783_v4, %v9783_v4  ;;  %v9799_v33 = vrot.slane %v9783_v4, %v13882_v39  ;;  %v9806_v61 = vrot.slane %v9784_v35, %v13882_v39  ;;  %v9824_v36 = vrot.slane %v8932_v40, %v13882_v39 }
 0x599   : > { %v10710_v1 = vrot.slane %v10688_v38, %v13882_v39  ;;  %v10717_v25 = vrot.slane %v10689_v5, %v13882_v39  ;;  %v10718_v10 = vcombine.low %v10696_v45, %v10703_v12  ;;  %v10735_v32 = vcombine.low %v9754_v28, %v9768_v21 }
 0x59a   : > { %v9813_v19 = vrot.slane %v9785_v34, %v13882_v39  ;;  %v10759_v57 = vcombine.low %v9792_v63, %v9806_v61  ;;  %v12535_v16 = vcombine.high %v9792_v63, %v9806_v61  ;;  %v9831_v60 = vrot.slane %v9824_v36, %v13882_v39 }
 0x59b   : > { %v10719_v22 = vcombine.low %v10710_v1, %v10717_v25  ;;  %v10742_v37 = vrot.slane %v10735_v32, %v13882_v39  ;;  %v10726_v62 = vrot.slane %v10718_v10, %v13882_v39 }
 0x59c   : > { %v10761_v9 = vcombine.low %v9799_v33, %v9813_v19  ;;  %v12536_v50 = vcombine.high %v9799_v33, %v9813_v19  ;;  %v10769_v54 = vrot.slane %v10759_v57, %v13882_v39  ;;  %v10776_v55 = vrot.slane %v12535_v16, %v13882_v39 }
 0x59d   : > { %v10749_v11 = vrot.slane %v10742_v37, %v13882_v39  ;;  %v10733_v30 = vrot.slane %v10719_v22, %v13882_v39 }
 0x59e   : > { %v10783_v2 = vrot.slane %v10761_v9, %v13882_v39  ;;  %v10790_v3 = vrot.slane %v12536_v50, %v13882_v39  ;;  %v10791_v32 = vcombine.low %v10769_v54, %v10776_v55 }
 0x59f   : > { %10754 = vrot.lane.b32.xlu0 %v10749_v11, %s13498_s14  ;;  %v10734_v17 = vcombine.low %v10726_v62, %v10733_v30 }
 0x5a0   : > { %v8976_v44 = vpop.f32.mrb[56].mxu0  ;;  %v10792_v0 = vcombine.low %v10783_v2, %v10790_v3  ;;  %v10799_v9 = vrot.slane %v10791_v32, %v13882_v39 }
 0x5a1   : > { %v9832_v43 = vcombine.high %v8976_v44, %v8976_v44  ;;  %v9839_v42 = vrot.slane %v8976_v44, %v13882_v39  ;;  %v12876_v52 = vpop.f32.mrb[57].mxu0  ;;  %v13048_v29 = vpack.i.bf16 %v10734_v17, %v10685_v6 }
 0x5a2   : > { %v8979_v14 = vpop.f32.mrb[58].mxu0  ;;  %v10806_v62 = vrot.slane %v10792_v0, %v13882_v39 }
 0x5a3   : > { %v9846_v24 = vrot.slane %v9832_v43, %v13882_v39  ;;  %v9847_v51 = vcombine.high %v9839_v42, %v9839_v42  ;;  %v9855_v8 = vrot.slane %v9839_v42, %v13882_v39  ;;  %v12877_v18 = vpop.f32.mrb[59].mxu0  ;;  %13049 = vrot.lane.b32.xlu1 %v13048_v29, %s13498_s14  ;;  %v9887_v47 = vrot.slane %v8979_v14, %v13882_v39 }
 0x5a4   : > { %v9023_v48 = vpop.f32.mrb[48].mxu1  ;;  %v10807_v44 = vcombine.low %v10799_v9, %v10806_v62 }
 0x5a5   : > { %v9895_v31 = vcombine.high %v9023_v48, %v9023_v48  ;;  %v12882_v49 = vpop.f32.mrb[49].mxu1  ;;  %v9848_v56 = vcombine.high %v9846_v24, %v9846_v24  ;;  %v9862_v59 = vrot.slane %v9846_v24, %v13882_v39  ;;  %v9869_v40 = vrot.slane %v9847_v51, %v13882_v39 }
 0x5a6   : > { %v9877_v46 = vcombine.high %v9855_v8, %v9855_v8  ;;  %v9026_v53 = vpop.f32.mrb[50].mxu1  ;;  %v10808_v26 = vcombine.low %v9831_v60, %v9855_v8  ;;  %v9894_v28 = vrot.slane %v9887_v47, %v13882_v39  ;;  %v9902_v15 = vrot.slane %v9023_v48, %v13882_v39 }
 0x5a7   : > { %v9909_v7 = vrot.slane %v9895_v31, %v13882_v39  ;;  %v12883_v45 = vpop.f32.mrb[51].mxu1  ;;  %v9876_v21 = vrot.slane %v9848_v56, %v13882_v39  ;;  %v9878_v4 = vcombine.high %v9862_v59, %v9862_v59  ;;  %v9879_v38 = vcombine.high %v9869_v40, %v9869_v40 }
 0x5a8   : > { %v10809_v5 = vcombine.low %v9869_v40, %v9877_v46  ;;  %v10818_v12 = vrot.slane %v10808_v26, %v13882_v39  ;;  %v9910_v33 = vcombine.high %v9902_v15, %v9902_v15  ;;  %v9918_v42 = vrot.slane %v9902_v15, %v13882_v39 }
 0x5a9   : > { %v9911_v35 = vcombine.high %v9909_v7, %v9909_v7  ;;  %v10810_v34 = vcombine.low %v9879_v38, %v9862_v59  ;;  %v10811_v1 = vcombine.low %v9876_v21, %v9878_v4  ;;  %v9880_v10 = vcombine.high %v9876_v21, %v9876_v21 }
 0x5aa   : > { %v10825_v25 = vrot.slane %v10809_v5, %v13882_v39  ;;  %v9925_v30 = vrot.slane %v9909_v7, %v13882_v39  ;;  %v9932_v17 = vrot.slane %v9910_v33, %v13882_v39  ;;  %v9950_v52 = vrot.slane %v9026_v53, %v13882_v39 }
 0x5ab   : > { %v10832_v19 = vrot.slane %v10810_v34, %v13882_v39  ;;  %v10839_v22 = vrot.slane %v10811_v1, %v13882_v39  ;;  %v10857_v41 = vcombine.low %v9880_v10, %v9894_v28  ;;  %v9939_v61 = vrot.slane %v9911_v35, %v13882_v39 }
 0x5ac   : > { %v10840_v37 = vcombine.low %v10818_v12, %v10825_v25  ;;  %v10881_v24 = vcombine.low %v9918_v42, %v9932_v17  ;;  %v12537_v51 = vcombine.high %v9918_v42, %v9932_v17  ;;  %v9957_v49 = vrot.slane %v9950_v52, %v13882_v39 }
 0x5ad   : > { %v10841_v11 = vcombine.low %v10832_v19, %v10839_v22  ;;  %v10864_v23 = vrot.slane %v10857_v41, %v13882_v39  ;;  %v10883_v57 = vcombine.low %v9925_v30, %v9939_v61  ;;  %v12538_v36 = vcombine.high %v9925_v30, %v9939_v61 }
 0x5ae   : > { %v10848_v50 = vrot.slane %v10840_v37, %v13882_v39  ;;  %v10891_v55 = vrot.slane %v10881_v24, %v13882_v39  ;;  %v10898_v0 = vrot.slane %v12537_v51, %v13882_v39 }
 0x5af   : > { %v10871_v63 = vrot.slane %v10864_v23, %v13882_v39  ;;  %v10855_v6 = vrot.slane %v10841_v11, %v13882_v39  ;;  %v10905_v8 = vrot.slane %v10883_v57, %v13882_v39  ;;  %v10912_v18 = vrot.slane %v12538_v36, %v13882_v39 }
 0x5b0   : > { %v10913_v22 = vcombine.low %v10891_v55, %v10898_v0 }
 0x5b1   : > { %10876 = vrot.lane.b32.xlu0 %v10871_v63, %s13497_s29  ;;  %v10856_v43 = vcombine.low %v10848_v50, %v10855_v6  ;;  %v10914_v26 = vcombine.low %v10905_v8, %v10912_v18 }
 0x5b3   : > { %v13053_v14 = vpack.i.bf16 %v10856_v43, %v10807_v44  ;;  %v10928_v50 = vrot.slane %v10914_v26, %v13882_v39  ;;  %v10921_v44 = vrot.slane %v10913_v22, %v13882_v39 }
 0x5b4   : > { %v9070_v29 = vpop.f32.mrb[60].mxu0 }
 0x5b5   : > { %v9958_v16 = vcombine.high %v9070_v29, %v9070_v29  ;;  %v9965_v2 = vrot.slane %v9070_v29, %v13882_v39  ;;  %v12888_v3 = vpop.f32.mrb[61].mxu0  ;;  %13054 = vrot.lane.b32.xlu1 %v13053_v14, %s13497_s29  ;;  %s16559_s29 = sld [smem:[#allocation44_spill]] (!%p12591_p7) }
 0x5b6   : > { %v9073_v48 = vpop.f32.mrb[62].mxu0 }
 0x5b7   : > { %v9972_v54 = vrot.slane %v9958_v16, %v13882_v39  ;;  %v9973_v60 = vcombine.high %v9965_v2, %v9965_v2  ;;  %v9981_v47 = vrot.slane %v9965_v2, %v13882_v39  ;;  %v12889_v31 = vpop.f32.mrb[63].mxu0  ;;  %v10013_v56 = vrot.slane %v9073_v48, %v13882_v39 }
 0x5b8   : > { %v10929_v2 = vcombine.low %v10921_v44, %v10928_v50 }
 0x5b9   : > { %v9974_v59 = vcombine.high %v9972_v54, %v9972_v54  ;;  %v9988_v40 = vrot.slane %v9972_v54, %v13882_v39  ;;  %v9995_v46 = vrot.slane %v9973_v60, %v13882_v39  ;;  %v10003_v53 = vcombine.high %v9981_v47, %v9981_v47 }
 0x5ba   : > { %v10930_v7 = vcombine.low %v9957_v49, %v9981_v47  ;;  %v9117_v5 = vpop.f32.mrb[52].mxu1  ;;  %v10020_v28 = vrot.slane %v10013_v56, %v13882_v39 }
 0x5bb   : > { %v10002_v45 = vrot.slane %v9974_v59, %v13882_v39  ;;  %v10004_v21 = vcombine.high %v9988_v40, %v9988_v40  ;;  %v10005_v4 = vcombine.high %v9995_v46, %v9995_v46  ;;  %v10931_v38 = vcombine.low %v9995_v46, %v10003_v53  ;;  %v12894_v34 = vpop.f32.mrb[53].mxu1 }
 0x5bc   : > { %v10940_v12 = vrot.slane %v10930_v7, %v13882_v39  ;;  %v10021_v15 = vcombine.high %v9117_v5, %v9117_v5  ;;  %v10028_v35 = vrot.slane %v9117_v5, %v13882_v39  ;;  %v9120_v19 = vpop.f32.mrb[54].mxu1 }
 0x5bd   : > { %v10932_v1 = vcombine.low %v10005_v4, %v9988_v40  ;;  %v10933_v25 = vcombine.low %v10002_v45, %v10004_v21  ;;  %v10947_v10 = vrot.slane %v10931_v38, %v13882_v39  ;;  %v10006_v32 = vcombine.high %v10002_v45, %v10002_v45  ;;  %v12895_v33 = vpop.f32.mrb[55].mxu1 }
 0x5be   : > { %v10035_v37 = vrot.slane %v10021_v15, %v13882_v39  ;;  %v10036_v41 = vcombine.high %v10028_v35, %v10028_v35  ;;  %v10044_v52 = vrot.slane %v10028_v35, %v13882_v39  ;;  %v10076_v48 = vrot.slane %v9120_v19, %v13882_v39 }
 0x5bf   : > { %v10954_v61 = vrot.slane %v10932_v1, %v13882_v39  ;;  %v10961_v11 = vrot.slane %v10933_v25, %v13882_v39  ;;  %v10962_v23 = vcombine.low %v10940_v12, %v10947_v10  ;;  %v10979_v62 = vcombine.low %v10006_v32, %v10020_v28 }
 0x5c0   : > { %v10037_v30 = vcombine.high %v10035_v37, %v10035_v37  ;;  %v10051_v6 = vrot.slane %v10035_v37, %v13882_v39  ;;  %v10058_v17 = vrot.slane %v10036_v41, %v13882_v39  ;;  %v10083_v40 = vrot.slane %v10076_v48, %v13882_v39 }
 0x5c1   : > { %v10963_v63 = vcombine.low %v10954_v61, %v10961_v11  ;;  %v10986_v9 = vrot.slane %v10979_v62, %v13882_v39  ;;  %v10970_v43 = vrot.slane %v10962_v23, %v13882_v39 }
 0x5c2   : > { %v10065_v57 = vrot.slane %v10037_v30, %v13882_v39  ;;  %v11003_v14 = vcombine.low %v10044_v52, %v10058_v17  ;;  %v12539_v24 = vcombine.high %v10044_v52, %v10058_v17 }
 0x5c3   : > { %v10993_v36 = vrot.slane %v10986_v9, %v13882_v39  ;;  %v10977_v42 = vrot.slane %v10963_v63, %v13882_v39 }
 0x5c4   : > { %v11005_v29 = vcombine.low %v10051_v6, %v10065_v57  ;;  %v12540_v16 = vcombine.high %v10051_v6, %v10065_v57  ;;  %v11013_v54 = vrot.slane %v11003_v14, %v13882_v39  ;;  %v11020_v60 = vrot.slane %v12539_v24, %v13882_v39 }
 0x5c5   : > { %10998 = vrot.lane.b32.xlu0 %v10993_v36, %s13496_s27  ;;  %v10978_v3 = vcombine.low %v10970_v43, %v10977_v42 }
 0x5c6   : > { %v11027_v51 = vrot.slane %v11005_v29, %v13882_v39  ;;  %v11034_v8 = vrot.slane %v12540_v16, %v13882_v39  ;;  %v11035_v21 = vcombine.low %v11013_v54, %v11020_v60 }
 0x5c7   : > { %v13058_v18 = vpack.i.bf16 %v10978_v3, %v10929_v2 }
 0x5c8   : > { %v11036_v47 = vcombine.low %v11027_v51, %v11034_v8 }
 0x5c9   : > { %13059 = vrot.lane.b32.xlu1 %v13058_v18, %s13496_s27  ;;  %v11043_v18 = vrot.slane %v11035_v21, %v13882_v39 }
 0x5ca   : > { %v9164_v31 = vpop.f32.mrb[64].mxu0  ;;  %v16117_v12 = vrot.slane %v11036_v47, %v13882_v39 }
 0x5cb   : > { %v10084_v49 = vcombine.high %v9164_v31, %v9164_v31  ;;  %v10091_v56 = vrot.slane %v9164_v31, %v13882_v39  ;;  %v12900_v59 = vpop.f32.mrb[65].mxu0 }
 0x5cc   : > { %v9167_v46 = vpop.f32.mrb[66].mxu0 }
 0x5cd   : > { %v10098_v53 = vrot.slane %v10084_v49, %v13882_v39  ;;  %v10099_v55 = vcombine.high %v10091_v56, %v10091_v56  ;;  %v10107_v0 = vrot.slane %v10091_v56, %v13882_v39  ;;  %v10139_v26 = vrot.slane %v9167_v46, %v13882_v39  ;;  %v12901_v7 = vpop.f32.mrb[67].mxu0 }
 0x5ce   : > { %v9211_v45 = vpop.f32.mrb[56].mxu1  ;;  %v11051_v49 = vcombine.low %v11043_v18, %v16117_v12 }
 0x5cf   : > { %v10147_v4 = vcombine.high %v9211_v45, %v9211_v45  ;;  %v10154_v38 = vrot.slane %v9211_v45, %v13882_v39  ;;  %v12906_v5 = vpop.f32.mrb[57].mxu1  ;;  %v10100_v28 = vcombine.high %v10098_v53, %v10098_v53  ;;  %v10114_v15 = vrot.slane %v10098_v53, %v13882_v39 }
 0x5d0   : > { %v10121_v35 = vrot.slane %v10099_v55, %v13882_v39  ;;  %v10129_v34 = vcombine.high %v10107_v0, %v10107_v0  ;;  %v9214_v1 = vpop.f32.mrb[58].mxu1  ;;  %v11052_v25 = vcombine.low %v10083_v40, %v10107_v0  ;;  %v10146_v10 = vrot.slane %v10139_v26, %v13882_v39 }
 0x5d1   : > { %v10161_v32 = vrot.slane %v10147_v4, %v13882_v39  ;;  %v10162_v19 = vcombine.high %v10154_v38, %v10154_v38  ;;  %v12907_v22 = vpop.f32.mrb[59].mxu1  ;;  %v10128_v37 = vrot.slane %v10100_v28, %v13882_v39  ;;  %v10130_v41 = vcombine.high %v10114_v15, %v10114_v15 }
 0x5d2   : > { %v10131_v33 = vcombine.high %v10121_v35, %v10121_v35  ;;  %v11053_v61 = vcombine.low %v10121_v35, %v10129_v34  ;;  %v11062_v11 = vrot.slane %v11052_v25, %v13882_v39  ;;  %v10170_v62 = vrot.slane %v10154_v38, %v13882_v39 }
 0x5d3   : > { %v10163_v23 = vcombine.high %v10161_v32, %v10161_v32  ;;  %v10177_v30 = vrot.slane %v10161_v32, %v13882_v39  ;;  %v11055_v9 = vcombine.low %v10128_v37, %v10130_v41  ;;  %v10132_v6 = vcombine.high %v10128_v37, %v10128_v37 }
 0x5d4   : > { %v11054_v63 = vcombine.low %v10131_v33, %v10114_v15  ;;  %v11069_v50 = vrot.slane %v11053_v61, %v13882_v39  ;;  %v9258_v17 = vpop.f32.mrb[68].mxu0  ;;  %v10184_v57 = vrot.slane %v10162_v19, %v13882_v39  ;;  %v10202_v44 = vrot.slane %v9214_v1, %v13882_v39 }
 0x5d5   : > { %v10191_v36 = vrot.slane %v10163_v23, %v13882_v39  ;;  %v10210_v43 = vcombine.high %v9258_v17, %v9258_v17  ;;  %v12912_v42 = vpop.f32.mrb[69].mxu0  ;;  %v11083_v29 = vrot.slane %v11055_v9, %v13882_v39  ;;  %v11101_v2 = vcombine.low %v10132_v6, %v10146_v10  ;;  %v13110_v23 = vld [vmem:[%s13780_s28] sm:$0xff]  }
 0x5d6   : > { %v11076_v52 = vrot.slane %v11054_v63, %v13882_v39  ;;  %v11084_v16 = vcombine.low %v11062_v11, %v11069_v50  ;;  %v9261_v3 = vpop.f32.mrb[70].mxu0  ;;  %v11125_v14 = vcombine.low %v10170_v62, %v10184_v57  ;;  %v10217_v54 = vrot.slane %v9258_v17, %v13882_v39  ;;  %12926 = vmatprep.subr.bf16.mxu1 %v13110_v23 }
 0x5d7   : > { %v11127_v24 = vcombine.low %v10177_v30, %v10191_v36  ;;  %v12542_v51 = vcombine.high %v10177_v30, %v10191_v36  ;;  %v12913_v8 = vpop.f32.mrb[71].mxu0  ;;  %v11108_v48 = vrot.slane %v11101_v2, %v13882_v39  ;;  %v12541_v47 = vcombine.high %v10170_v62, %v10184_v57  ;;  %v13111_v62 = vld [vmem:[%s13780_s28 + $0x8] sm:$0xff]   ;;  %12927 = vmatpush3.bf16.msra.mxu1 %v13110_v23 }
 0x5d8   : > { %v11085_v60 = vcombine.low %v11076_v52, %v11083_v29  ;;  %v10209_v31 = vrot.slane %v10202_v44, %v13882_v39  ;;  %v11135_v56 = vrot.slane %v11125_v14, %v13882_v39  ;;  %v10224_v59 = vrot.slane %v10210_v43, %v13882_v39  ;;  %12928 = vmatprep.subr.bf16.mxu1 %v13111_v62 }
 0x5d9   : > { %v10225_v40 = vcombine.high %v10217_v54, %v10217_v54  ;;  %v10233_v46 = vrot.slane %v10217_v54, %v13882_v39  ;;  %v11149_v53 = vrot.slane %v11127_v24, %v13882_v39  ;;  %v11156_v55 = vrot.slane %v12542_v51, %v13882_v39 }
 0x5da   : > { %v10265_v0 = vrot.slane %v9261_v3, %v13882_v39  ;;  %v11115_v26 = vrot.slane %v11108_v48, %v13882_v39  ;;  %v10226_v7 = vcombine.high %v10224_v59, %v10224_v59  ;;  %v10240_v45 = vrot.slane %v10224_v59, %v13882_v39  ;;  %v13112_v48 = vld [vmem:[%s13780_s28 + $0x10] sm:$0xff]  }
 0x5db   : > { %v10247_v21 = vrot.slane %v10225_v40, %v13882_v39  ;;  %v10255_v4 = vcombine.high %v10233_v46, %v10233_v46  ;;  %v11142_v38 = vrot.slane %v12541_v47, %v13882_v39  ;;  %v11174_v5 = vcombine.low %v10209_v31, %v10233_v46  ;;  %12929 = vmatpush3.bf16.msra.mxu1 %v13111_v62  ;;  %v13113_v31 = vld [vmem:[%s13780_s28 + $0x18] sm:$0xff]  }
 0x5dc   : > { %11120 = vrot.lane.b32.xlu0 %v11115_v26, %s13495_s26  ;;  %v11092_v12 = vrot.slane %v11084_v16, %v13882_v39  ;;  %v11099_v28 = vrot.slane %v11085_v60, %v13882_v39  ;;  %v10254_v15 = vrot.slane %v10226_v7, %v13882_v39  ;;  %v10256_v35 = vcombine.high %v10240_v45, %v10240_v45 }
 0x5dd   : > { %v10257_v34 = vcombine.high %v10247_v21, %v10247_v21  ;;  %v11175_v1 = vcombine.low %v10247_v21, %v10255_v4  ;;  %v11158_v25 = vcombine.low %v11149_v53, %v11156_v55  ;;  %v11184_v10 = vrot.slane %v11174_v5, %v13882_v39  ;;  %12930 = vmatprep.subr.bf16.mxu1 %v13112_v48  ;;  %v13114_v55 = vld [vmem:[%s13780_s28 + $0x20] sm:$0xff]  }
 0x5de   : > { %v10272_v32 = vrot.slane %v10265_v0, %v13882_v39  ;;  %v11100_v19 = vcombine.low %v11092_v12, %v11099_v28  ;;  %v11177_v37 = vcombine.low %v10254_v15, %v10256_v35  ;;  %v10258_v33 = vcombine.high %v10254_v15, %v10254_v15  ;;  %v13115_v28 = vld [vmem:[%s13780_s28 + $0x28] sm:$0xff]  }
 0x5df   : > { %v11176_v22 = vcombine.low %v10257_v34, %v10240_v45  ;;  %v11191_v41 = vrot.slane %v11175_v1, %v13882_v39  ;;  %v11157_v61 = vcombine.low %v11135_v56, %v11142_v38  ;;  %v11172_v52 = vrot.slane %v11158_v25, %v13882_v39  ;;  %12931 = vmatpush3.bf16.msra.mxu1 %v13112_v48 }
 0x5e0   : > { %v13063_v11 = vpack.i.bf16 %v11100_v19, %v11051_v49  ;;  %v11205_v63 = vrot.slane %v11177_v37, %v13882_v39  ;;  %v11223_v50 = vcombine.low %v10258_v33, %v10272_v32  ;;  %12932 = vmatprep.subr.bf16.mxu1 %v13113_v31 }
 0x5e1   : > { %v11198_v30 = vrot.slane %v11176_v22, %v13882_v39  ;;  %v11206_v9 = vcombine.low %v11184_v10, %v11191_v41  ;;  %v11165_v2 = vrot.slane %v11157_v61, %v13882_v39  ;;  %v13116_v61 = vld [vmem:[%s13780_s28 + $0x30] sm:$0xff]  }
 0x5e2   : > { %v9352_v6 = vpop.f32.mrb[72].mxu0  ;;  %13064 = vrot.lane.b32.xlu1 %v13063_v11, %s13495_s26  ;;  %v11230_v43 = vrot.slane %v11223_v50, %v13882_v39 }
 0x5e3   : > { %v10336_v17 = vcombine.high %v9352_v6, %v9352_v6  ;;  %v10343_v57 = vrot.slane %v9352_v6, %v13882_v39  ;;  %v12924_v36 = vpop.f32.mrb[73].mxu0  ;;  %v11207_v44 = vcombine.low %v11198_v30, %v11205_v63  ;;  %v11214_v24 = vrot.slane %v11206_v9, %v13882_v39  ;;  %12933 = vmatpush3.bf16.msra.mxu1 %v13113_v31 }
 0x5e4   : > { %v9355_v42 = vpop.f32.mrb[74].mxu0  ;;  %v11237_v14 = vrot.slane %v11230_v43, %v13882_v39  ;;  %v11173_v54 = vcombine.low %v11165_v2, %v11172_v52  ;;  %12934 = vmatprep.subr.bf16.mxu1 %v13114_v55  ;;  %v13117_v43 = vld [vmem:[%s13780_s28 + $0x38] sm:$0xff]   ;;  %v9391_v31 = vcombine.high %v15949_v20, %v15949_v20 }
 0x5e5   : > { %v10350_v29 = vrot.slane %v10336_v17, %v13882_v39  ;;  %v12925_v16 = vpop.f32.mrb[75].mxu0  ;;  %v10351_v3 = vcombine.high %v10343_v57, %v10343_v57  ;;  %v11221_v51 = vrot.slane %v11207_v44, %v13882_v39  ;;  %v10391_v18 = vrot.slane %v9355_v42, %v13882_v39 }
 0x5e6   : > { %11242 = vrot.lane.b32.xlu0 %v11237_v14, %s13494_s0  ;;  %v10359_v0 = vrot.slane %v10343_v57, %v13882_v39 }
 0x5e7   : > { %v10352_v8 = vcombine.high %v10350_v29, %v10350_v29  ;;  %v11222_v60 = vcombine.low %v11214_v24, %v11221_v51  ;;  %v10366_v49 = vrot.slane %v10350_v29, %v13882_v39  ;;  %v10373_v56 = vrot.slane %v10351_v3, %v13882_v39  ;;  %12935 = vmatpush3.bf16.msra.mxu1 %v13114_v55 }
 0x5e8   : > { %v10398_v46 = vrot.slane %v10391_v18, %v13882_v39  ;;  %v10381_v15 = vcombine.high %v10359_v0, %v10359_v0  ;;  %12936 = vmatprep.subr.bf16.mxu1 %v13115_v28 }
 0x5e9   : > { %v10380_v47 = vrot.slane %v10352_v8, %v13882_v39  ;;  %v13068_v59 = vpack.i.bf16 %v11222_v60, %v11173_v54  ;;  %v10382_v26 = vcombine.high %v10366_v49, %v10366_v49  ;;  %v10383_v7 = vcombine.high %v10373_v56, %v10373_v56 }
 0x5ea   : > { %v11297_v11 = vcombine.low %v10373_v56, %v10381_v15  ;;  %v9398_v56 = vrot.slane %v15949_v20, %v13882_v39 }
 0x5eb   : > { %v10384_v40 = vcombine.high %v10380_v47, %v10380_v47  ;;  %13069 = vrot.lane.b32.xlu1 %v13068_v59, %s13494_s0  ;;  %v11298_v35 = vcombine.low %v10383_v7, %v10366_v49  ;;  %v11299_v34 = vcombine.low %v10380_v47, %v10382_v26  ;;  %12937 = vmatpush3.bf16.msra.mxu1 %v13115_v28 }
 0x5ec   : > { %12938 = vmatprep.subr.bf16.mxu1 %v13116_v61  ;;  %v11313_v42 = vrot.slane %v11297_v11, %v13882_v39  ;;  %v9405_v49 = vrot.slane %v9391_v31, %v13882_v39  ;;  %v9414_v7 = vrot.slane %v9398_v56, %v13882_v39 }
 0x5ed   : > { %v11345_v53 = vcombine.low %v10384_v40, %v10398_v46  ;;  %v11320_v23 = vrot.slane %v11298_v35, %v13882_v39  ;;  %v11327_v62 = vrot.slane %v11299_v34, %v13882_v39  ;;  %v9406_v40 = vcombine.high %v9398_v56, %v9398_v56 }
 0x5ee   : > { %v9407_v59 = vcombine.high %v9405_v49, %v9405_v49 }
 0x5ef   : > { %v11352_v45 = vrot.slane %v11345_v53, %v13882_v39  ;;  %v11329_v52 = vcombine.low %v11320_v23, %v11327_v62  ;;  %12939 = vmatpush3.bf16.msra.mxu1 %v13116_v61  ;;  %v9421_v53 = vrot.slane %v9405_v49, %v13882_v39  ;;  %v9428_v55 = vrot.slane %v9406_v40, %v13882_v39 }
 0x5f0   : > { %v9305_v21 = vpop.f32.mrb[60].mxu1  ;;  %12940 = vmatprep.subr.bf16.mxu1 %v13117_v43  ;;  %v9435_v46 = vrot.slane %v9407_v59, %v13882_v39 }
 0x5f1   : > { %v10273_v4 = vcombine.high %v9305_v21, %v9305_v21  ;;  %v10280_v38 = vrot.slane %v9305_v21, %v13882_v39  ;;  %v12918_v5 = vpop.f32.mrb[61].mxu1  ;;  %v11359_v12 = vrot.slane %v11352_v45, %v13882_v39  ;;  %v11343_v8 = vrot.slane %v11329_v52, %v13882_v39 }
 0x5f2   : > { %v9308_v1 = vpop.f32.mrb[62].mxu1  ;;  %v10401_v45 = vcombine.low %v9421_v53, %v9435_v46  ;;  %v12530_v21 = vcombine.high %v9421_v53, %v9435_v46 }
 0x5f3   : > { %v10287_v25 = vrot.slane %v10273_v4, %v13882_v39  ;;  %v10288_v10 = vcombine.high %v10280_v38, %v10280_v38  ;;  %v10328_v32 = vrot.slane %v9308_v1, %v13882_v39  ;;  %v12919_v19 = vpop.f32.mrb[63].mxu1  ;;  %11364 = vrot.lane.b32.xlu0 %v11359_v12, %s13493_s10  ;;  %v10296_v37 = vrot.slane %v10280_v38, %v13882_v39 }
 0x5f4   : > { %12941 = vmatpush3.bf16.msra.mxu1 %v13117_v43  ;;  %v10399_v4 = vcombine.low %v9414_v7, %v9428_v55  ;;  %v12529_v38 = vcombine.high %v9414_v7, %v9428_v55  ;;  %v10423_v20 = vrot.slane %v10401_v45, %v13882_v39  ;;  %v10430_v28 = vrot.slane %v12530_v21, %v13882_v39 }
 0x5f5   : > { %v10289_v22 = vcombine.high %v10287_v25, %v10287_v25  ;;  %v10310_v41 = vrot.slane %v10288_v10, %v13882_v39  ;;  %v10335_v33 = vrot.slane %v10328_v32, %v13882_v39  ;;  %v10303_v30 = vrot.slane %v10287_v25, %v13882_v39 }
 0x5f6   : > { %v10409_v15 = vrot.slane %v10399_v4, %v13882_v39  ;;  %v10416_v35 = vrot.slane %v12529_v38, %v13882_v39  ;;  %v10432_v25 = vcombine.low %v10423_v20, %v10430_v28  ;;  %v12545_v4 = vld [vmem:[%s16549_s25] ss:$0 sm:$0xff] }
 0x5f7   : > { %v10317_v63 = vrot.slane %v10289_v22, %v13882_v39  ;;  %v11247_v9 = vcombine.low %v10296_v37, %v10310_v41  ;;  %v12543_v50 = vcombine.high %v10296_v37, %v10310_v41  ;;  %v11296_v6 = vcombine.low %v10335_v33, %v10359_v0 }
 0x5f8   : > { %v10431_v10 = vcombine.low %v10409_v15, %v10416_v35  ;;  %v10446_v22 = vrot.slane %v10432_v25, %v13882_v39  ;;  %v10504_v37 = vrot.slane %v15965_v27, %v13882_v39  ;;  %v13298_v35 = vld [vmem:[#allocation2] sm:$0xff]  ;;  %v13299_v25 = vld [vmem:[#allocation2 + $0x8] sm:$0xff] }
 0x5f9   : > { %v11249_v17 = vcombine.low %v10303_v30, %v10317_v63  ;;  %v12544_v57 = vcombine.high %v10303_v30, %v10317_v63  ;;  %v11257_v36 = vrot.slane %v11247_v9, %v13882_v39  ;;  %v11264_v44 = vrot.slane %v12543_v50, %v13882_v39 }
 0x5fa   : > { %v11306_v29 = vrot.slane %v11296_v6, %v13882_v39  ;;  %v10439_v41 = vrot.slane %v10431_v10, %v13882_v39  ;;  %v10511_v30 = vrot.slane %v10504_v37, %v13882_v39  ;;  %v13118_v37 = vld [vmem:[%s13765_s20] ss:$8 sps:$4 sm:$0xff]  }
 0x5fb   : > { %v11271_v16 = vrot.slane %v11249_v17, %v13882_v39  ;;  %v11278_v2 = vrot.slane %v12544_v57, %v13882_v39  ;;  %v11279_v3 = vcombine.low %v11257_v36, %v11264_v44 }
 0x5fc   : > { %v11328_v14 = vcombine.low %v11306_v29, %v11313_v42  ;;  %v10633_v0 = vpop.permute.xlu0 %10632  ;;  %v10447_v11 = vcombine.low %v10439_v41, %v10446_v22  ;;  %v13120_v41 = vld [vmem:[%s13765_s20 + $0x4] ss:$8 sps:$4 sm:$0xff]  }
 0x5fd   : > { %v11280_v24 = vcombine.low %v11271_v16, %v11278_v2  ;;  %v11287_v18 = vrot.slane %v11279_v3, %v13882_v39  ;;  %v11371_v6 = vsel %vm7480_vm1, %v10511_v30, %v10633_v0  ;;  %11687 = vmatprep.subr.bf16.mxu0 %v13120_v41 }
 0x5fe   : > { %v11336_v51 = vrot.slane %v11328_v14, %v13882_v39  ;;  %11688 = vmatpush1.bf16.msra.mxu0 %v13118_v37 }
 0x5ff   : > { %v11294_v48 = vrot.slane %v11280_v24, %v13882_v39 }
 0x600   : > { %v11344_v54 = vcombine.low %v11336_v51, %v11343_v8 }
 0x601   : > { %v11295_v60 = vcombine.low %v11287_v18, %v11294_v48  ;;  %v13045_v26 = vpop.permute.xlu1 %13044 }
 0x602   : > { %v13047_v23 = vunpack.i.h.bf16 %v13045_v26  ;;  %v13046_v62 = vunpack.i.l.bf16 %v13045_v26 }
 0x603   : > { %v13073_v47 = vpack.i.bf16 %v11344_v54, %v11295_v60 }
 0x604   : > { %v11370_v44 = vsel %vm7480_vm1, %v15969_v58, %v13047_v23  ;;  %v11369_v43 = vsel %vm7480_vm1, %v10447_v11, %v13046_v62 }
 0x605   : > { %13074 = vrot.lane.b32.xlu1 %v13073_v47, %s13493_s10 }
 0x611   : > { %v10755_v5 = vpop.permute.xlu0 %10754 }
 0x612   : > { %v11375_v29 = vsel %vm11372_vm6, %v11371_v6, %v10755_v5 }
 0x615   : > { %v13050_v12 = vpop.permute.xlu1 %13049 }
 0x616   : > { %v13052_v63 = vunpack.i.h.bf16 %v13050_v12  ;;  %v13051_v9 = vunpack.i.l.bf16 %v13050_v12 }
 0x618   : > { %v11374_v16 = vsel %vm11372_vm6, %v11370_v44, %v13052_v63  ;;  %v11373_v2 = vsel %vm11372_vm6, %v11369_v43, %v13051_v9  ;;  %v13124_v43 = vld [vmem:[%s13765_s20 + $0x20] ss:$8 sps:$4 sm:$0xff]  }
 0x623   : > { %v10877_v34 = vpop.permute.xlu0 %10876 }
 0x624   : > { %v11379_v14 = vsel %vm11376_vm7, %v11375_v29, %v10877_v34  ;;  %v13127_v29 = vld [vmem:[%s13765_s20 + $0x30] ss:$8 sps:$4 sm:$0xff]  }
 0x627   : > { %v13055_v1 = vpop.permute.xlu1 %13054 }
 0x628   : > { %v13057_v50 = vunpack.i.h.bf16 %v13055_v1  ;;  %v13056_v17 = vunpack.i.l.bf16 %v13055_v1 }
 0x62a   : > { %v11378_v24 = vsel %vm11376_vm7, %v11374_v16, %v13057_v50  ;;  %v11377_v18 = vsel %vm11376_vm7, %v11373_v2, %v13056_v17  ;;  %v13132_v16 = vld [vmem:[%s13765_s20 + $0x44] ss:$8 sps:$4 sm:$0xff]   ;;  %v13130_v2 = vld [vmem:[%s13765_s20 + $0x40] ss:$8 sps:$4 sm:$0xff]  }
 0x637   : > { %v10999_v32 = vpop.permute.xlu0 %10998 }
 0x638   : > { %v11383_v58 = vsel %vm11380_vm8, %v11379_v14, %v10999_v32  ;;  %v13300_v32 = vld [vmem:[#allocation2 + $0x10] sm:$0x3] }
 0x639   : > { %v13133_v14 = vld [vmem:[%s13765_s20 + $0x50] ss:$8 sps:$4 sm:$0xff]  }
 0x63b   : > { %v13060_v19 = vpop.permute.xlu1 %13059 }
 0x63c   : > { %v13062_v27 = vunpack.i.h.bf16 %v13060_v19  ;;  %v13061_v42 = vunpack.i.l.bf16 %v13060_v19 }
 0x63e   : > { %v11382_v48 = vsel %vm11380_vm8, %v11378_v24, %v13062_v27  ;;  %v11381_v60 = vsel %vm11380_vm8, %v11377_v18, %v13061_v42  ;;  %v13126_v42 = vld [vmem:[%s13765_s20 + $0x24] ss:$8 sps:$4 sm:$0xff]  }
 0x63f   : > { %v13138_v24 = vld [vmem:[%s13765_s20 + $0x64] ss:$8 sps:$4 sm:$0xff]  }
 0x640   : > { %v13142_v18 = vld [vmem:[%s13817_s1 + $0x40] sm:$0xff]  }
 0x641   : > { %12686 = vmatprep.subr.bf16.mxu1 %v13142_v18 }
 0x64e   : > { %v11121_v33 = vpop.permute.xlu0 %11120 }
 0x64f   : > { %v11387_v47 = vsel %vm11384_vm9, %v11383_v58, %v11121_v33  ;;  %v13123_v33 = vld [vmem:[%s13765_s20 + $0x14] ss:$8 sps:$4 sm:$0xff]   ;;  %v13143_v58 = vld [vmem:[%s13817_s1] sm:$0xff]  }
 0x650   : > { %11689 = vmatprep.subr.bf16.mxu0 %v13123_v33 }
 0x654   : > { %v13065_v61 = vpop.permute.xlu1 %13064 }
 0x655   : > { %v13067_v52 = vunpack.i.h.bf16 %v13065_v61  ;;  %v13066_v3 = vunpack.i.l.bf16 %v13065_v61  ;;  %v13121_v61 = vld [vmem:[%s13765_s20 + $0x10] ss:$8 sps:$4 sm:$0xff]  }
 0x656   : > { %11690 = vmatpush1.bf16.msra.mxu0 %v13121_v61  ;;  %v13153_v61 = vld [vmem:[%s13817_s1 + $0x28] sm:$0xff]  }
 0x657   : > { %v11386_v31 = vsel %vm11384_vm9, %v11382_v48, %v13067_v52  ;;  %v11385_v56 = vsel %vm11384_vm9, %v11381_v60, %v13066_v3  ;;  %11691 = vmatprep.subr.bf16.mxu0 %v13126_v42  ;;  %v13129_v52 = vld [vmem:[%s13765_s20 + $0x34] ss:$8 sps:$4 sm:$0xff]   ;;  %v13144_v48 = vld [vmem:[%s13817_s1 + $0x48] sm:$0xff]  }
 0x658   : > { %v11243_v57 = vpop.permute.xlu0 %11242  ;;  %v13135_v3 = vld [vmem:[%s13765_s20 + $0x54] ss:$8 sps:$4 sm:$0xff]   ;;  %v13145_v60 = vld [vmem:[%s13817_s1 + $0x8] sm:$0xff]  }
 0x659   : > { %v11391_v59 = vsel %vm11388_vm10, %v11387_v47, %v11243_v57  ;;  %v13146_v47 = vld [vmem:[%s13817_s1 + $0x50] sm:$0xff]  }
 0x65a   : > { %11692 = vmatpush1.bf16.msra.mxu0 %v13124_v43 }
 0x65b   : > { %11693 = vmatprep.subr.bf16.mxu0 %v13129_v52 }
 0x65d   : > { %v13070_v36 = vpop.permute.xlu1 %13069 }
 0x65e   : > { %v13072_v51 = vunpack.i.h.bf16 %v13070_v36  ;;  %v13071_v8 = vunpack.i.l.bf16 %v13070_v36  ;;  %11694 = vmatpush1.bf16.msra.mxu0 %v13127_v29 }
 0x65f   : > { %11695 = vmatprep.subr.bf16.mxu0 %v13132_v16 }
 0x660   : > { %v11390_v53 = vsel %vm11388_vm10, %v11386_v31, %v13072_v51  ;;  %v11389_v55 = vsel %vm11388_vm10, %v11385_v56, %v13071_v8  ;;  %v13136_v51 = vld [vmem:[%s13765_s20 + $0x60] ss:$8 sps:$4 sm:$0xff]   ;;  %v13141_v8 = vld [vmem:[%s13765_s20 + $0x74] ss:$8 sps:$4 sm:$0xff]  }
 0x661   : > { %v13147_v31 = vld [vmem:[%s13817_s1 + $0x10] sm:$0xff]   ;;  %v13149_v56 = vld [vmem:[%s13817_s1 + $0x18] sm:$0xff]  }
 0x662   : > { %11696 = vmatpush1.bf16.msra.mxu0 %v13130_v2 }
 0x663   : > { %11697 = vmatprep.subr.bf16.mxu0 %v13135_v3 }
 0x665   : > { %v11365_v54 = vpop.permute.xlu0 %11364 }
 0x666   : > { %v11395_v0 = vsel %vm11392_vm11, %v11391_v59, %v11365_v54  ;;  %11698 = vmatpush1.bf16.msra.mxu0 %v13133_v14  ;;  %v13139_v54 = vld [vmem:[%s13765_s20 + $0x70] ss:$8 sps:$4 sm:$0xff]   ;;  %v13150_v59 = vld [vmem:[%s13817_s1 + $0x60] sm:$0xff]  }
 0x667   : > { %v11397_v21 = vpack.c.bf16 %v11395_v0, %v11395_v0  ;;  %11699 = vmatprep.subr.bf16.mxu0 %v13138_v24 }
 0x66a   : > { %11700 = vmatpush1.bf16.msra.mxu0 %v13136_v51 }
 0x66b   : > { %11701 = vmatprep.subr.bf16.mxu0 %v13141_v8 }
 0x66e   : > { %11702 = vmatpush1.bf16.msra.mxu0 %v13139_v54 }
 0x677   : > { %v13075_v49 = vpop.permute.xlu1 %13074 }
 0x678   : > { %v13077_v40 = vunpack.i.h.bf16 %v13075_v49  ;;  %v13076_v46 = vunpack.i.l.bf16 %v13075_v49  ;;  %v13148_v49 = vld [vmem:[%s13817_s1 + $0x58] sm:$0xff]  }
 0x67a   : > { %v11393_v26 = vsel %vm11392_vm11, %v11389_v55, %v13076_v46  ;;  %v11394_v7 = vsel %vm11392_vm11, %v11390_v53, %v13077_v40  ;;  %v13151_v40 = vld [vmem:[%s13817_s1 + $0x20] sm:$0xff]   ;;  %v13152_v46 = vld [vmem:[%s13817_s1 + $0x68] sm:$0xff]  }
 0x67b   : > { %v11396_v45 = vpack.c.bf16 %v11394_v7, %v11393_v26 }
 0x67d   : > { %12942 = vmatprep.mubr.bf16.mxu1 %v11396_v45 }
 0x67e   : > { %12943 = vmatmul.mubr.bf16.vlgmr.msra.gmra.mrb[64].mxu1 %v11397_v21 }
 0x67f   : > { %12687 = vmatpush3.bf16.msra.mxu1 %v13143_v58 }
 0x680   : > { %12688 = vmatprep.subr.bf16.mxu1 %v13144_v48 }
 0x683   : > { %12689 = vmatpush3.bf16.msra.mxu1 %v13145_v60 }
 0x684   : > { %12690 = vmatprep.subr.bf16.mxu1 %v13146_v47 }
 0x687   : > { %12691 = vmatpush3.bf16.msra.mxu1 %v13147_v31 }
 0x688   : > { %12692 = vmatprep.subr.bf16.mxu1 %v13148_v49 }
 0x68b   : > { %12693 = vmatpush3.bf16.msra.mxu1 %v13149_v56 }
 0x68c   : > { %12694 = vmatprep.subr.bf16.mxu1 %v13150_v59  ;;  %v12572_v59 = vld [vmem:[%s751_s15] ss:$0 sm:$0xff] }
 0x68f   : > { %12695 = vmatpush3.bf16.msra.mxu1 %v13151_v40 }
 0x690   : > { %12696 = vmatprep.subr.bf16.mxu1 %v13152_v46 }
 0x693   : > { %12697 = vmatpush3.bf16.msra.mxu1 %v13153_v61 }
 0x751   : > { %v12944_v38 = vpop.f32.mrb[64].mxu1 }
 0x752   : > { %v11503_v5 = vpop.f32.mrb[65].mxu1  ;;  %v11512_v28 = vadd.f32 %v12944_v38, %v12545_v4 }
 0x753   : > { %v11504_v12 = vadd.f32 %v12545_v4, %v11503_v5  ;;  %v12945_v20 = vpop.f32.mrb[66].mxu1 }
 0x754   : > { %v11506_v15 = vpop.f32.mrb[67].mxu1  ;;  %v11519_v19 = vadd.f32 %v13300_v32, %v11512_v28 }
 0x755   : > { %v11517_v34 = vadd.f32 %v13298_v35, %v11504_v12  ;;  %v11507_v1 = vadd.f32 %v12545_v4, %v11506_v15  ;;  %v12554_v12 = vld [vmem:[%s16550_s30] ss:$0 sm:$0xff] }
 0x756   : > { %v11527_v22 = vsel %vm11526_vm12, %v11519_v19, 0.0 }
 0x757   : > { %v11518_v10 = vadd.f32 %v13299_v25, %v11507_v1  ;;  %11522 = vadd.xlane.f32.xlu1 %v11517_v34 }
 0x759   : > { %11524 = vadd.xlane.f32.xlu0 %v11518_v10 }
 0x75d   : > { %11528 = vadd.xlane.f32.xlu0 %v11527_v22 }
 0x7e4   : > { %v11523_v11 = vpop.xlane.xlu1 %11522 }
 0x7e5   : > { %v11531_v23 = vmul.f32 0.0078125, %v11523_v11  ;;  %v13154_v11 = vld [vmem:[%s13817_s1 + $0x70] sm:$0xff]  }
 0x7e6   : > { %v11525_v62 = vpop.xlane.xlu0 %11524  ;;  %12698 = vmatprep.subr.bf16.mxu1 %v13154_v11 }
 0x7e7   : > { %v16253_v30 = vsub.f32 %v11517_v34, %v11531_v23  ;;  %v11532_v63 = vmul.f32 0.0078125, %v11525_v62  ;;  %v12555_v34 = vld [vmem:[%s744_s9] ss:$0 sm:$0xff]  ;;  %v13155_v23 = vld [vmem:[%s13817_s1 + $0x30] sm:$0xff]   ;;  %v13156_v62 = vld [vmem:[%s13817_s1 + $0x78] sm:$0xff]  }
 0x7e8   : > { %12699 = vmatpush3.bf16.msra.mxu1 %v13155_v23 }
 0x7e9   : > { %v16255_v9 = vsub.f32 %v11518_v10, %v11532_v63  ;;  %v11537_v50 = vmul.f32 %v16253_v30, %v16253_v30  ;;  %12700 = vmatprep.subr.bf16.mxu1 %v13156_v62  ;;  %v11595_v63 = vld [vmem:[%s13803_s3] sm:$0x3] }
 0x7ea   : > { %v11529_v6 = vpop.xlane.xlu0 %11528 }
 0x7eb   : > { %v11533_v17 = vmul.f32 0.0078125, %v11529_v6  ;;  %11540 = vadd.xlane.f32.xlu1 %v11537_v50  ;;  %v11538_v27 = vmul.f32 %v16255_v9, %v16255_v9  ;;  %v16552_v6 = vld [vmem:[#allocation20_spill] sm:$0xff] }
 0x7ed   : > { %v16261_v57 = vsub.f32 %v11519_v19, %v11533_v17  ;;  %11542 = vadd.xlane.f32.xlu0 %v11538_v27  ;;  %v11604_v17 = vrot.slane %v11595_v63, %v16552_v6 }
 0x7ef   : > { %v11539_v36 = vmul.f32 %v16261_v57, %v16261_v57 }
 0x7f1   : > { %v11544_v44 = vsel %vm11526_vm12, %v11539_v36, 0.0 }
 0x7f2   : > { %11545 = vadd.xlane.f32.xlu1 %v11544_v44 }
 0x878   : > { %v11541_v53 = vpop.xlane.xlu1 %11540 }
 0x879   : > { %v11547_v55 = vmul.f32 0.0078125, %v11541_v53 }
 0x87a   : > { %v11543_v0 = vpop.xlane.xlu0 %11542 }
 0x87b   : > { %v11550_v26 = vadd.f32 1e-05, %v11547_v55  ;;  %v11548_v7 = vmul.f32 0.0078125, %v11543_v0 }
 0x87d   : > { %13286 = vrsqrt.f32 %v11550_v26  ;;  %v11551_v45 = vadd.f32 1e-05, %v11548_v7 }
 0x87f   : > { %13288 = vrsqrt.f32 %v11551_v45  ;;  %v11546_v21 = vpop.xlane.xlu1 %11545 }
 0x880   : > { %v11549_v4 = vmul.f32 0.0078125, %v11546_v21 }
 0x882   : > { %v11552_v38 = vadd.f32 1e-05, %v11549_v4 }
 0x884   : > { %13290 = vrsqrt.f32 %v11552_v38 }
 0x887   : > { %v13287_v5 = vpop.eup %13286 }
 0x888   : > { %v11556_v20 = vmul.f32 %v13287_v5, %v16253_v30  ;;  %v13157_v30 = vld [vmem:[%s13817_s1 + $0x38] sm:$0xff]  }
 0x889   : > { %v13289_v28 = vpop.eup %13288  ;;  %12701 = vmatpush3.bf16.msra.mxu1 %v13157_v30 }
 0x88a   : > { %v11557_v15 = vmul.f32 %v13289_v28, %v16255_v9  ;;  %v11565_v35 = vmul.f32 %v12554_v12, %v11556_v20  ;;  %v16551_v9 = vld [vmem:[#allocation19_spill] sm:$0xff] }
 0x88b   : > { %v11600_v50 = vrot.slane %v11595_v63, %v16551_v9 }
 0x88c   : > { %v11566_v1 = vmul.f32 %v12554_v12, %v11557_v15  ;;  %v11574_v10 = vadd.f32 %v12555_v34, %v11565_v35 }
 0x88e   : > { %v13291_v25 = vpop.eup %13290  ;;  %v16301_v32 = vadd.f32 %v12555_v34, %v11566_v1 }
 0x88f   : > { %v11558_v19 = vmul.f32 %v13291_v25, %v16261_v57 }
 0x890   : > { %v11577_v22 = vpack.c.bf16 %v16301_v32, %v11574_v10 }
 0x891   : > { %v11567_v37 = vmul.f32 %v12554_v12, %v11558_v19 }
 0x892   : > { %11720 = vmatmul.mubr.bf16.vlgmr.msra.gmra.mrb[76].mxu0 %v11577_v22 }
 0x893   : > { %11729 = vmatprep.mubr.bf16.mxu0 %v16548_v13  ;;  %v11576_v41 = vadd.f32 %v12555_v34, %v11567_v37 }
 0x895   : > { %v11578_v33 = vpack.c.bf16 %v11576_v41, %v11576_v41 }
 0x89a   : > { %11730 = vmatmul.mubr.bf16.gmra.mrb[80].mxu0 %v11578_v33 }
 0x965   : > { %v11721_v27 = vpop.f32.mrb[76].mxu0 }
 0x966   : > { %v11722_v13 = vadd.f32 %v11721_v27, %v11600_v50  ;;  %v11723_v57 = vpop.f32.mrb[77].mxu0 }
 0x967   : > { %v11724_v36 = vadd.f32 %v11723_v57, %v11604_v17  ;;  %v11725_v44 = vpop.f32.mrb[78].mxu0  ;;  %v12589_v57 = vld [vmem:[%s754_s19] ss:$0 sm:$0xff] }
 0x968   : > { %v11726_v43 = vadd.f32 %v11725_v44, %v11600_v50  ;;  %v11727_v42 = vpop.f32.mrb[79].mxu0  ;;  %v11738_v29 = vmax.f32 %v11722_v13, 0.0 }
 0x969   : > { %v11728_v52 = vadd.f32 %v11727_v42, %v11604_v17  ;;  %v11739_v2 = vmax.f32 %v11724_v36, 0.0 }
 0x96a   : > { %v11740_v16 = vmax.f32 %v11726_v43, 0.0  ;;  %v12590_v43 = vld [vmem:[%s757_s23] ss:$0 sm:$0xff]  ;;  %s16558_s23 = sld [smem:[#allocation43_spill]] (!%p12591_p7) }
 0x96b   : > { %v11741_v3 = vmax.f32 %v11728_v52, 0.0 }
 0x96c   : > { %v11744_v14 = vpack.c.bf16 %v11740_v16, %v11738_v29 }
 0x96d   : > { %v11745_v24 = vpack.c.bf16 %v11741_v3, %v11739_v2  ;;  %v11731_v51 = vpop.f32.mrb[80].mxu0 }
 0x96e   : > { %v11732_v8 = vadd.f32 %v11731_v51, %v11600_v50  ;;  %v11733_v18 = vpop.f32.mrb[81].mxu0 }
 0x96f   : > { %v11734_v58 = vadd.f32 %v11733_v18, %v11604_v17  ;;  %v11735_v48 = vpop.f32.mrb[82].mxu0  ;;  %11915 = vmatprep.mubr.bf16.mxu1 %v11745_v24 }
 0x970   : > { %v11736_v54 = vpop.f32.mrb[83].mxu0  ;;  %11916 = vmatmul.mubr.bf16.vlgmr.msra.gmra.mrb[68].mxu1 %v11744_v14  ;;  %v11742_v47 = vmax.f32 %v11732_v8, 0.0 }
 0x971   : > { %v11743_v60 = vmax.f32 %v11734_v58, 0.0 }
 0x972   : > { %v11746_v49 = vpack.c.bf16 %v11742_v47, %v11742_v47 }
 0x973   : > { %v11747_v31 = vpack.c.bf16 %v11743_v60, %v11743_v60 }
 0x975   : > { %11923 = vmatprep.mubr.bf16.mxu1 %v11747_v31 }
 0x978   : > { %11924 = vmatmul.mubr.bf16.gmra.mrb[72].mxu1 %v11746_v49 }
 0xa43   : > { %v12702_v56 = vpop.f32.mrb[68].mxu1 }
 0xa44   : > { %v12703_v40 = vpop.f32.mrb[69].mxu1 }
 0xa45   : > { %v12704_v46 = vadd.f32 %v12703_v40, %v12702_v56  ;;  %v12705_v53 = vpop.f32.mrb[70].mxu1 }
 0xa46   : > { %v12706_v55 = vpop.f32.mrb[71].mxu1 }
 0xa47   : > { %v11918_v0 = vadd.f32 %v12704_v46, %v12572_v59  ;;  %v12707_v26 = vadd.f32 %v12706_v55, %v12705_v53  ;;  %v16556_v46 = vld [vmem:[#allocation19_spill] sm:$0xff] (!%p12591_p7)  ;;  %v16557_v55 = vld [vmem:[#allocation20_spill] sm:$0xff] (!%p12591_p7) }
 0xa49   : > { %v11931_v7 = vadd.f32 %v11918_v0, %v11574_v10  ;;  %v11921_v28 = vadd.f32 %v12707_v26, %v12572_v59 }
 0xa4b   : > { %v12708_v45 = vpop.f32.mrb[72].mxu1  ;;  %11936 = vadd.xlane.f32.xlu1 %v11931_v7  ;;  %v11932_v35 = vadd.f32 %v11921_v28, %v16301_v32 }
 0xa4c   : > { %v12709_v21 = vpop.f32.mrb[73].mxu1 }
 0xa4d   : > { %v12710_v4 = vadd.f32 %v12709_v21, %v12708_v45  ;;  %v12711_v38 = vpop.f32.mrb[74].mxu1 }
 0xa4e   : > { %v12712_v5 = vpop.f32.mrb[75].mxu1 }
 0xa4f   : > { %v11926_v12 = vadd.f32 %v12710_v4, %v12572_v59 }
 0xa51   : > { %v11933_v20 = vadd.f32 %v11926_v12, %v11576_v41 }
 0xa53   : > { %v11940_v15 = vsel %vm11526_vm12, %v11933_v20, 0.0 }
 0xa54   : > { %11941 = vadd.xlane.f32.xlu0 %v11940_v15 }
 0xa58   : > { %11938 = vadd.xlane.f32.xlu0 %v11932_v35 }
 0xad8   : > { %v11937_v34 = vpop.xlane.xlu1 %11936 }
 0xad9   : > { %v11943_v1 = vmul.f32 0.0078125, %v11937_v34  ;;  %v12593_v34 = vld [vmem:[%s16559_s29] ss:$0 sm:$0xff] (!%p12591_p7) }
 0xadb   : > { %v11946_v25 = vsub.f32 %v11931_v7, %v11943_v1 }
 0xadd   : > { %v11949_v19 = vmul.f32 %v11946_v25, %v11946_v25 }
 0xadf   : > { %11952 = vadd.xlane.f32.xlu1 %v11949_v19 }
 0xae1   : > { %v11942_v10 = vpop.xlane.xlu0 %11941 }
 0xae2   : > { %v11945_v22 = vmul.f32 0.0078125, %v11942_v10 }
 0xae4   : > { %v11948_v37 = vsub.f32 %v11933_v20, %v11945_v22 }
 0xae5   : > { %v11939_v33 = vpop.xlane.xlu0 %11938 }
 0xae6   : > { %v11944_v61 = vmul.f32 0.0078125, %v11939_v33  ;;  %v11951_v11 = vmul.f32 %v11948_v37, %v11948_v37 }
 0xae8   : > { %v11947_v41 = vsub.f32 %v11932_v35, %v11944_v61  ;;  %v11956_v23 = vsel %vm11526_vm12, %v11951_v11, 0.0  ;;  %v12592_v35 = vld [vmem:[%s16558_s23] ss:$0 sm:$0xff] (!%p12591_p7) }
 0xae9   : > { %11957 = vadd.xlane.f32.xlu1 %v11956_v23  ;;  %v12114_v1 = vrot.slane (!%p12591_p7), %v12592_v35, %v13882_v39 }
 0xaea   : > { %v11950_v62 = vmul.f32 %v11947_v41, %v11947_v41 }
 0xaeb   : > { %v12115_v19 = vcombine.high (!%p12591_p7), %v12114_v1, %v12114_v1 }
 0xaec   : > { %11954 = vadd.xlane.f32.xlu0 %v11950_v62 }
 0xaed   : > { %v12129_v33 = vrot.slane (!%p12591_p7), %v12115_v19, %v13882_v39 }
 0xb6c   : > { %v11953_v32 = vpop.xlane.xlu1 %11952 }
 0xb6d   : > { %v11959_v30 = vmul.f32 0.0078125, %v11953_v32 }
 0xb6f   : > { %v11962_v63 = vadd.f32 1e-05, %v11959_v30 }
 0xb71   : > { %13292 = vrsqrt.f32 %v11962_v63 }
 0xb76   : > { %v11958_v9 = vpop.xlane.xlu1 %11957 }
 0xb77   : > { %v11961_v50 = vmul.f32 0.0078125, %v11958_v9 }
 0xb79   : > { %v11964_v6 = vadd.f32 1e-05, %v11961_v50  ;;  %v11955_v17 = vpop.xlane.xlu0 %11954 }
 0xb7a   : > { %v11960_v27 = vmul.f32 0.0078125, %v11955_v17 }
 0xb7b   : > { %v13293_v13 = vpop.eup %13292  ;;  %13294 = vrsqrt.f32 %v11964_v6 }
 0xb7c   : > { %v11968_v36 = vmul.f32 %v13293_v13, %v11946_v25  ;;  %v11963_v44 = vadd.f32 1e-05, %v11960_v27  ;;  %v12145_v25 = vrot.slane (!%p12591_p7), %v12593_v34, %v13882_v39 }
 0xb7e   : > { %v11977_v42 = vmul.f32 %v12589_v57, %v11968_v36  ;;  %13296 = vrsqrt.f32 %v11963_v44  ;;  %v12146_v10 = vcombine.high (!%p12591_p7), %v12145_v25, %v12145_v25 }
 0xb80   : > { %v11986_v52 = vadd.f32 %v12590_v43, %v11977_v42  ;;  %v12160_v23 = vrot.slane (!%p12591_p7), %v12146_v10, %v13882_v39 }
 0xb82   : > { %11989 = vst [vmem:[#allocation2] sm:$0xff] %v11986_v52  ;;  %v12004_v18 = vrot.slane (!%p12591_p7), %v11986_v52, %v13882_v39 }
 0xb84   : > { %v12011_v48 = vrot.slane (!%p12591_p7), %v12004_v18, %v13882_v39 }
 0xb85   : > { %v13295_v29 = vpop.eup %13294 }
 0xb86   : > { %v11970_v16 = vmul.f32 %v13295_v29, %v11948_v37  ;;  %v12122_v37 = vrot.slane (!%p12591_p7), %v12114_v1, %v13882_v39 }
 0xb88   : > { %v13297_v2 = vpop.eup %13296  ;;  %v11979_v3 = vmul.f32 %v12589_v57, %v11970_v16 }
 0xb89   : > { %v11969_v14 = vmul.f32 %v13297_v2, %v11947_v41  ;;  %11995 = sbr.rel (%p12591_p7) target bundleno = 3299 (0xce3), region = 100  ;;  %v12153_v41 = vrot.slane (!%p12591_p7), %v12145_v25, %v13882_v39 }
 0xb8a   : > { %v11988_v24 = vadd.f32 %v12590_v43, %v11979_v3 }
 0xb8b   : > { %v11978_v51 = vmul.f32 %v12589_v57, %v11969_v14 }
 0xb8c   : > { %11991 = vst [vmem:[#allocation2 + $0x10] sm:$0x3] %v11988_v24 }
 0xb8d   : > { %v11987_v8 = vadd.f32 %v12590_v43, %v11978_v51 }
 0xb8f   : > { %11990 = vst [vmem:[#allocation2 + $0x8] sm:$0xff] %v11987_v8  ;;  %v12018_v58 = vrot.slane (!%p12591_p7), %v11987_v8, %v13882_v39 }
 0xb91   : > { %v12019_v54 = vcombine.high %v12018_v58, %v12018_v58 }
 0xb93   : > { %v12026_v60 = vrot.slane %v12019_v54, %v13882_v39 }
 0xb95   : > { %v12031_v47 = vcombine.low %v12011_v48, %v12026_v60 }
 0xb97   : > { %v12038_v31 = vrot.slane %v12031_v47, %v13882_v39 }
 0xb99   : > { %v12045_v49 = vrot.slane %v12038_v31, %v13882_v39 }
 0xb9b   : > { %v12047_v56 = vsel %vm11526_vm12, %v12045_v49, 0.0 }
 0xb9c   : > { %12048 = vadd.xlane.f32.xlu0 %v12047_v56 }
 0xc29   : > { %v12049_v59 = vpop.xlane.xlu0 %12048 }
 0xc2a   : > { %v12050_v40 = vmul.f32 0.0078125, %v12049_v59 }
 0xc2c   : > { %v12055_v53 = vrot.slane %v12050_v40, %v16556_v46  ;;  %v12059_v0 = vrot.slane %v12050_v40, %v16557_v55 }
 0xc2e   : > { %v12062_v26 = vsub.f32 %v12011_v48, %v12055_v53  ;;  %v12063_v7 = vsub.f32 %v12026_v60, %v12059_v0 }
 0xc30   : > { %v12064_v45 = vmul.f32 %v12062_v26, %v12062_v26  ;;  %v12065_v21 = vmul.f32 %v12063_v7, %v12063_v7 }
 0xc32   : > { %v12068_v4 = vcombine.low %v12064_v45, %v12065_v21 }
 0xc34   : > { %v12075_v38 = vrot.slane %v12068_v4, %v13882_v39 }
 0xc36   : > { %v12082_v5 = vrot.slane %v12075_v38, %v13882_v39 }
 0xc38   : > { %v12084_v12 = vsel %vm11526_vm12, %v12082_v5, 0.0 }
 0xc39   : > { %12085 = vadd.xlane.f32.xlu0 %v12084_v12 }
 0xcc6   : > { %v12086_v20 = vpop.xlane.xlu0 %12085 }
 0xcc7   : > { %v12087_v28 = vmul.f32 0.0078125, %v12086_v20 }
 0xcc9   : > { %v12088_v15 = vadd.f32 1e-05, %v12087_v28 }
 0xccb   : > { %13301 = vrsqrt.f32 %v12088_v15 }
 0xcd5   : > { %v13302_v22 = vpop.eup %13301 }
 0xcd6   : > { %v12094_v61 = vrot.slane %v13302_v22, %v16556_v46  ;;  %v12098_v11 = vrot.slane %v13302_v22, %v16557_v55 }
 0xcd8   : > { %v12101_v62 = vmul.f32 %v12094_v61, %v12062_v26  ;;  %v12102_v32 = vmul.f32 %v12098_v11, %v12063_v7 }
 0xcda   : > { %v12132_v30 = vmul.f32 %v12122_v37, %v12101_v62  ;;  %v12133_v63 = vmul.f32 %v12129_v33, %v12102_v32 }
 0xcdc   : > { %v12163_v9 = vadd.f32 %v12153_v41, %v12132_v30  ;;  %v12164_v50 = vadd.f32 %v12160_v23, %v12133_v63 }
 0xcde   : > { %v12167_v6 = vcombine.low %v12163_v9, %v12164_v50 }
 0xce0   : > { %v12174_v17 = vrot.slane %v12167_v6, %v13882_v39 }
 0xce2   : > { %12594 = vst.sshfl [vmem:[#allocation9] sm:$0x5 pattern:$0x73625140] %v12174_v17 }
 0xce3 PF: > { %p12971_p13 = scmp.eq.s32.totalorder %s13611_s24, 1  ;;  %s13501_s14 = smov [#allocation9]  }
 0xce4   : > { %s12193_s13 = sshll.u32 %s13501_s14, 4  ;;  %s12194_s13 = int_to_ptr.vmem [resolvable:$true] %s12193_s13 }
 0xce5   : > { %s13393_s28 = scalar_lea.vmem %s12194_s13, 32  ;;  %p13400_p8 = scmp.lt.s32.totalorder %s12194_s13, %s12194_s13 }
 0xce6   : > { %p13394_p3 = scmp.ne.s32.totalorder %s12194_s13, %s13393_s28  ;;  %p13401_p5 = scmp.lt.s32.totalorder %s13393_s28, %s13393_s28 }
 0xce8   : > { %p13395_p4 = pnand %p13394_p3, %p12971_p13  ;;  %p13402_p2 = por %p13401_p5, %p13400_p8 }
 0xcea   : > { %p13396_p6 = pneg %p13395_p4 }
 0xcec   : > { %p13403_p12 = pnand %p13402_p2, %p13396_p6 }
 0xcee   : > { %13406 = shalt.err (!%p13403_p12)
}
 0xcef   : > { %s16560_s20 = sld [smem:[#allocation45_spill]] }
 0xcf5   : > { %s16561_s17 = smov %s16560_s20  ;;  %s13407_s30 = scalar_lea.hbm %s16560_s20, 32 }
 0xcf6   : > { %p13408_p0 = scmp.ne.s32.totalorder %s16561_s17, %s13407_s30  ;;  %p13413_p9 = scmp.lt.u32.totalorder %s13407_s30, %s16561_s17 }
 0xcf8   : > { %p13409_p11 = pnand %p13408_p0, %p12971_p13 }
 0xcfa   : > { %p13410_p10 = pneg %p13409_p11 }
 0xcfc   : > { %p13415_p1 = pnand %p13413_p9, %p13410_p10 }
 0xcfe   : > { %13418 = shalt.err (!%p13415_p1)
}
 0xcff   : > { %12957 = dma.vmem_to_hbm [thread:$0]  (%p12971_p13), %s12194_s13, 32, %s16561_s17, [#allocation5]  }
 0xd00   : > { %13452 = dma.done.wait (%p12971_p13), [#allocation5], 32  }
 0xd01   : > { %13454 = vsyncadd (%p12971_p13), [#allocation5], 4294967264 }
 0xd02 PF: > { %s16562_s22 = sld [smem:[#allocation16_spill]]  ;;  %s16563_s18 = sld [smem:[#allocation13_spill]] }
 0xd03   : > { %s16564_s19 = sld [smem:[#allocation14_spill]]  ;;  %s16565_s20 = sld [smem:[#allocation18_spill]] }
 0xd04   : > { %s16566_s21 = sld [smem:[#allocation15_spill]] }
 0xd08   : > { %s32_s23 = sadd.s32 1, %s16562_s22   ;;  %s16567_s22 = sld [smem:[#allocation17_spill]] }
 0xd09   : > { %p29_p7 = scmp.ge.s32.totalorder %s32_s23, 4  }
 0xd0b   :  { %31 = sbr.rel (!%p29_p7) target bundleno = 20 (0x14), region = 180 }
 0xd12   :  { %12206 = vsyncpa [#allocation4], 1 }
 0xd13   :  { %12208 = vsyncpa [#allocation4 + $0x1], 1 }
 0xd14   :  { %12209 = vsyncpa [#allocation7], 1 }
 0xd15   :  { %12211 = vsyncpa [#allocation7 + $0x1], 1 }
 0xd16   :  { %12212 = vsyncpa [#allocation5], 1 }
 0xd17   :  { %12214 = vsyncpa [#allocation5 + $0x1], 1 }

</bundles_post_ra>
